<compile_context>
chip_gen: v7x
topology: tpu7x:2x2x1
jax: 0.10.0
libtpu: 0.0.40
codegen_flags: <defaults>
</compile_context>

<pallas_src>
import functools

import jax
import jax.numpy as jnp
from jax import lax
from jax.experimental import pallas as pl
from jax.experimental.pallas import tpu as pltpu


# ------------------------------ Pallas kernel ------------------------------- #

def _conv_bn_lrelu_kernel(x_ref, w_ref, shift_ref, o_ref, slab_ref, *,
                          H, W, W1, k, stride, row_tile, pad, neg_slope):
    # x_ref:     (Cin, H, W)             raw (un-padded) image, VMEM
    # w_ref:     (k*k, Cout, Cin)        conv weights, tap-major, BN scale pre-folded
    # shift_ref: (Cout, 1)               folded BatchNorm shift
    # o_ref:     (Cout, row_tile, W1)    compact output rows for this tile
    # slab_ref:  (Cin, rows_in, W_pad)   zero-padded input rows for this tile (scratch)
    r = pl.program_id(1)
    base = r * row_tile * stride                # first padded-image row of this tile
    rows_in = (row_tile - 1) * stride + k

    # ---- 1) build the zero-padded row slab in VMEM (padding done in-kernel) ----
    slab_ref[...] = jnp.zeros_like(slab_ref)
    for t_in in range(rows_in):                 # static unroll; rows_in is small
        pr = base + t_in                        # padded-image row index (traced)

        @pl.when(jnp.logical_and(pr >= pad, pr < H + pad))
        def _copy(pr=pr, t_in=t_in):
            # dynamic slice only on the sublane (H) axis of the source; all
            # destination offsets are static.
            slab_ref[:, t_in:t_in + 1, pad:pad + W] = x_ref[:, pl.ds(pr - pad, 1), :]

    # ---- 2) per-output-row, per-tap MXU accumulation + fused BN / LeakyReLU ----
    shift = shift_ref[...]                      # (Cout, 1), hoisted out of the loops
    cout = o_ref.shape[0]
    for t in range(row_tile):                   # static unroll
        acc = jnp.zeros((cout, W1), jnp.float32)
        for dy in range(k):
            row = t * stride + dy               # static slab row (H-stride exact)
            for dx in range(k):
                acc = acc + jnp.dot(w_ref[dy * k + dx],
                                    slab_ref[:, row, dx:dx + W1],
                                    preferred_element_type=jnp.float32)
        y = acc + shift                                            # folded BN shift
        o_ref[:, t, :] = jnp.where(y >= 0.0, y, neg_slope * y).astype(o_ref.dtype)


# ------------------------------ module wrapper ------------------------------ #

@functools.partial(jax.jit, static_argnames=("stride", "padding", "eps",
                                              "negative_slope", "compute_dtype"))
def conv2d_unit_forward(x, weight, gamma, beta, running_mean, running_var, *,
                        stride=1, padding=1, eps=1e-5, negative_slope=0.1,
                        compute_dtype=jnp.float32):
    """Conv2dUnit.forward: Conv2d(bias=False) -> BatchNorm2d(eval) -> LeakyReLU(0.1)."""
    N, Cin, H, W = x.shape
    Cout, Cin_w, KH, KW = weight.shape
    assert Cin == Cin_w and KH == KW, (weight.shape, x.shape)
    k, p, s = KH, padding, stride

    W_pad = W + 2 * p
    H_out = (H + 2 * p - k) // s + 1
    W1 = W + 2 * p - k + 1                      # stride-1 output width (in-kernel)
    assert H_out > 0 and W1 > 0

    # Fold inference-mode BatchNorm: scale goes into the weights (conv is linear),
    # shift stays as a single per-channel add in the kernel epilogue.
    # TODO(synk): training-mode BatchNorm (batch stats + running-stat update) is not
    # replicated; inference-mode folded BN is used instead.
    inv_std = 1.0 / jnp.sqrt(running_var + eps)
    scale = gamma * inv_std
    shift = (beta - running_mean * scale).astype(jnp.float32).reshape(Cout, 1)
    w_taps = jnp.transpose(weight * scale[:, None, None, None],
                           (2, 3, 0, 1)).reshape(k * k, Cout, Cin)   # tap-major

    # TODO(synk): set compute_dtype=jnp.bfloat16 in production on v5e/v6e/v7x (halves
    # activation HBM/VMEM traffic, full-rate MXU inputs); kept f32 here so the strict
    # 1e-3 check against the f32 reference passes.
    x_in = x.astype(compute_dtype)
    w_in = w_taps.astype(compute_dtype)

    # Output-row tiling: bounds per-step VMEM and provides >= 2 parallel grid units.
    row_tile = 8 if (H_out % 8 == 0) else H_out
    n_row_tiles = H_out // row_tile
    rows_in = (row_tile - 1) * s + k

    kernel = functools.partial(
        _conv_bn_lrelu_kernel, H=H, W=W, W1=W1, k=k, stride=s,
        row_tile=row_tile, pad=p, neg_slope=negative_slope)

    bpe = jnp.dtype(compute_dtype).itemsize
    est_bytes = (2 * Cin * H * W * bpe           # raw image block (double-buffered)
                 + k * k * Cout * Cin * bpe      # folded weights
                 + Cin * rows_in * W_pad * bpe   # in-kernel pad slab scratch
                 + 4 * (Cout                     # shift
                        + 2 * Cout * row_tile * W1   # output block (double-buffered)
                        + 2 * Cout * W1))            # accumulator / epilogue temps
    # 36 MiB clamp: leaves headroom on v7x (64 MiB physical VMEM); fine on v5e/v6e.
    vmem_limit = int(min(max(4 * est_bytes, 16 * 1024 * 1024), 36 * 1024 * 1024))

    cost = pl.CostEstimate(
        flops=2 * N * Cout * Cin * k * k * H_out * W1,
        transcendentals=0,
        bytes_accessed=(x_in.size * bpe + w_in.size * bpe + shift.size * 4
                        + N * Cout * H_out * W1 * 4))

    out = pl.pallas_call(
        kernel,
        out_shape=jax.ShapeDtypeStruct((N, Cout, H_out, W1), jnp.float32),
        grid=(N, n_row_tiles),
        in_specs=[
            # Whole raw image per (n); block index is constant across the row-tile
            # axis, so it is DMA'd from HBM only once per image.
            pl.BlockSpec((None, Cin, H, W), lambda n, r: (n, 0, 0, 0)),
            pl.BlockSpec((k * k, Cout, Cin), lambda n, r: (0, 0, 0)),
            pl.BlockSpec((Cout, 1), lambda n, r: (0, 0)),
        ],
        out_specs=pl.BlockSpec((None, Cout, row_tile, W1),
                               lambda n, r: (n, 0, r, 0)),
        scratch_shapes=[pltpu.VMEM((Cin, rows_in, W_pad), compute_dtype)],
        compiler_params=pltpu.CompilerParams(
            dimension_semantics=("parallel", "parallel"),
            vmem_limit_bytes=vmem_limit),
        cost_estimate=cost,
    )(x_in, w_in, shift)

    if s != 1:
        # TODO(synk): W-direction stride is applied by subsampling the in-kernel
        # stride-1 rows (H-direction stride is exact in-kernel); a strided in-kernel
        # column store would remove this last wrapper pass and ~stride x W overcompute.
        out = out[:, :, :, ::s]
    return out


# ------------------------------ pure-JAX reference -------------------------- #

def _reference(x, weight, gamma, beta, mean, var, *,
               stride=1, padding=1, eps=1e-5, negative_slope=0.1):
    dn = ("NCHW", "OIHW", "NCHW")
    y = lax.conv_general_dilated(
        x, weight, (stride, stride), [(padding, padding), (padding, padding)],
        dimension_numbers=dn, precision=lax.Precision.HIGHEST)
    rs = lambda a: a.reshape(1, -1, 1, 1)
    y = (y - rs(mean)) / jnp.sqrt(rs(var) + eps) * rs(gamma) + rs(beta)
    return jnp.where(y >= 0, y, negative_slope * y)


# ---------------------------------- main ------------------------------------ #

if __name__ == "__main__":
    N, Cin, H, W = 2, 4, 16, 16
    filters, kernels, stride, padding = 8, 3, 1, 1

    key = jax.random.PRNGKey(0)
    ks = jax.random.split(key, 6)
    x = jax.random.normal(ks[0], (N, Cin, H, W), jnp.float32)
    weight = jax.random.normal(ks[1], (filters, Cin, kernels, kernels), jnp.float32) * 0.3
    gamma = 1.0 + 0.1 * jax.random.normal(ks[2], (filters,), jnp.float32)
    beta = 0.1 * jax.random.normal(ks[3], (filters,), jnp.float32)
    rmean = 0.1 * jax.random.normal(ks[4], (filters,), jnp.float32)
    rvar = 0.5 + jnp.abs(jax.random.normal(ks[5], (filters,), jnp.float32))

    out = conv2d_unit_forward(x, weight, gamma, beta, rmean, rvar,
                              stride=stride, padding=padding)
    out = jax.block_until_ready(out)

    ref = _reference(x, weight, gamma, beta, rmean, rvar,
                     stride=stride, padding=padding)
    assert out.shape == ref.shape == (N, filters, H, W), (out.shape, ref.shape)
    max_err = float(jnp.max(jnp.abs(out - ref)))
    assert jnp.allclose(out, ref, rtol=1e-3, atol=1e-3), max_err

    print("KERNEL_OK")
</pallas_src>

<mosaic_0001>
module attributes {stable_mosaic.version = 11 : i64} {
  func.func @_conv_bn_lrelu_kernel(%arg0: i32, %arg1: i32, %arg2: memref<1x4x16x16xf32, #tpu.memory_space<vmem>>, %arg3: memref<9x8x4xf32, #tpu.memory_space<vmem>>, %arg4: memref<8x1xf32, #tpu.memory_space<vmem>>, %arg5: memref<1x8x8x16xf32, #tpu.memory_space<vmem>>, %arg6: memref<4x10x18xf32, #tpu.memory_space<vmem>>) attributes {dimension_semantics = [#tpu.dimension_semantics<parallel>, #tpu.dimension_semantics<parallel>], iteration_bounds = array<i64: 2, 2>, scalar_prefetch = 0 : i64, scratch_operands = 1 : i64, tpu.core_type = #tpu.core_type<tc>, window_params = [{transform_indices = @transform_0, window_bounds = array<i64: 1, 4, 16, 16>}, {pipeline_mode = #tpu.pipeline_mode<synchronous>, transform_indices = @transform_1, window_bounds = array<i64: 9, 8, 4>}, {pipeline_mode = #tpu.pipeline_mode<synchronous>, transform_indices = @transform_2, window_bounds = array<i64: 8, 1>}, {transform_indices = @transform_3, window_bounds = array<i64: 1, 8, 8, 16>}]} {
    %c8_i32 = arith.constant 8 : i32
    %0 = arith.muli %arg1, %c8_i32 : i32
    %c1_i32 = arith.constant 1 : i32
    %1 = arith.muli %0, %c1_i32 : i32
    %cst = arith.constant 0.000000e+00 : f32
    %2 = vector.broadcast %cst : f32 to vector<4x10x18xf32>
    %c0 = arith.constant 0 : index
    %c0_0 = arith.constant 0 : index
    %c0_1 = arith.constant 0 : index
    %3 = vector.load %arg6[%c0, %c0_0, %c0_1] : memref<4x10x18xf32, #tpu.memory_space<vmem>>, vector<4x10x18xf32>
    tpu.vector_store %arg6[%c0, %c0_0, %c0_1], %2 {strides = array<i32>} : memref<4x10x18xf32, #tpu.memory_space<vmem>>, vector<4x10x18xf32>,
    %c0_i32 = arith.constant 0 : i32
    %4 = arith.addi %1, %c0_i32 : i32
    %c1_i32_2 = arith.constant 1 : i32
    %5 = arith.cmpi sge, %4, %c1_i32_2 : i32
    %c17_i32 = arith.constant 17 : i32
    %6 = arith.cmpi slt, %4, %c17_i32 : i32
    %7 = arith.andi %5, %6 : i1
    %8 = arith.extui %7 : i1 to i32
    %c0_i32_3 = arith.constant 0 : i32
    %9 = arith.cmpi ne, %8, %c0_i32_3 : i32
    scf.if %9 {
      %c1_i32_586 = arith.constant 1 : i32
      %585 = arith.subi %4, %c1_i32_586 : i32
      %c0_587 = arith.constant 0 : index
      %c0_588 = arith.constant 0 : index
      %586 = arith.index_cast %585 : i32 to index
      %c0_589 = arith.constant 0 : index
      %587 = vector.load %arg2[%c0_587, %c0_588, %586, %c0_589] : memref<1x4x16x16xf32, #tpu.memory_space<vmem>>, vector<1x4x1x16xf32>
      %588 = vector.shape_cast %587 : vector<1x4x1x16xf32> to vector<4x1x16xf32>
      %c0_590 = arith.constant 0 : index
      %c0_591 = arith.constant 0 : index
      %c1_592 = arith.constant 1 : index
      %589 = vector.load %arg6[%c0_590, %c0_591, %c1_592] : memref<4x10x18xf32, #tpu.memory_space<vmem>>, vector<4x1x16xf32>
      tpu.vector_store %arg6[%c0_590, %c0_591, %c1_592], %588 {strides = array<i32>} : memref<4x10x18xf32, #tpu.memory_space<vmem>>, vector<4x1x16xf32>,
    } else {
    }
    %c1_i32_4 = arith.constant 1 : i32
    %10 = arith.addi %1, %c1_i32_4 : i32
    %c1_i32_5 = arith.constant 1 : i32
    %11 = arith.cmpi sge, %10, %c1_i32_5 : i32
    %c17_i32_6 = arith.constant 17 : i32
    %12 = arith.cmpi slt, %10, %c17_i32_6 : i32
    %13 = arith.andi %11, %12 : i1
    %14 = arith.extui %13 : i1 to i32
    %c0_i32_7 = arith.constant 0 : i32
    %15 = arith.cmpi ne, %14, %c0_i32_7 : i32
    scf.if %15 {
      %c1_i32_586 = arith.constant 1 : i32
      %585 = arith.subi %10, %c1_i32_586 : i32
      %c0_587 = arith.constant 0 : index
      %c0_588 = arith.constant 0 : index
      %586 = arith.index_cast %585 : i32 to index
      %c0_589 = arith.constant 0 : index
      %587 = vector.load %arg2[%c0_587, %c0_588, %586, %c0_589] : memref<1x4x16x16xf32, #tpu.memory_space<vmem>>, vector<1x4x1x16xf32>
      %588 = vector.shape_cast %587 : vector<1x4x1x16xf32> to vector<4x1x16xf32>
      %c0_590 = arith.constant 0 : index
      %c1_591 = arith.constant 1 : index
      %c1_592 = arith.constant 1 : index
      %589 = vector.load %arg6[%c0_590, %c1_591, %c1_592] : memref<4x10x18xf32, #tpu.memory_space<vmem>>, vector<4x1x16xf32>
      tpu.vector_store %arg6[%c0_590, %c1_591, %c1_592], %588 {strides = array<i32>} : memref<4x10x18xf32, #tpu.memory_space<vmem>>, vector<4x1x16xf32>,
    } else {
    }
    %c2_i32 = arith.constant 2 : i32
    %16 = arith.addi %1, %c2_i32 : i32
    %c1_i32_8 = arith.constant 1 : i32
    %17 = arith.cmpi sge, %16, %c1_i32_8 : i32
    %c17_i32_9 = arith.constant 17 : i32
    %18 = arith.cmpi slt, %16, %c17_i32_9 : i32
    %19 = arith.andi %17, %18 : i1
    %20 = arith.extui %19 : i1 to i32
    %c0_i32_10 = arith.constant 0 : i32
    %21 = arith.cmpi ne, %20, %c0_i32_10 : i32
    scf.if %21 {
      %c1_i32_586 = arith.constant 1 : i32
      %585 = arith.subi %16, %c1_i32_586 : i32
      %c0_587 = arith.constant 0 : index
      %c0_588 = arith.constant 0 : index
      %586 = arith.index_cast %585 : i32 to index
      %c0_589 = arith.constant 0 : index
      %587 = vector.load %arg2[%c0_587, %c0_588, %586, %c0_589] : memref<1x4x16x16xf32, #tpu.memory_space<vmem>>, vector<1x4x1x16xf32>
      %588 = vector.shape_cast %587 : vector<1x4x1x16xf32> to vector<4x1x16xf32>
      %c0_590 = arith.constant 0 : index
      %c2_591 = arith.constant 2 : index
      %c1_592 = arith.constant 1 : index
      %589 = vector.load %arg6[%c0_590, %c2_591, %c1_592] : memref<4x10x18xf32, #tpu.memory_space<vmem>>, vector<4x1x16xf32>
      tpu.vector_store %arg6[%c0_590, %c2_591, %c1_592], %588 {strides = array<i32>} : memref<4x10x18xf32, #tpu.memory_space<vmem>>, vector<4x1x16xf32>,
    } else {
    }
    %c3_i32 = arith.constant 3 : i32
    %22 = arith.addi %1, %c3_i32 : i32
    %c1_i32_11 = arith.constant 1 : i32
    %23 = arith.cmpi sge, %22, %c1_i32_11 : i32
    %c17_i32_12 = arith.constant 17 : i32
    %24 = arith.cmpi slt, %22, %c17_i32_12 : i32
    %25 = arith.andi %23, %24 : i1
    %26 = arith.extui %25 : i1 to i32
    %c0_i32_13 = arith.constant 0 : i32
    %27 = arith.cmpi ne, %26, %c0_i32_13 : i32
    scf.if %27 {
      %c1_i32_586 = arith.constant 1 : i32
      %585 = arith.subi %22, %c1_i32_586 : i32
      %c0_587 = arith.constant 0 : index
      %c0_588 = arith.constant 0 : index
      %586 = arith.index_cast %585 : i32 to index
      %c0_589 = arith.constant 0 : index
      %587 = vector.load %arg2[%c0_587, %c0_588, %586, %c0_589] : memref<1x4x16x16xf32, #tpu.memory_space<vmem>>, vector<1x4x1x16xf32>
      %588 = vector.shape_cast %587 : vector<1x4x1x16xf32> to vector<4x1x16xf32>
      %c0_590 = arith.constant 0 : index
      %c3_591 = arith.constant 3 : index
      %c1_592 = arith.constant 1 : index
      %589 = vector.load %arg6[%c0_590, %c3_591, %c1_592] : memref<4x10x18xf32, #tpu.memory_space<vmem>>, vector<4x1x16xf32>
      tpu.vector_store %arg6[%c0_590, %c3_591, %c1_592], %588 {strides = array<i32>} : memref<4x10x18xf32, #tpu.memory_space<vmem>>, vector<4x1x16xf32>,
    } else {
    }
    %c4_i32 = arith.constant 4 : i32
    %28 = arith.addi %1, %c4_i32 : i32
    %c1_i32_14 = arith.constant 1 : i32
    %29 = arith.cmpi sge, %28, %c1_i32_14 : i32
    %c17_i32_15 = arith.constant 17 : i32
    %30 = arith.cmpi slt, %28, %c17_i32_15 : i32
    %31 = arith.andi %29, %30 : i1
    %32 = arith.extui %31 : i1 to i32
    %c0_i32_16 = arith.constant 0 : i32
    %33 = arith.cmpi ne, %32, %c0_i32_16 : i32
    scf.if %33 {
      %c1_i32_586 = arith.constant 1 : i32
      %585 = arith.subi %28, %c1_i32_586 : i32
      %c0_587 = arith.constant 0 : index
      %c0_588 = arith.constant 0 : index
      %586 = arith.index_cast %585 : i32 to index
      %c0_589 = arith.constant 0 : index
      %587 = vector.load %arg2[%c0_587, %c0_588, %586, %c0_589] : memref<1x4x16x16xf32, #tpu.memory_space<vmem>>, vector<1x4x1x16xf32>
      %588 = vector.shape_cast %587 : vector<1x4x1x16xf32> to vector<4x1x16xf32>
      %c0_590 = arith.constant 0 : index
      %c4_591 = arith.constant 4 : index
      %c1_592 = arith.constant 1 : index
      %589 = vector.load %arg6[%c0_590, %c4_591, %c1_592] : memref<4x10x18xf32, #tpu.memory_space<vmem>>, vector<4x1x16xf32>
      tpu.vector_store %arg6[%c0_590, %c4_591, %c1_592], %588 {strides = array<i32>} : memref<4x10x18xf32, #tpu.memory_space<vmem>>, vector<4x1x16xf32>,
    } else {
    }
    %c5_i32 = arith.constant 5 : i32
    %34 = arith.addi %1, %c5_i32 : i32
    %c1_i32_17 = arith.constant 1 : i32
    %35 = arith.cmpi sge, %34, %c1_i32_17 : i32
    %c17_i32_18 = arith.constant 17 : i32
    %36 = arith.cmpi slt, %34, %c17_i32_18 : i32
    %37 = arith.andi %35, %36 : i1
    %38 = arith.extui %37 : i1 to i32
    %c0_i32_19 = arith.constant 0 : i32
    %39 = arith.cmpi ne, %38, %c0_i32_19 : i32
    scf.if %39 {
      %c1_i32_586 = arith.constant 1 : i32
      %585 = arith.subi %34, %c1_i32_586 : i32
      %c0_587 = arith.constant 0 : index
      %c0_588 = arith.constant 0 : index
      %586 = arith.index_cast %585 : i32 to index
      %c0_589 = arith.constant 0 : index
      %587 = vector.load %arg2[%c0_587, %c0_588, %586, %c0_589] : memref<1x4x16x16xf32, #tpu.memory_space<vmem>>, vector<1x4x1x16xf32>
      %588 = vector.shape_cast %587 : vector<1x4x1x16xf32> to vector<4x1x16xf32>
      %c0_590 = arith.constant 0 : index
      %c5_591 = arith.constant 5 : index
      %c1_592 = arith.constant 1 : index
      %589 = vector.load %arg6[%c0_590, %c5_591, %c1_592] : memref<4x10x18xf32, #tpu.memory_space<vmem>>, vector<4x1x16xf32>
      tpu.vector_store %arg6[%c0_590, %c5_591, %c1_592], %588 {strides = array<i32>} : memref<4x10x18xf32, #tpu.memory_space<vmem>>, vector<4x1x16xf32>,
    } else {
    }
    %c6_i32 = arith.constant 6 : i32
    %40 = arith.addi %1, %c6_i32 : i32
    %c1_i32_20 = arith.constant 1 : i32
    %41 = arith.cmpi sge, %40, %c1_i32_20 : i32
    %c17_i32_21 = arith.constant 17 : i32
    %42 = arith.cmpi slt, %40, %c17_i32_21 : i32
    %43 = arith.andi %41, %42 : i1
    %44 = arith.extui %43 : i1 to i32
    %c0_i32_22 = arith.constant 0 : i32
    %45 = arith.cmpi ne, %44, %c0_i32_22 : i32
    scf.if %45 {
      %c1_i32_586 = arith.constant 1 : i32
      %585 = arith.subi %40, %c1_i32_586 : i32
      %c0_587 = arith.constant 0 : index
      %c0_588 = arith.constant 0 : index
      %586 = arith.index_cast %585 : i32 to index
      %c0_589 = arith.constant 0 : index
      %587 = vector.load %arg2[%c0_587, %c0_588, %586, %c0_589] : memref<1x4x16x16xf32, #tpu.memory_space<vmem>>, vector<1x4x1x16xf32>
      %588 = vector.shape_cast %587 : vector<1x4x1x16xf32> to vector<4x1x16xf32>
      %c0_590 = arith.constant 0 : index
      %c6_591 = arith.constant 6 : index
      %c1_592 = arith.constant 1 : index
      %589 = vector.load %arg6[%c0_590, %c6_591, %c1_592] : memref<4x10x18xf32, #tpu.memory_space<vmem>>, vector<4x1x16xf32>
      tpu.vector_store %arg6[%c0_590, %c6_591, %c1_592], %588 {strides = array<i32>} : memref<4x10x18xf32, #tpu.memory_space<vmem>>, vector<4x1x16xf32>,
    } else {
    }
    %c7_i32 = arith.constant 7 : i32
    %46 = arith.addi %1, %c7_i32 : i32
    %c1_i32_23 = arith.constant 1 : i32
    %47 = arith.cmpi sge, %46, %c1_i32_23 : i32
    %c17_i32_24 = arith.constant 17 : i32
    %48 = arith.cmpi slt, %46, %c17_i32_24 : i32
    %49 = arith.andi %47, %48 : i1
    %50 = arith.extui %49 : i1 to i32
    %c0_i32_25 = arith.constant 0 : i32
    %51 = arith.cmpi ne, %50, %c0_i32_25 : i32
    scf.if %51 {
      %c1_i32_586 = arith.constant 1 : i32
      %585 = arith.subi %46, %c1_i32_586 : i32
      %c0_587 = arith.constant 0 : index
      %c0_588 = arith.constant 0 : index
      %586 = arith.index_cast %585 : i32 to index
      %c0_589 = arith.constant 0 : index
      %587 = vector.load %arg2[%c0_587, %c0_588, %586, %c0_589] : memref<1x4x16x16xf32, #tpu.memory_space<vmem>>, vector<1x4x1x16xf32>
      %588 = vector.shape_cast %587 : vector<1x4x1x16xf32> to vector<4x1x16xf32>
      %c0_590 = arith.constant 0 : index
      %c7_591 = arith.constant 7 : index
      %c1_592 = arith.constant 1 : index
      %589 = vector.load %arg6[%c0_590, %c7_591, %c1_592] : memref<4x10x18xf32, #tpu.memory_space<vmem>>, vector<4x1x16xf32>
      tpu.vector_store %arg6[%c0_590, %c7_591, %c1_592], %588 {strides = array<i32>} : memref<4x10x18xf32, #tpu.memory_space<vmem>>, vector<4x1x16xf32>,
    } else {
    }
    %c8_i32_26 = arith.constant 8 : i32
    %52 = arith.addi %1, %c8_i32_26 : i32
    %c1_i32_27 = arith.constant 1 : i32
    %53 = arith.cmpi sge, %52, %c1_i32_27 : i32
    %c17_i32_28 = arith.constant 17 : i32
    %54 = arith.cmpi slt, %52, %c17_i32_28 : i32
    %55 = arith.andi %53, %54 : i1
    %56 = arith.extui %55 : i1 to i32
    %c0_i32_29 = arith.constant 0 : i32
    %57 = arith.cmpi ne, %56, %c0_i32_29 : i32
    scf.if %57 {
      %c1_i32_586 = arith.constant 1 : i32
      %585 = arith.subi %52, %c1_i32_586 : i32
      %c0_587 = arith.constant 0 : index
      %c0_588 = arith.constant 0 : index
      %586 = arith.index_cast %585 : i32 to index
      %c0_589 = arith.constant 0 : index
      %587 = vector.load %arg2[%c0_587, %c0_588, %586, %c0_589] : memref<1x4x16x16xf32, #tpu.memory_space<vmem>>, vector<1x4x1x16xf32>
      %588 = vector.shape_cast %587 : vector<1x4x1x16xf32> to vector<4x1x16xf32>
      %c0_590 = arith.constant 0 : index
      %c8_591 = arith.constant 8 : index
      %c1_592 = arith.constant 1 : index
      %589 = vector.load %arg6[%c0_590, %c8_591, %c1_592] : memref<4x10x18xf32, #tpu.memory_space<vmem>>, vector<4x1x16xf32>
      tpu.vector_store %arg6[%c0_590, %c8_591, %c1_592], %588 {strides = array<i32>} : memref<4x10x18xf32, #tpu.memory_space<vmem>>, vector<4x1x16xf32>,
    } else {
    }
    %c9_i32 = arith.constant 9 : i32
    %58 = arith.addi %1, %c9_i32 : i32
    %c1_i32_30 = arith.constant 1 : i32
    %59 = arith.cmpi sge, %58, %c1_i32_30 : i32
    %c17_i32_31 = arith.constant 17 : i32
    %60 = arith.cmpi slt, %58, %c17_i32_31 : i32
    %61 = arith.andi %59, %60 : i1
    %62 = arith.extui %61 : i1 to i32
    %c0_i32_32 = arith.constant 0 : i32
    %63 = arith.cmpi ne, %62, %c0_i32_32 : i32
    scf.if %63 {
      %c1_i32_586 = arith.constant 1 : i32
      %585 = arith.subi %58, %c1_i32_586 : i32
      %c0_587 = arith.constant 0 : index
      %c0_588 = arith.constant 0 : index
      %586 = arith.index_cast %585 : i32 to index
      %c0_589 = arith.constant 0 : index
      %587 = vector.load %arg2[%c0_587, %c0_588, %586, %c0_589] : memref<1x4x16x16xf32, #tpu.memory_space<vmem>>, vector<1x4x1x16xf32>
      %588 = vector.shape_cast %587 : vector<1x4x1x16xf32> to vector<4x1x16xf32>
      %c0_590 = arith.constant 0 : index
      %c9_591 = arith.constant 9 : index
      %c1_592 = arith.constant 1 : index
      %589 = vector.load %arg6[%c0_590, %c9_591, %c1_592] : memref<4x10x18xf32, #tpu.memory_space<vmem>>, vector<4x1x16xf32>
      tpu.vector_store %arg6[%c0_590, %c9_591, %c1_592], %588 {strides = array<i32>} : memref<4x10x18xf32, #tpu.memory_space<vmem>>, vector<4x1x16xf32>,
    } else {
    }
    %c0_33 = arith.constant 0 : index
    %c0_34 = arith.constant 0 : index
    %64 = vector.load %arg4[%c0_33, %c0_34] : memref<8x1xf32, #tpu.memory_space<vmem>>, vector<8x1xf32>
    %cst_35 = arith.constant 0.000000e+00 : f32
    %65 = vector.broadcast %cst_35 : f32 to vector<8x16xf32>
    %c0_36 = arith.constant 0 : index
    %c0_37 = arith.constant 0 : index
    %c0_38 = arith.constant 0 : index
    %66 = vector.load %arg3[%c0_36, %c0_37, %c0_38] : memref<9x8x4xf32, #tpu.memory_space<vmem>>, vector<1x8x4xf32>
    %67 = vector.shape_cast %66 : vector<1x8x4xf32> to vector<8x4xf32>
    %c0_39 = arith.constant 0 : index
    %c0_40 = arith.constant 0 : index
    %c0_41 = arith.constant 0 : index
    %68 = vector.load %arg6[%c0_39, %c0_40, %c0_41] : memref<4x10x18xf32, #tpu.memory_space<vmem>>, vector<4x1x16xf32>
    %69 = vector.shape_cast %68 : vector<4x1x16xf32> to vector<4x16xf32>
    %cst_42 = arith.constant dense<0.000000e+00> : vector<8x16xf32>
    %70 = tpu.matmul %67, %69, %cst_42 {dimension_numbers = #tpu.dot_dimension_numbers<[1], [0], [0], [1], [0, 0, 1, 1], [], []>} : vector<8x4xf32>, vector<4x16xf32>, vector<8x16xf32> -> vector<8x16xf32>
    %71 = arith.addf %65, %70 : vector<8x16xf32>
    %c1 = arith.constant 1 : index
    %c0_43 = arith.constant 0 : index
    %c0_44 = arith.constant 0 : index
    %72 = vector.load %arg3[%c1, %c0_43, %c0_44] : memref<9x8x4xf32, #tpu.memory_space<vmem>>, vector<1x8x4xf32>
    %73 = vector.shape_cast %72 : vector<1x8x4xf32> to vector<8x4xf32>
    %c0_45 = arith.constant 0 : index
    %c0_46 = arith.constant 0 : index
    %c1_47 = arith.constant 1 : index
    %74 = vector.load %arg6[%c0_45, %c0_46, %c1_47] : memref<4x10x18xf32, #tpu.memory_space<vmem>>, vector<4x1x16xf32>
    %75 = vector.shape_cast %74 : vector<4x1x16xf32> to vector<4x16xf32>
    %cst_48 = arith.constant dense<0.000000e+00> : vector<8x16xf32>
    %76 = tpu.matmul %73, %75, %cst_48 {dimension_numbers = #tpu.dot_dimension_numbers<[1], [0], [0], [1], [0, 0, 1, 1], [], []>} : vector<8x4xf32>, vector<4x16xf32>, vector<8x16xf32> -> vector<8x16xf32>
    %77 = arith.addf %71, %76 : vector<8x16xf32>
    %c2 = arith.constant 2 : index
    %c0_49 = arith.constant 0 : index
    %c0_50 = arith.constant 0 : index
    %78 = vector.load %arg3[%c2, %c0_49, %c0_50] : memref<9x8x4xf32, #tpu.memory_space<vmem>>, vector<1x8x4xf32>
    %79 = vector.shape_cast %78 : vector<1x8x4xf32> to vector<8x4xf32>
    %c0_51 = arith.constant 0 : index
    %c0_52 = arith.constant 0 : index
    %c2_53 = arith.constant 2 : index
    %80 = vector.load %arg6[%c0_51, %c0_52, %c2_53] : memref<4x10x18xf32, #tpu.memory_space<vmem>>, vector<4x1x16xf32>
    %81 = vector.shape_cast %80 : vector<4x1x16xf32> to vector<4x16xf32>
    %cst_54 = arith.constant dense<0.000000e+00> : vector<8x16xf32>
    %82 = tpu.matmul %79, %81, %cst_54 {dimension_numbers = #tpu.dot_dimension_numbers<[1], [0], [0], [1], [0, 0, 1, 1], [], []>} : vector<8x4xf32>, vector<4x16xf32>, vector<8x16xf32> -> vector<8x16xf32>
    %83 = arith.addf %77, %82 : vector<8x16xf32>
    %c3 = arith.constant 3 : index
    %c0_55 = arith.constant 0 : index
    %c0_56 = arith.constant 0 : index
    %84 = vector.load %arg3[%c3, %c0_55, %c0_56] : memref<9x8x4xf32, #tpu.memory_space<vmem>>, vector<1x8x4xf32>
    %85 = vector.shape_cast %84 : vector<1x8x4xf32> to vector<8x4xf32>
    %c0_57 = arith.constant 0 : index
    %c1_58 = arith.constant 1 : index
    %c0_59 = arith.constant 0 : index
    %86 = vector.load %arg6[%c0_57, %c1_58, %c0_59] : memref<4x10x18xf32, #tpu.memory_space<vmem>>, vector<4x1x16xf32>
    %87 = vector.shape_cast %86 : vector<4x1x16xf32> to vector<4x16xf32>
    %cst_60 = arith.constant dense<0.000000e+00> : vector<8x16xf32>
    %88 = tpu.matmul %85, %87, %cst_60 {dimension_numbers = #tpu.dot_dimension_numbers<[1], [0], [0], [1], [0, 0, 1, 1], [], []>} : vector<8x4xf32>, vector<4x16xf32>, vector<8x16xf32> -> vector<8x16xf32>
    %89 = arith.addf %83, %88 : vector<8x16xf32>
    %c4 = arith.constant 4 : index
    %c0_61 = arith.constant 0 : index
    %c0_62 = arith.constant 0 : index
    %90 = vector.load %arg3[%c4, %c0_61, %c0_62] : memref<9x8x4xf32, #tpu.memory_space<vmem>>, vector<1x8x4xf32>
    %91 = vector.shape_cast %90 : vector<1x8x4xf32> to vector<8x4xf32>
    %c0_63 = arith.constant 0 : index
    %c1_64 = arith.constant 1 : index
    %c1_65 = arith.constant 1 : index
    %92 = vector.load %arg6[%c0_63, %c1_64, %c1_65] : memref<4x10x18xf32, #tpu.memory_space<vmem>>, vector<4x1x16xf32>
    %93 = vector.shape_cast %92 : vector<4x1x16xf32> to vector<4x16xf32>
    %cst_66 = arith.constant dense<0.000000e+00> : vector<8x16xf32>
    %94 = tpu.matmul %91, %93, %cst_66 {dimension_numbers = #tpu.dot_dimension_numbers<[1], [0], [0], [1], [0, 0, 1, 1], [], []>} : vector<8x4xf32>, vector<4x16xf32>, vector<8x16xf32> -> vector<8x16xf32>
    %95 = arith.addf %89, %94 : vector<8x16xf32>
    %c5 = arith.constant 5 : index
    %c0_67 = arith.constant 0 : index
    %c0_68 = arith.constant 0 : index
    %96 = vector.load %arg3[%c5, %c0_67, %c0_68] : memref<9x8x4xf32, #tpu.memory_space<vmem>>, vector<1x8x4xf32>
    %97 = vector.shape_cast %96 : vector<1x8x4xf32> to vector<8x4xf32>
    %c0_69 = arith.constant 0 : index
    %c1_70 = arith.constant 1 : index
    %c2_71 = arith.constant 2 : index
    %98 = vector.load %arg6[%c0_69, %c1_70, %c2_71] : memref<4x10x18xf32, #tpu.memory_space<vmem>>, vector<4x1x16xf32>
    %99 = vector.shape_cast %98 : vector<4x1x16xf32> to vector<4x16xf32>
    %cst_72 = arith.constant dense<0.000000e+00> : vector<8x16xf32>
    %100 = tpu.matmul %97, %99, %cst_72 {dimension_numbers = #tpu.dot_dimension_numbers<[1], [0], [0], [1], [0, 0, 1, 1], [], []>} : vector<8x4xf32>, vector<4x16xf32>, vector<8x16xf32> -> vector<8x16xf32>
    %101 = arith.addf %95, %100 : vector<8x16xf32>
    %c6 = arith.constant 6 : index
    %c0_73 = arith.constant 0 : index
    %c0_74 = arith.constant 0 : index
    %102 = vector.load %arg3[%c6, %c0_73, %c0_74] : memref<9x8x4xf32, #tpu.memory_space<vmem>>, vector<1x8x4xf32>
    %103 = vector.shape_cast %102 : vector<1x8x4xf32> to vector<8x4xf32>
    %c0_75 = arith.constant 0 : index
    %c2_76 = arith.constant 2 : index
    %c0_77 = arith.constant 0 : index
    %104 = vector.load %arg6[%c0_75, %c2_76, %c0_77] : memref<4x10x18xf32, #tpu.memory_space<vmem>>, vector<4x1x16xf32>
    %105 = vector.shape_cast %104 : vector<4x1x16xf32> to vector<4x16xf32>
    %cst_78 = arith.constant dense<0.000000e+00> : vector<8x16xf32>
    %106 = tpu.matmul %103, %105, %cst_78 {dimension_numbers = #tpu.dot_dimension_numbers<[1], [0], [0], [1], [0, 0, 1, 1], [], []>} : vector<8x4xf32>, vector<4x16xf32>, vector<8x16xf32> -> vector<8x16xf32>
    %107 = arith.addf %101, %106 : vector<8x16xf32>
    %c7 = arith.constant 7 : index
    %c0_79 = arith.constant 0 : index
    %c0_80 = arith.constant 0 : index
    %108 = vector.load %arg3[%c7, %c0_79, %c0_80] : memref<9x8x4xf32, #tpu.memory_space<vmem>>, vector<1x8x4xf32>
    %109 = vector.shape_cast %108 : vector<1x8x4xf32> to vector<8x4xf32>
    %c0_81 = arith.constant 0 : index
    %c2_82 = arith.constant 2 : index
    %c1_83 = arith.constant 1 : index
    %110 = vector.load %arg6[%c0_81, %c2_82, %c1_83] : memref<4x10x18xf32, #tpu.memory_space<vmem>>, vector<4x1x16xf32>
    %111 = vector.shape_cast %110 : vector<4x1x16xf32> to vector<4x16xf32>
    %cst_84 = arith.constant dense<0.000000e+00> : vector<8x16xf32>
    %112 = tpu.matmul %109, %111, %cst_84 {dimension_numbers = #tpu.dot_dimension_numbers<[1], [0], [0], [1], [0, 0, 1, 1], [], []>} : vector<8x4xf32>, vector<4x16xf32>, vector<8x16xf32> -> vector<8x16xf32>
    %113 = arith.addf %107, %112 : vector<8x16xf32>
    %c8 = arith.constant 8 : index
    %c0_85 = arith.constant 0 : index
    %c0_86 = arith.constant 0 : index
    %114 = vector.load %arg3[%c8, %c0_85, %c0_86] : memref<9x8x4xf32, #tpu.memory_space<vmem>>, vector<1x8x4xf32>
    %115 = vector.shape_cast %114 : vector<1x8x4xf32> to vector<8x4xf32>
    %c0_87 = arith.constant 0 : index
    %c2_88 = arith.constant 2 : index
    %c2_89 = arith.constant 2 : index
    %116 = vector.load %arg6[%c0_87, %c2_88, %c2_89] : memref<4x10x18xf32, #tpu.memory_space<vmem>>, vector<4x1x16xf32>
    %117 = vector.shape_cast %116 : vector<4x1x16xf32> to vector<4x16xf32>
    %cst_90 = arith.constant dense<0.000000e+00> : vector<8x16xf32>
    %118 = tpu.matmul %115, %117, %cst_90 {dimension_numbers = #tpu.dot_dimension_numbers<[1], [0], [0], [1], [0, 0, 1, 1], [], []>} : vector<8x4xf32>, vector<4x16xf32>, vector<8x16xf32> -> vector<8x16xf32>
    %119 = arith.addf %113, %118 : vector<8x16xf32>
    %120 = vector.broadcast %64 : vector<8x1xf32> to vector<8x16xf32>
    %121 = arith.addf %119, %120 : vector<8x16xf32>
    %cst_91 = arith.constant 0.000000e+00 : f32
    %122 = vector.broadcast %cst_91 : f32 to vector<8x16xf32>
    %123 = arith.cmpf oge, %121, %122 : vector<8x16xf32>
    %cst_92 = arith.constant 1.000000e-01 : f32
    %124 = vector.broadcast %cst_92 : f32 to vector<8x16xf32>
    %125 = arith.mulf %124, %121 : vector<8x16xf32>
    %126 = arith.select %123, %121, %125 : vector<8x16xi1>, vector<8x16xf32>
    %c0_93 = arith.constant 0 : index
    %c0_94 = arith.constant 0 : index
    %c0_95 = arith.constant 0 : index
    %c0_96 = arith.constant 0 : index
    %127 = vector.load %arg5[%c0_93, %c0_94, %c0_95, %c0_96] : memref<1x8x8x16xf32, #tpu.memory_space<vmem>>, vector<1x8x1x16xf32>
    %128 = vector.shape_cast %127 : vector<1x8x1x16xf32> to vector<8x16xf32>
    %129 = vector.shape_cast %126 : vector<8x16xf32> to vector<1x8x1x16xf32>
    tpu.vector_store %arg5[%c0_93, %c0_94, %c0_95, %c0_96], %129 {strides = array<i32>} : memref<1x8x8x16xf32, #tpu.memory_space<vmem>>, vector<1x8x1x16xf32>,
    %cst_97 = arith.constant 0.000000e+00 : f32
    %130 = vector.broadcast %cst_97 : f32 to vector<8x16xf32>
    %c0_98 = arith.constant 0 : index
    %c0_99 = arith.constant 0 : index
    %c0_100 = arith.constant 0 : index
    %131 = vector.load %arg3[%c0_98, %c0_99, %c0_100] : memref<9x8x4xf32, #tpu.memory_space<vmem>>, vector<1x8x4xf32>
    %132 = vector.shape_cast %131 : vector<1x8x4xf32> to vector<8x4xf32>
    %c0_101 = arith.constant 0 : index
    %c1_102 = arith.constant 1 : index
    %c0_103 = arith.constant 0 : index
    %133 = vector.load %arg6[%c0_101, %c1_102, %c0_103] : memref<4x10x18xf32, #tpu.memory_space<vmem>>, vector<4x1x16xf32>
    %134 = vector.shape_cast %133 : vector<4x1x16xf32> to vector<4x16xf32>
    %cst_104 = arith.constant dense<0.000000e+00> : vector<8x16xf32>
    %135 = tpu.matmul %132, %134, %cst_104 {dimension_numbers = #tpu.dot_dimension_numbers<[1], [0], [0], [1], [0, 0, 1, 1], [], []>} : vector<8x4xf32>, vector<4x16xf32>, vector<8x16xf32> -> vector<8x16xf32>
    %136 = arith.addf %130, %135 : vector<8x16xf32>
    %c1_105 = arith.constant 1 : index
    %c0_106 = arith.constant 0 : index
    %c0_107 = arith.constant 0 : index
    %137 = vector.load %arg3[%c1_105, %c0_106, %c0_107] : memref<9x8x4xf32, #tpu.memory_space<vmem>>, vector<1x8x4xf32>
    %138 = vector.shape_cast %137 : vector<1x8x4xf32> to vector<8x4xf32>
    %c0_108 = arith.constant 0 : index
    %c1_109 = arith.constant 1 : index
    %c1_110 = arith.constant 1 : index
    %139 = vector.load %arg6[%c0_108, %c1_109, %c1_110] : memref<4x10x18xf32, #tpu.memory_space<vmem>>, vector<4x1x16xf32>
    %140 = vector.shape_cast %139 : vector<4x1x16xf32> to vector<4x16xf32>
    %cst_111 = arith.constant dense<0.000000e+00> : vector<8x16xf32>
    %141 = tpu.matmul %138, %140, %cst_111 {dimension_numbers = #tpu.dot_dimension_numbers<[1], [0], [0], [1], [0, 0, 1, 1], [], []>} : vector<8x4xf32>, vector<4x16xf32>, vector<8x16xf32> -> vector<8x16xf32>
    %142 = arith.addf %136, %141 : vector<8x16xf32>
    %c2_112 = arith.constant 2 : index
    %c0_113 = arith.constant 0 : index
    %c0_114 = arith.constant 0 : index
    %143 = vector.load %arg3[%c2_112, %c0_113, %c0_114] : memref<9x8x4xf32, #tpu.memory_space<vmem>>, vector<1x8x4xf32>
    %144 = vector.shape_cast %143 : vector<1x8x4xf32> to vector<8x4xf32>
    %c0_115 = arith.constant 0 : index
    %c1_116 = arith.constant 1 : index
    %c2_117 = arith.constant 2 : index
    %145 = vector.load %arg6[%c0_115, %c1_116, %c2_117] : memref<4x10x18xf32, #tpu.memory_space<vmem>>, vector<4x1x16xf32>
    %146 = vector.shape_cast %145 : vector<4x1x16xf32> to vector<4x16xf32>
    %cst_118 = arith.constant dense<0.000000e+00> : vector<8x16xf32>
    %147 = tpu.matmul %144, %146, %cst_118 {dimension_numbers = #tpu.dot_dimension_numbers<[1], [0], [0], [1], [0, 0, 1, 1], [], []>} : vector<8x4xf32>, vector<4x16xf32>, vector<8x16xf32> -> vector<8x16xf32>
    %148 = arith.addf %142, %147 : vector<8x16xf32>
    %c3_119 = arith.constant 3 : index
    %c0_120 = arith.constant 0 : index
    %c0_121 = arith.constant 0 : index
    %149 = vector.load %arg3[%c3_119, %c0_120, %c0_121] : memref<9x8x4xf32, #tpu.memory_space<vmem>>, vector<1x8x4xf32>
    %150 = vector.shape_cast %149 : vector<1x8x4xf32> to vector<8x4xf32>
    %c0_122 = arith.constant 0 : index
    %c2_123 = arith.constant 2 : index
    %c0_124 = arith.constant 0 : index
    %151 = vector.load %arg6[%c0_122, %c2_123, %c0_124] : memref<4x10x18xf32, #tpu.memory_space<vmem>>, vector<4x1x16xf32>
    %152 = vector.shape_cast %151 : vector<4x1x16xf32> to vector<4x16xf32>
    %cst_125 = arith.constant dense<0.000000e+00> : vector<8x16xf32>
    %153 = tpu.matmul %150, %152, %cst_125 {dimension_numbers = #tpu.dot_dimension_numbers<[1], [0], [0], [1], [0, 0, 1, 1], [], []>} : vector<8x4xf32>, vector<4x16xf32>, vector<8x16xf32> -> vector<8x16xf32>
    %154 = arith.addf %148, %153 : vector<8x16xf32>
    %c4_126 = arith.constant 4 : index
    %c0_127 = arith.constant 0 : index
    %c0_128 = arith.constant 0 : index
    %155 = vector.load %arg3[%c4_126, %c0_127, %c0_128] : memref<9x8x4xf32, #tpu.memory_space<vmem>>, vector<1x8x4xf32>
    %156 = vector.shape_cast %155 : vector<1x8x4xf32> to vector<8x4xf32>
    %c0_129 = arith.constant 0 : index
    %c2_130 = arith.constant 2 : index
    %c1_131 = arith.constant 1 : index
    %157 = vector.load %arg6[%c0_129, %c2_130, %c1_131] : memref<4x10x18xf32, #tpu.memory_space<vmem>>, vector<4x1x16xf32>
    %158 = vector.shape_cast %157 : vector<4x1x16xf32> to vector<4x16xf32>
    %cst_132 = arith.constant dense<0.000000e+00> : vector<8x16xf32>
    %159 = tpu.matmul %156, %158, %cst_132 {dimension_numbers = #tpu.dot_dimension_numbers<[1], [0], [0], [1], [0, 0, 1, 1], [], []>} : vector<8x4xf32>, vector<4x16xf32>, vector<8x16xf32> -> vector<8x16xf32>
    %160 = arith.addf %154, %159 : vector<8x16xf32>
    %c5_133 = arith.constant 5 : index
    %c0_134 = arith.constant 0 : index
    %c0_135 = arith.constant 0 : index
    %161 = vector.load %arg3[%c5_133, %c0_134, %c0_135] : memref<9x8x4xf32, #tpu.memory_space<vmem>>, vector<1x8x4xf32>
    %162 = vector.shape_cast %161 : vector<1x8x4xf32> to vector<8x4xf32>
    %c0_136 = arith.constant 0 : index
    %c2_137 = arith.constant 2 : index
    %c2_138 = arith.constant 2 : index
    %163 = vector.load %arg6[%c0_136, %c2_137, %c2_138] : memref<4x10x18xf32, #tpu.memory_space<vmem>>, vector<4x1x16xf32>
    %164 = vector.shape_cast %163 : vector<4x1x16xf32> to vector<4x16xf32>
    %cst_139 = arith.constant dense<0.000000e+00> : vector<8x16xf32>
    %165 = tpu.matmul %162, %164, %cst_139 {dimension_numbers = #tpu.dot_dimension_numbers<[1], [0], [0], [1], [0, 0, 1, 1], [], []>} : vector<8x4xf32>, vector<4x16xf32>, vector<8x16xf32> -> vector<8x16xf32>
    %166 = arith.addf %160, %165 : vector<8x16xf32>
    %c6_140 = arith.constant 6 : index
    %c0_141 = arith.constant 0 : index
    %c0_142 = arith.constant 0 : index
    %167 = vector.load %arg3[%c6_140, %c0_141, %c0_142] : memref<9x8x4xf32, #tpu.memory_space<vmem>>, vector<1x8x4xf32>
    %168 = vector.shape_cast %167 : vector<1x8x4xf32> to vector<8x4xf32>
    %c0_143 = arith.constant 0 : index
    %c3_144 = arith.constant 3 : index
    %c0_145 = arith.constant 0 : index
    %169 = vector.load %arg6[%c0_143, %c3_144, %c0_145] : memref<4x10x18xf32, #tpu.memory_space<vmem>>, vector<4x1x16xf32>
    %170 = vector.shape_cast %169 : vector<4x1x16xf32> to vector<4x16xf32>
    %cst_146 = arith.constant dense<0.000000e+00> : vector<8x16xf32>
    %171 = tpu.matmul %168, %170, %cst_146 {dimension_numbers = #tpu.dot_dimension_numbers<[1], [0], [0], [1], [0, 0, 1, 1], [], []>} : vector<8x4xf32>, vector<4x16xf32>, vector<8x16xf32> -> vector<8x16xf32>
    %172 = arith.addf %166, %171 : vector<8x16xf32>
    %c7_147 = arith.constant 7 : index
    %c0_148 = arith.constant 0 : index
    %c0_149 = arith.constant 0 : index
    %173 = vector.load %arg3[%c7_147, %c0_148, %c0_149] : memref<9x8x4xf32, #tpu.memory_space<vmem>>, vector<1x8x4xf32>
    %174 = vector.shape_cast %173 : vector<1x8x4xf32> to vector<8x4xf32>
    %c0_150 = arith.constant 0 : index
    %c3_151 = arith.constant 3 : index
    %c1_152 = arith.constant 1 : index
    %175 = vector.load %arg6[%c0_150, %c3_151, %c1_152] : memref<4x10x18xf32, #tpu.memory_space<vmem>>, vector<4x1x16xf32>
    %176 = vector.shape_cast %175 : vector<4x1x16xf32> to vector<4x16xf32>
    %cst_153 = arith.constant dense<0.000000e+00> : vector<8x16xf32>
    %177 = tpu.matmul %174, %176, %cst_153 {dimension_numbers = #tpu.dot_dimension_numbers<[1], [0], [0], [1], [0, 0, 1, 1], [], []>} : vector<8x4xf32>, vector<4x16xf32>, vector<8x16xf32> -> vector<8x16xf32>
    %178 = arith.addf %172, %177 : vector<8x16xf32>
    %c8_154 = arith.constant 8 : index
    %c0_155 = arith.constant 0 : index
    %c0_156 = arith.constant 0 : index
    %179 = vector.load %arg3[%c8_154, %c0_155, %c0_156] : memref<9x8x4xf32, #tpu.memory_space<vmem>>, vector<1x8x4xf32>
    %180 = vector.shape_cast %179 : vector<1x8x4xf32> to vector<8x4xf32>
    %c0_157 = arith.constant 0 : index
    %c3_158 = arith.constant 3 : index
    %c2_159 = arith.constant 2 : index
    %181 = vector.load %arg6[%c0_157, %c3_158, %c2_159] : memref<4x10x18xf32, #tpu.memory_space<vmem>>, vector<4x1x16xf32>
    %182 = vector.shape_cast %181 : vector<4x1x16xf32> to vector<4x16xf32>
    %cst_160 = arith.constant dense<0.000000e+00> : vector<8x16xf32>
    %183 = tpu.matmul %180, %182, %cst_160 {dimension_numbers = #tpu.dot_dimension_numbers<[1], [0], [0], [1], [0, 0, 1, 1], [], []>} : vector<8x4xf32>, vector<4x16xf32>, vector<8x16xf32> -> vector<8x16xf32>
    %184 = arith.addf %178, %183 : vector<8x16xf32>
    %185 = vector.broadcast %64 : vector<8x1xf32> to vector<8x16xf32>
    %186 = arith.addf %184, %185 : vector<8x16xf32>
    %cst_161 = arith.constant 0.000000e+00 : f32
    %187 = vector.broadcast %cst_161 : f32 to vector<8x16xf32>
    %188 = arith.cmpf oge, %186, %187 : vector<8x16xf32>
    %cst_162 = arith.constant 1.000000e-01 : f32
    %189 = vector.broadcast %cst_162 : f32 to vector<8x16xf32>
    %190 = arith.mulf %189, %186 : vector<8x16xf32>
    %191 = arith.select %188, %186, %190 : vector<8x16xi1>, vector<8x16xf32>
    %c0_163 = arith.constant 0 : index
    %c0_164 = arith.constant 0 : index
    %c1_165 = arith.constant 1 : index
    %c0_166 = arith.constant 0 : index
    %192 = vector.load %arg5[%c0_163, %c0_164, %c1_165, %c0_166] : memref<1x8x8x16xf32, #tpu.memory_space<vmem>>, vector<1x8x1x16xf32>
    %193 = vector.shape_cast %192 : vector<1x8x1x16xf32> to vector<8x16xf32>
    %194 = vector.shape_cast %191 : vector<8x16xf32> to vector<1x8x1x16xf32>
    tpu.vector_store %arg5[%c0_163, %c0_164, %c1_165, %c0_166], %194 {strides = array<i32>} : memref<1x8x8x16xf32, #tpu.memory_space<vmem>>, vector<1x8x1x16xf32>,
    %cst_167 = arith.constant 0.000000e+00 : f32
    %195 = vector.broadcast %cst_167 : f32 to vector<8x16xf32>
    %c0_168 = arith.constant 0 : index
    %c0_169 = arith.constant 0 : index
    %c0_170 = arith.constant 0 : index
    %196 = vector.load %arg3[%c0_168, %c0_169, %c0_170] : memref<9x8x4xf32, #tpu.memory_space<vmem>>, vector<1x8x4xf32>
    %197 = vector.shape_cast %196 : vector<1x8x4xf32> to vector<8x4xf32>
    %c0_171 = arith.constant 0 : index
    %c2_172 = arith.constant 2 : index
    %c0_173 = arith.constant 0 : index
    %198 = vector.load %arg6[%c0_171, %c2_172, %c0_173] : memref<4x10x18xf32, #tpu.memory_space<vmem>>, vector<4x1x16xf32>
    %199 = vector.shape_cast %198 : vector<4x1x16xf32> to vector<4x16xf32>
    %cst_174 = arith.constant dense<0.000000e+00> : vector<8x16xf32>
    %200 = tpu.matmul %197, %199, %cst_174 {dimension_numbers = #tpu.dot_dimension_numbers<[1], [0], [0], [1], [0, 0, 1, 1], [], []>} : vector<8x4xf32>, vector<4x16xf32>, vector<8x16xf32> -> vector<8x16xf32>
    %201 = arith.addf %195, %200 : vector<8x16xf32>
    %c1_175 = arith.constant 1 : index
    %c0_176 = arith.constant 0 : index
    %c0_177 = arith.constant 0 : index
    %202 = vector.load %arg3[%c1_175, %c0_176, %c0_177] : memref<9x8x4xf32, #tpu.memory_space<vmem>>, vector<1x8x4xf32>
    %203 = vector.shape_cast %202 : vector<1x8x4xf32> to vector<8x4xf32>
    %c0_178 = arith.constant 0 : index
    %c2_179 = arith.constant 2 : index
    %c1_180 = arith.constant 1 : index
    %204 = vector.load %arg6[%c0_178, %c2_179, %c1_180] : memref<4x10x18xf32, #tpu.memory_space<vmem>>, vector<4x1x16xf32>
    %205 = vector.shape_cast %204 : vector<4x1x16xf32> to vector<4x16xf32>
    %cst_181 = arith.constant dense<0.000000e+00> : vector<8x16xf32>
    %206 = tpu.matmul %203, %205, %cst_181 {dimension_numbers = #tpu.dot_dimension_numbers<[1], [0], [0], [1], [0, 0, 1, 1], [], []>} : vector<8x4xf32>, vector<4x16xf32>, vector<8x16xf32> -> vector<8x16xf32>
    %207 = arith.addf %201, %206 : vector<8x16xf32>
    %c2_182 = arith.constant 2 : index
    %c0_183 = arith.constant 0 : index
    %c0_184 = arith.constant 0 : index
    %208 = vector.load %arg3[%c2_182, %c0_183, %c0_184] : memref<9x8x4xf32, #tpu.memory_space<vmem>>, vector<1x8x4xf32>
    %209 = vector.shape_cast %208 : vector<1x8x4xf32> to vector<8x4xf32>
    %c0_185 = arith.constant 0 : index
    %c2_186 = arith.constant 2 : index
    %c2_187 = arith.constant 2 : index
    %210 = vector.load %arg6[%c0_185, %c2_186, %c2_187] : memref<4x10x18xf32, #tpu.memory_space<vmem>>, vector<4x1x16xf32>
    %211 = vector.shape_cast %210 : vector<4x1x16xf32> to vector<4x16xf32>
    %cst_188 = arith.constant dense<0.000000e+00> : vector<8x16xf32>
    %212 = tpu.matmul %209, %211, %cst_188 {dimension_numbers = #tpu.dot_dimension_numbers<[1], [0], [0], [1], [0, 0, 1, 1], [], []>} : vector<8x4xf32>, vector<4x16xf32>, vector<8x16xf32> -> vector<8x16xf32>
    %213 = arith.addf %207, %212 : vector<8x16xf32>
    %c3_189 = arith.constant 3 : index
    %c0_190 = arith.constant 0 : index
    %c0_191 = arith.constant 0 : index
    %214 = vector.load %arg3[%c3_189, %c0_190, %c0_191] : memref<9x8x4xf32, #tpu.memory_space<vmem>>, vector<1x8x4xf32>
    %215 = vector.shape_cast %214 : vector<1x8x4xf32> to vector<8x4xf32>
    %c0_192 = arith.constant 0 : index
    %c3_193 = arith.constant 3 : index
    %c0_194 = arith.constant 0 : index
    %216 = vector.load %arg6[%c0_192, %c3_193, %c0_194] : memref<4x10x18xf32, #tpu.memory_space<vmem>>, vector<4x1x16xf32>
    %217 = vector.shape_cast %216 : vector<4x1x16xf32> to vector<4x16xf32>
    %cst_195 = arith.constant dense<0.000000e+00> : vector<8x16xf32>
    %218 = tpu.matmul %215, %217, %cst_195 {dimension_numbers = #tpu.dot_dimension_numbers<[1], [0], [0], [1], [0, 0, 1, 1], [], []>} : vector<8x4xf32>, vector<4x16xf32>, vector<8x16xf32> -> vector<8x16xf32>
    %219 = arith.addf %213, %218 : vector<8x16xf32>
    %c4_196 = arith.constant 4 : index
    %c0_197 = arith.constant 0 : index
    %c0_198 = arith.constant 0 : index
    %220 = vector.load %arg3[%c4_196, %c0_197, %c0_198] : memref<9x8x4xf32, #tpu.memory_space<vmem>>, vector<1x8x4xf32>
    %221 = vector.shape_cast %220 : vector<1x8x4xf32> to vector<8x4xf32>
    %c0_199 = arith.constant 0 : index
    %c3_200 = arith.constant 3 : index
    %c1_201 = arith.constant 1 : index
    %222 = vector.load %arg6[%c0_199, %c3_200, %c1_201] : memref<4x10x18xf32, #tpu.memory_space<vmem>>, vector<4x1x16xf32>
    %223 = vector.shape_cast %222 : vector<4x1x16xf32> to vector<4x16xf32>
    %cst_202 = arith.constant dense<0.000000e+00> : vector<8x16xf32>
    %224 = tpu.matmul %221, %223, %cst_202 {dimension_numbers = #tpu.dot_dimension_numbers<[1], [0], [0], [1], [0, 0, 1, 1], [], []>} : vector<8x4xf32>, vector<4x16xf32>, vector<8x16xf32> -> vector<8x16xf32>
    %225 = arith.addf %219, %224 : vector<8x16xf32>
    %c5_203 = arith.constant 5 : index
    %c0_204 = arith.constant 0 : index
    %c0_205 = arith.constant 0 : index
    %226 = vector.load %arg3[%c5_203, %c0_204, %c0_205] : memref<9x8x4xf32, #tpu.memory_space<vmem>>, vector<1x8x4xf32>
    %227 = vector.shape_cast %226 : vector<1x8x4xf32> to vector<8x4xf32>
    %c0_206 = arith.constant 0 : index
    %c3_207 = arith.constant 3 : index
    %c2_208 = arith.constant 2 : index
    %228 = vector.load %arg6[%c0_206, %c3_207, %c2_208] : memref<4x10x18xf32, #tpu.memory_space<vmem>>, vector<4x1x16xf32>
    %229 = vector.shape_cast %228 : vector<4x1x16xf32> to vector<4x16xf32>
    %cst_209 = arith.constant dense<0.000000e+00> : vector<8x16xf32>
    %230 = tpu.matmul %227, %229, %cst_209 {dimension_numbers = #tpu.dot_dimension_numbers<[1], [0], [0], [1], [0, 0, 1, 1], [], []>} : vector<8x4xf32>, vector<4x16xf32>, vector<8x16xf32> -> vector<8x16xf32>
    %231 = arith.addf %225, %230 : vector<8x16xf32>
    %c6_210 = arith.constant 6 : index
    %c0_211 = arith.constant 0 : index
    %c0_212 = arith.constant 0 : index
    %232 = vector.load %arg3[%c6_210, %c0_211, %c0_212] : memref<9x8x4xf32, #tpu.memory_space<vmem>>, vector<1x8x4xf32>
    %233 = vector.shape_cast %232 : vector<1x8x4xf32> to vector<8x4xf32>
    %c0_213 = arith.constant 0 : index
    %c4_214 = arith.constant 4 : index
    %c0_215 = arith.constant 0 : index
    %234 = vector.load %arg6[%c0_213, %c4_214, %c0_215] : memref<4x10x18xf32, #tpu.memory_space<vmem>>, vector<4x1x16xf32>
    %235 = vector.shape_cast %234 : vector<4x1x16xf32> to vector<4x16xf32>
    %cst_216 = arith.constant dense<0.000000e+00> : vector<8x16xf32>
    %236 = tpu.matmul %233, %235, %cst_216 {dimension_numbers = #tpu.dot_dimension_numbers<[1], [0], [0], [1], [0, 0, 1, 1], [], []>} : vector<8x4xf32>, vector<4x16xf32>, vector<8x16xf32> -> vector<8x16xf32>
    %237 = arith.addf %231, %236 : vector<8x16xf32>
    %c7_217 = arith.constant 7 : index
    %c0_218 = arith.constant 0 : index
    %c0_219 = arith.constant 0 : index
    %238 = vector.load %arg3[%c7_217, %c0_218, %c0_219] : memref<9x8x4xf32, #tpu.memory_space<vmem>>, vector<1x8x4xf32>
    %239 = vector.shape_cast %238 : vector<1x8x4xf32> to vector<8x4xf32>
    %c0_220 = arith.constant 0 : index
    %c4_221 = arith.constant 4 : index
    %c1_222 = arith.constant 1 : index
    %240 = vector.load %arg6[%c0_220, %c4_221, %c1_222] : memref<4x10x18xf32, #tpu.memory_space<vmem>>, vector<4x1x16xf32>
    %241 = vector.shape_cast %240 : vector<4x1x16xf32> to vector<4x16xf32>
    %cst_223 = arith.constant dense<0.000000e+00> : vector<8x16xf32>
    %242 = tpu.matmul %239, %241, %cst_223 {dimension_numbers = #tpu.dot_dimension_numbers<[1], [0], [0], [1], [0, 0, 1, 1], [], []>} : vector<8x4xf32>, vector<4x16xf32>, vector<8x16xf32> -> vector<8x16xf32>
    %243 = arith.addf %237, %242 : vector<8x16xf32>
    %c8_224 = arith.constant 8 : index
    %c0_225 = arith.constant 0 : index
    %c0_226 = arith.constant 0 : index
    %244 = vector.load %arg3[%c8_224, %c0_225, %c0_226] : memref<9x8x4xf32, #tpu.memory_space<vmem>>, vector<1x8x4xf32>
    %245 = vector.shape_cast %244 : vector<1x8x4xf32> to vector<8x4xf32>
    %c0_227 = arith.constant 0 : index
    %c4_228 = arith.constant 4 : index
    %c2_229 = arith.constant 2 : index
    %246 = vector.load %arg6[%c0_227, %c4_228, %c2_229] : memref<4x10x18xf32, #tpu.memory_space<vmem>>, vector<4x1x16xf32>
    %247 = vector.shape_cast %246 : vector<4x1x16xf32> to vector<4x16xf32>
    %cst_230 = arith.constant dense<0.000000e+00> : vector<8x16xf32>
    %248 = tpu.matmul %245, %247, %cst_230 {dimension_numbers = #tpu.dot_dimension_numbers<[1], [0], [0], [1], [0, 0, 1, 1], [], []>} : vector<8x4xf32>, vector<4x16xf32>, vector<8x16xf32> -> vector<8x16xf32>
    %249 = arith.addf %243, %248 : vector<8x16xf32>
    %250 = vector.broadcast %64 : vector<8x1xf32> to vector<8x16xf32>
    %251 = arith.addf %249, %250 : vector<8x16xf32>
    %cst_231 = arith.constant 0.000000e+00 : f32
    %252 = vector.broadcast %cst_231 : f32 to vector<8x16xf32>
    %253 = arith.cmpf oge, %251, %252 : vector<8x16xf32>
    %cst_232 = arith.constant 1.000000e-01 : f32
    %254 = vector.broadcast %cst_232 : f32 to vector<8x16xf32>
    %255 = arith.mulf %254, %251 : vector<8x16xf32>
    %256 = arith.select %253, %251, %255 : vector<8x16xi1>, vector<8x16xf32>
    %c0_233 = arith.constant 0 : index
    %c0_234 = arith.constant 0 : index
    %c2_235 = arith.constant 2 : index
    %c0_236 = arith.constant 0 : index
    %257 = vector.load %arg5[%c0_233, %c0_234, %c2_235, %c0_236] : memref<1x8x8x16xf32, #tpu.memory_space<vmem>>, vector<1x8x1x16xf32>
    %258 = vector.shape_cast %257 : vector<1x8x1x16xf32> to vector<8x16xf32>
    %259 = vector.shape_cast %256 : vector<8x16xf32> to vector<1x8x1x16xf32>
    tpu.vector_store %arg5[%c0_233, %c0_234, %c2_235, %c0_236], %259 {strides = array<i32>} : memref<1x8x8x16xf32, #tpu.memory_space<vmem>>, vector<1x8x1x16xf32>,
    %cst_237 = arith.constant 0.000000e+00 : f32
    %260 = vector.broadcast %cst_237 : f32 to vector<8x16xf32>
    %c0_238 = arith.constant 0 : index
    %c0_239 = arith.constant 0 : index
    %c0_240 = arith.constant 0 : index
    %261 = vector.load %arg3[%c0_238, %c0_239, %c0_240] : memref<9x8x4xf32, #tpu.memory_space<vmem>>, vector<1x8x4xf32>
    %262 = vector.shape_cast %261 : vector<1x8x4xf32> to vector<8x4xf32>
    %c0_241 = arith.constant 0 : index
    %c3_242 = arith.constant 3 : index
    %c0_243 = arith.constant 0 : index
    %263 = vector.load %arg6[%c0_241, %c3_242, %c0_243] : memref<4x10x18xf32, #tpu.memory_space<vmem>>, vector<4x1x16xf32>
    %264 = vector.shape_cast %263 : vector<4x1x16xf32> to vector<4x16xf32>
    %cst_244 = arith.constant dense<0.000000e+00> : vector<8x16xf32>
    %265 = tpu.matmul %262, %264, %cst_244 {dimension_numbers = #tpu.dot_dimension_numbers<[1], [0], [0], [1], [0, 0, 1, 1], [], []>} : vector<8x4xf32>, vector<4x16xf32>, vector<8x16xf32> -> vector<8x16xf32>
    %266 = arith.addf %260, %265 : vector<8x16xf32>
    %c1_245 = arith.constant 1 : index
    %c0_246 = arith.constant 0 : index
    %c0_247 = arith.constant 0 : index
    %267 = vector.load %arg3[%c1_245, %c0_246, %c0_247] : memref<9x8x4xf32, #tpu.memory_space<vmem>>, vector<1x8x4xf32>
    %268 = vector.shape_cast %267 : vector<1x8x4xf32> to vector<8x4xf32>
    %c0_248 = arith.constant 0 : index
    %c3_249 = arith.constant 3 : index
    %c1_250 = arith.constant 1 : index
    %269 = vector.load %arg6[%c0_248, %c3_249, %c1_250] : memref<4x10x18xf32, #tpu.memory_space<vmem>>, vector<4x1x16xf32>
    %270 = vector.shape_cast %269 : vector<4x1x16xf32> to vector<4x16xf32>
    %cst_251 = arith.constant dense<0.000000e+00> : vector<8x16xf32>
    %271 = tpu.matmul %268, %270, %cst_251 {dimension_numbers = #tpu.dot_dimension_numbers<[1], [0], [0], [1], [0, 0, 1, 1], [], []>} : vector<8x4xf32>, vector<4x16xf32>, vector<8x16xf32> -> vector<8x16xf32>
    %272 = arith.addf %266, %271 : vector<8x16xf32>
    %c2_252 = arith.constant 2 : index
    %c0_253 = arith.constant 0 : index
    %c0_254 = arith.constant 0 : index
    %273 = vector.load %arg3[%c2_252, %c0_253, %c0_254] : memref<9x8x4xf32, #tpu.memory_space<vmem>>, vector<1x8x4xf32>
    %274 = vector.shape_cast %273 : vector<1x8x4xf32> to vector<8x4xf32>
    %c0_255 = arith.constant 0 : index
    %c3_256 = arith.constant 3 : index
    %c2_257 = arith.constant 2 : index
    %275 = vector.load %arg6[%c0_255, %c3_256, %c2_257] : memref<4x10x18xf32, #tpu.memory_space<vmem>>, vector<4x1x16xf32>
    %276 = vector.shape_cast %275 : vector<4x1x16xf32> to vector<4x16xf32>
    %cst_258 = arith.constant dense<0.000000e+00> : vector<8x16xf32>
    %277 = tpu.matmul %274, %276, %cst_258 {dimension_numbers = #tpu.dot_dimension_numbers<[1], [0], [0], [1], [0, 0, 1, 1], [], []>} : vector<8x4xf32>, vector<4x16xf32>, vector<8x16xf32> -> vector<8x16xf32>
    %278 = arith.addf %272, %277 : vector<8x16xf32>
    %c3_259 = arith.constant 3 : index
    %c0_260 = arith.constant 0 : index
    %c0_261 = arith.constant 0 : index
    %279 = vector.load %arg3[%c3_259, %c0_260, %c0_261] : memref<9x8x4xf32, #tpu.memory_space<vmem>>, vector<1x8x4xf32>
    %280 = vector.shape_cast %279 : vector<1x8x4xf32> to vector<8x4xf32>
    %c0_262 = arith.constant 0 : index
    %c4_263 = arith.constant 4 : index
    %c0_264 = arith.constant 0 : index
    %281 = vector.load %arg6[%c0_262, %c4_263, %c0_264] : memref<4x10x18xf32, #tpu.memory_space<vmem>>, vector<4x1x16xf32>
    %282 = vector.shape_cast %281 : vector<4x1x16xf32> to vector<4x16xf32>
    %cst_265 = arith.constant dense<0.000000e+00> : vector<8x16xf32>
    %283 = tpu.matmul %280, %282, %cst_265 {dimension_numbers = #tpu.dot_dimension_numbers<[1], [0], [0], [1], [0, 0, 1, 1], [], []>} : vector<8x4xf32>, vector<4x16xf32>, vector<8x16xf32> -> vector<8x16xf32>
    %284 = arith.addf %278, %283 : vector<8x16xf32>
    %c4_266 = arith.constant 4 : index
    %c0_267 = arith.constant 0 : index
    %c0_268 = arith.constant 0 : index
    %285 = vector.load %arg3[%c4_266, %c0_267, %c0_268] : memref<9x8x4xf32, #tpu.memory_space<vmem>>, vector<1x8x4xf32>
    %286 = vector.shape_cast %285 : vector<1x8x4xf32> to vector<8x4xf32>
    %c0_269 = arith.constant 0 : index
    %c4_270 = arith.constant 4 : index
    %c1_271 = arith.constant 1 : index
    %287 = vector.load %arg6[%c0_269, %c4_270, %c1_271] : memref<4x10x18xf32, #tpu.memory_space<vmem>>, vector<4x1x16xf32>
    %288 = vector.shape_cast %287 : vector<4x1x16xf32> to vector<4x16xf32>
    %cst_272 = arith.constant dense<0.000000e+00> : vector<8x16xf32>
    %289 = tpu.matmul %286, %288, %cst_272 {dimension_numbers = #tpu.dot_dimension_numbers<[1], [0], [0], [1], [0, 0, 1, 1], [], []>} : vector<8x4xf32>, vector<4x16xf32>, vector<8x16xf32> -> vector<8x16xf32>
    %290 = arith.addf %284, %289 : vector<8x16xf32>
    %c5_273 = arith.constant 5 : index
    %c0_274 = arith.constant 0 : index
    %c0_275 = arith.constant 0 : index
    %291 = vector.load %arg3[%c5_273, %c0_274, %c0_275] : memref<9x8x4xf32, #tpu.memory_space<vmem>>, vector<1x8x4xf32>
    %292 = vector.shape_cast %291 : vector<1x8x4xf32> to vector<8x4xf32>
    %c0_276 = arith.constant 0 : index
    %c4_277 = arith.constant 4 : index
    %c2_278 = arith.constant 2 : index
    %293 = vector.load %arg6[%c0_276, %c4_277, %c2_278] : memref<4x10x18xf32, #tpu.memory_space<vmem>>, vector<4x1x16xf32>
    %294 = vector.shape_cast %293 : vector<4x1x16xf32> to vector<4x16xf32>
    %cst_279 = arith.constant dense<0.000000e+00> : vector<8x16xf32>
    %295 = tpu.matmul %292, %294, %cst_279 {dimension_numbers = #tpu.dot_dimension_numbers<[1], [0], [0], [1], [0, 0, 1, 1], [], []>} : vector<8x4xf32>, vector<4x16xf32>, vector<8x16xf32> -> vector<8x16xf32>
    %296 = arith.addf %290, %295 : vector<8x16xf32>
    %c6_280 = arith.constant 6 : index
    %c0_281 = arith.constant 0 : index
    %c0_282 = arith.constant 0 : index
    %297 = vector.load %arg3[%c6_280, %c0_281, %c0_282] : memref<9x8x4xf32, #tpu.memory_space<vmem>>, vector<1x8x4xf32>
    %298 = vector.shape_cast %297 : vector<1x8x4xf32> to vector<8x4xf32>
    %c0_283 = arith.constant 0 : index
    %c5_284 = arith.constant 5 : index
    %c0_285 = arith.constant 0 : index
    %299 = vector.load %arg6[%c0_283, %c5_284, %c0_285] : memref<4x10x18xf32, #tpu.memory_space<vmem>>, vector<4x1x16xf32>
    %300 = vector.shape_cast %299 : vector<4x1x16xf32> to vector<4x16xf32>
    %cst_286 = arith.constant dense<0.000000e+00> : vector<8x16xf32>
    %301 = tpu.matmul %298, %300, %cst_286 {dimension_numbers = #tpu.dot_dimension_numbers<[1], [0], [0], [1], [0, 0, 1, 1], [], []>} : vector<8x4xf32>, vector<4x16xf32>, vector<8x16xf32> -> vector<8x16xf32>
    %302 = arith.addf %296, %301 : vector<8x16xf32>
    %c7_287 = arith.constant 7 : index
    %c0_288 = arith.constant 0 : index
    %c0_289 = arith.constant 0 : index
    %303 = vector.load %arg3[%c7_287, %c0_288, %c0_289] : memref<9x8x4xf32, #tpu.memory_space<vmem>>, vector<1x8x4xf32>
    %304 = vector.shape_cast %303 : vector<1x8x4xf32> to vector<8x4xf32>
    %c0_290 = arith.constant 0 : index
    %c5_291 = arith.constant 5 : index
    %c1_292 = arith.constant 1 : index
    %305 = vector.load %arg6[%c0_290, %c5_291, %c1_292] : memref<4x10x18xf32, #tpu.memory_space<vmem>>, vector<4x1x16xf32>
    %306 = vector.shape_cast %305 : vector<4x1x16xf32> to vector<4x16xf32>
    %cst_293 = arith.constant dense<0.000000e+00> : vector<8x16xf32>
    %307 = tpu.matmul %304, %306, %cst_293 {dimension_numbers = #tpu.dot_dimension_numbers<[1], [0], [0], [1], [0, 0, 1, 1], [], []>} : vector<8x4xf32>, vector<4x16xf32>, vector<8x16xf32> -> vector<8x16xf32>
    %308 = arith.addf %302, %307 : vector<8x16xf32>
    %c8_294 = arith.constant 8 : index
    %c0_295 = arith.constant 0 : index
    %c0_296 = arith.constant 0 : index
    %309 = vector.load %arg3[%c8_294, %c0_295, %c0_296] : memref<9x8x4xf32, #tpu.memory_space<vmem>>, vector<1x8x4xf32>
    %310 = vector.shape_cast %309 : vector<1x8x4xf32> to vector<8x4xf32>
    %c0_297 = arith.constant 0 : index
    %c5_298 = arith.constant 5 : index
    %c2_299 = arith.constant 2 : index
    %311 = vector.load %arg6[%c0_297, %c5_298, %c2_299] : memref<4x10x18xf32, #tpu.memory_space<vmem>>, vector<4x1x16xf32>
    %312 = vector.shape_cast %311 : vector<4x1x16xf32> to vector<4x16xf32>
    %cst_300 = arith.constant dense<0.000000e+00> : vector<8x16xf32>
    %313 = tpu.matmul %310, %312, %cst_300 {dimension_numbers = #tpu.dot_dimension_numbers<[1], [0], [0], [1], [0, 0, 1, 1], [], []>} : vector<8x4xf32>, vector<4x16xf32>, vector<8x16xf32> -> vector<8x16xf32>
    %314 = arith.addf %308, %313 : vector<8x16xf32>
    %315 = vector.broadcast %64 : vector<8x1xf32> to vector<8x16xf32>
    %316 = arith.addf %314, %315 : vector<8x16xf32>
    %cst_301 = arith.constant 0.000000e+00 : f32
    %317 = vector.broadcast %cst_301 : f32 to vector<8x16xf32>
    %318 = arith.cmpf oge, %316, %317 : vector<8x16xf32>
    %cst_302 = arith.constant 1.000000e-01 : f32
    %319 = vector.broadcast %cst_302 : f32 to vector<8x16xf32>
    %320 = arith.mulf %319, %316 : vector<8x16xf32>
    %321 = arith.select %318, %316, %320 : vector<8x16xi1>, vector<8x16xf32>
    %c0_303 = arith.constant 0 : index
    %c0_304 = arith.constant 0 : index
    %c3_305 = arith.constant 3 : index
    %c0_306 = arith.constant 0 : index
    %322 = vector.load %arg5[%c0_303, %c0_304, %c3_305, %c0_306] : memref<1x8x8x16xf32, #tpu.memory_space<vmem>>, vector<1x8x1x16xf32>
    %323 = vector.shape_cast %322 : vector<1x8x1x16xf32> to vector<8x16xf32>
    %324 = vector.shape_cast %321 : vector<8x16xf32> to vector<1x8x1x16xf32>
    tpu.vector_store %arg5[%c0_303, %c0_304, %c3_305, %c0_306], %324 {strides = array<i32>} : memref<1x8x8x16xf32, #tpu.memory_space<vmem>>, vector<1x8x1x16xf32>,
    %cst_307 = arith.constant 0.000000e+00 : f32
    %325 = vector.broadcast %cst_307 : f32 to vector<8x16xf32>
    %c0_308 = arith.constant 0 : index
    %c0_309 = arith.constant 0 : index
    %c0_310 = arith.constant 0 : index
    %326 = vector.load %arg3[%c0_308, %c0_309, %c0_310] : memref<9x8x4xf32, #tpu.memory_space<vmem>>, vector<1x8x4xf32>
    %327 = vector.shape_cast %326 : vector<1x8x4xf32> to vector<8x4xf32>
    %c0_311 = arith.constant 0 : index
    %c4_312 = arith.constant 4 : index
    %c0_313 = arith.constant 0 : index
    %328 = vector.load %arg6[%c0_311, %c4_312, %c0_313] : memref<4x10x18xf32, #tpu.memory_space<vmem>>, vector<4x1x16xf32>
    %329 = vector.shape_cast %328 : vector<4x1x16xf32> to vector<4x16xf32>
    %cst_314 = arith.constant dense<0.000000e+00> : vector<8x16xf32>
    %330 = tpu.matmul %327, %329, %cst_314 {dimension_numbers = #tpu.dot_dimension_numbers<[1], [0], [0], [1], [0, 0, 1, 1], [], []>} : vector<8x4xf32>, vector<4x16xf32>, vector<8x16xf32> -> vector<8x16xf32>
    %331 = arith.addf %325, %330 : vector<8x16xf32>
    %c1_315 = arith.constant 1 : index
    %c0_316 = arith.constant 0 : index
    %c0_317 = arith.constant 0 : index
    %332 = vector.load %arg3[%c1_315, %c0_316, %c0_317] : memref<9x8x4xf32, #tpu.memory_space<vmem>>, vector<1x8x4xf32>
    %333 = vector.shape_cast %332 : vector<1x8x4xf32> to vector<8x4xf32>
    %c0_318 = arith.constant 0 : index
    %c4_319 = arith.constant 4 : index
    %c1_320 = arith.constant 1 : index
    %334 = vector.load %arg6[%c0_318, %c4_319, %c1_320] : memref<4x10x18xf32, #tpu.memory_space<vmem>>, vector<4x1x16xf32>
    %335 = vector.shape_cast %334 : vector<4x1x16xf32> to vector<4x16xf32>
    %cst_321 = arith.constant dense<0.000000e+00> : vector<8x16xf32>
    %336 = tpu.matmul %333, %335, %cst_321 {dimension_numbers = #tpu.dot_dimension_numbers<[1], [0], [0], [1], [0, 0, 1, 1], [], []>} : vector<8x4xf32>, vector<4x16xf32>, vector<8x16xf32> -> vector<8x16xf32>
    %337 = arith.addf %331, %336 : vector<8x16xf32>
    %c2_322 = arith.constant 2 : index
    %c0_323 = arith.constant 0 : index
    %c0_324 = arith.constant 0 : index
    %338 = vector.load %arg3[%c2_322, %c0_323, %c0_324] : memref<9x8x4xf32, #tpu.memory_space<vmem>>, vector<1x8x4xf32>
    %339 = vector.shape_cast %338 : vector<1x8x4xf32> to vector<8x4xf32>
    %c0_325 = arith.constant 0 : index
    %c4_326 = arith.constant 4 : index
    %c2_327 = arith.constant 2 : index
    %340 = vector.load %arg6[%c0_325, %c4_326, %c2_327] : memref<4x10x18xf32, #tpu.memory_space<vmem>>, vector<4x1x16xf32>
    %341 = vector.shape_cast %340 : vector<4x1x16xf32> to vector<4x16xf32>
    %cst_328 = arith.constant dense<0.000000e+00> : vector<8x16xf32>
    %342 = tpu.matmul %339, %341, %cst_328 {dimension_numbers = #tpu.dot_dimension_numbers<[1], [0], [0], [1], [0, 0, 1, 1], [], []>} : vector<8x4xf32>, vector<4x16xf32>, vector<8x16xf32> -> vector<8x16xf32>
    %343 = arith.addf %337, %342 : vector<8x16xf32>
    %c3_329 = arith.constant 3 : index
    %c0_330 = arith.constant 0 : index
    %c0_331 = arith.constant 0 : index
    %344 = vector.load %arg3[%c3_329, %c0_330, %c0_331] : memref<9x8x4xf32, #tpu.memory_space<vmem>>, vector<1x8x4xf32>
    %345 = vector.shape_cast %344 : vector<1x8x4xf32> to vector<8x4xf32>
    %c0_332 = arith.constant 0 : index
    %c5_333 = arith.constant 5 : index
    %c0_334 = arith.constant 0 : index
    %346 = vector.load %arg6[%c0_332, %c5_333, %c0_334] : memref<4x10x18xf32, #tpu.memory_space<vmem>>, vector<4x1x16xf32>
    %347 = vector.shape_cast %346 : vector<4x1x16xf32> to vector<4x16xf32>
    %cst_335 = arith.constant dense<0.000000e+00> : vector<8x16xf32>
    %348 = tpu.matmul %345, %347, %cst_335 {dimension_numbers = #tpu.dot_dimension_numbers<[1], [0], [0], [1], [0, 0, 1, 1], [], []>} : vector<8x4xf32>, vector<4x16xf32>, vector<8x16xf32> -> vector<8x16xf32>
    %349 = arith.addf %343, %348 : vector<8x16xf32>
    %c4_336 = arith.constant 4 : index
    %c0_337 = arith.constant 0 : index
    %c0_338 = arith.constant 0 : index
    %350 = vector.load %arg3[%c4_336, %c0_337, %c0_338] : memref<9x8x4xf32, #tpu.memory_space<vmem>>, vector<1x8x4xf32>
    %351 = vector.shape_cast %350 : vector<1x8x4xf32> to vector<8x4xf32>
    %c0_339 = arith.constant 0 : index
    %c5_340 = arith.constant 5 : index
    %c1_341 = arith.constant 1 : index
    %352 = vector.load %arg6[%c0_339, %c5_340, %c1_341] : memref<4x10x18xf32, #tpu.memory_space<vmem>>, vector<4x1x16xf32>
    %353 = vector.shape_cast %352 : vector<4x1x16xf32> to vector<4x16xf32>
    %cst_342 = arith.constant dense<0.000000e+00> : vector<8x16xf32>
    %354 = tpu.matmul %351, %353, %cst_342 {dimension_numbers = #tpu.dot_dimension_numbers<[1], [0], [0], [1], [0, 0, 1, 1], [], []>} : vector<8x4xf32>, vector<4x16xf32>, vector<8x16xf32> -> vector<8x16xf32>
    %355 = arith.addf %349, %354 : vector<8x16xf32>
    %c5_343 = arith.constant 5 : index
    %c0_344 = arith.constant 0 : index
    %c0_345 = arith.constant 0 : index
    %356 = vector.load %arg3[%c5_343, %c0_344, %c0_345] : memref<9x8x4xf32, #tpu.memory_space<vmem>>, vector<1x8x4xf32>
    %357 = vector.shape_cast %356 : vector<1x8x4xf32> to vector<8x4xf32>
    %c0_346 = arith.constant 0 : index
    %c5_347 = arith.constant 5 : index
    %c2_348 = arith.constant 2 : index
    %358 = vector.load %arg6[%c0_346, %c5_347, %c2_348] : memref<4x10x18xf32, #tpu.memory_space<vmem>>, vector<4x1x16xf32>
    %359 = vector.shape_cast %358 : vector<4x1x16xf32> to vector<4x16xf32>
    %cst_349 = arith.constant dense<0.000000e+00> : vector<8x16xf32>
    %360 = tpu.matmul %357, %359, %cst_349 {dimension_numbers = #tpu.dot_dimension_numbers<[1], [0], [0], [1], [0, 0, 1, 1], [], []>} : vector<8x4xf32>, vector<4x16xf32>, vector<8x16xf32> -> vector<8x16xf32>
    %361 = arith.addf %355, %360 : vector<8x16xf32>
    %c6_350 = arith.constant 6 : index
    %c0_351 = arith.constant 0 : index
    %c0_352 = arith.constant 0 : index
    %362 = vector.load %arg3[%c6_350, %c0_351, %c0_352] : memref<9x8x4xf32, #tpu.memory_space<vmem>>, vector<1x8x4xf32>
    %363 = vector.shape_cast %362 : vector<1x8x4xf32> to vector<8x4xf32>
    %c0_353 = arith.constant 0 : index
    %c6_354 = arith.constant 6 : index
    %c0_355 = arith.constant 0 : index
    %364 = vector.load %arg6[%c0_353, %c6_354, %c0_355] : memref<4x10x18xf32, #tpu.memory_space<vmem>>, vector<4x1x16xf32>
    %365 = vector.shape_cast %364 : vector<4x1x16xf32> to vector<4x16xf32>
    %cst_356 = arith.constant dense<0.000000e+00> : vector<8x16xf32>
    %366 = tpu.matmul %363, %365, %cst_356 {dimension_numbers = #tpu.dot_dimension_numbers<[1], [0], [0], [1], [0, 0, 1, 1], [], []>} : vector<8x4xf32>, vector<4x16xf32>, vector<8x16xf32> -> vector<8x16xf32>
    %367 = arith.addf %361, %366 : vector<8x16xf32>
    %c7_357 = arith.constant 7 : index
    %c0_358 = arith.constant 0 : index
    %c0_359 = arith.constant 0 : index
    %368 = vector.load %arg3[%c7_357, %c0_358, %c0_359] : memref<9x8x4xf32, #tpu.memory_space<vmem>>, vector<1x8x4xf32>
    %369 = vector.shape_cast %368 : vector<1x8x4xf32> to vector<8x4xf32>
    %c0_360 = arith.constant 0 : index
    %c6_361 = arith.constant 6 : index
    %c1_362 = arith.constant 1 : index
    %370 = vector.load %arg6[%c0_360, %c6_361, %c1_362] : memref<4x10x18xf32, #tpu.memory_space<vmem>>, vector<4x1x16xf32>
    %371 = vector.shape_cast %370 : vector<4x1x16xf32> to vector<4x16xf32>
    %cst_363 = arith.constant dense<0.000000e+00> : vector<8x16xf32>
    %372 = tpu.matmul %369, %371, %cst_363 {dimension_numbers = #tpu.dot_dimension_numbers<[1], [0], [0], [1], [0, 0, 1, 1], [], []>} : vector<8x4xf32>, vector<4x16xf32>, vector<8x16xf32> -> vector<8x16xf32>
    %373 = arith.addf %367, %372 : vector<8x16xf32>
    %c8_364 = arith.constant 8 : index
    %c0_365 = arith.constant 0 : index
    %c0_366 = arith.constant 0 : index
    %374 = vector.load %arg3[%c8_364, %c0_365, %c0_366] : memref<9x8x4xf32, #tpu.memory_space<vmem>>, vector<1x8x4xf32>
    %375 = vector.shape_cast %374 : vector<1x8x4xf32> to vector<8x4xf32>
    %c0_367 = arith.constant 0 : index
    %c6_368 = arith.constant 6 : index
    %c2_369 = arith.constant 2 : index
    %376 = vector.load %arg6[%c0_367, %c6_368, %c2_369] : memref<4x10x18xf32, #tpu.memory_space<vmem>>, vector<4x1x16xf32>
    %377 = vector.shape_cast %376 : vector<4x1x16xf32> to vector<4x16xf32>
    %cst_370 = arith.constant dense<0.000000e+00> : vector<8x16xf32>
    %378 = tpu.matmul %375, %377, %cst_370 {dimension_numbers = #tpu.dot_dimension_numbers<[1], [0], [0], [1], [0, 0, 1, 1], [], []>} : vector<8x4xf32>, vector<4x16xf32>, vector<8x16xf32> -> vector<8x16xf32>
    %379 = arith.addf %373, %378 : vector<8x16xf32>
    %380 = vector.broadcast %64 : vector<8x1xf32> to vector<8x16xf32>
    %381 = arith.addf %379, %380 : vector<8x16xf32>
    %cst_371 = arith.constant 0.000000e+00 : f32
    %382 = vector.broadcast %cst_371 : f32 to vector<8x16xf32>
    %383 = arith.cmpf oge, %381, %382 : vector<8x16xf32>
    %cst_372 = arith.constant 1.000000e-01 : f32
    %384 = vector.broadcast %cst_372 : f32 to vector<8x16xf32>
    %385 = arith.mulf %384, %381 : vector<8x16xf32>
    %386 = arith.select %383, %381, %385 : vector<8x16xi1>, vector<8x16xf32>
    %c0_373 = arith.constant 0 : index
    %c0_374 = arith.constant 0 : index
    %c4_375 = arith.constant 4 : index
    %c0_376 = arith.constant 0 : index
    %387 = vector.load %arg5[%c0_373, %c0_374, %c4_375, %c0_376] : memref<1x8x8x16xf32, #tpu.memory_space<vmem>>, vector<1x8x1x16xf32>
    %388 = vector.shape_cast %387 : vector<1x8x1x16xf32> to vector<8x16xf32>
    %389 = vector.shape_cast %386 : vector<8x16xf32> to vector<1x8x1x16xf32>
    tpu.vector_store %arg5[%c0_373, %c0_374, %c4_375, %c0_376], %389 {strides = array<i32>} : memref<1x8x8x16xf32, #tpu.memory_space<vmem>>, vector<1x8x1x16xf32>,
    %cst_377 = arith.constant 0.000000e+00 : f32
    %390 = vector.broadcast %cst_377 : f32 to vector<8x16xf32>
    %c0_378 = arith.constant 0 : index
    %c0_379 = arith.constant 0 : index
    %c0_380 = arith.constant 0 : index
    %391 = vector.load %arg3[%c0_378, %c0_379, %c0_380] : memref<9x8x4xf32, #tpu.memory_space<vmem>>, vector<1x8x4xf32>
    %392 = vector.shape_cast %391 : vector<1x8x4xf32> to vector<8x4xf32>
    %c0_381 = arith.constant 0 : index
    %c5_382 = arith.constant 5 : index
    %c0_383 = arith.constant 0 : index
    %393 = vector.load %arg6[%c0_381, %c5_382, %c0_383] : memref<4x10x18xf32, #tpu.memory_space<vmem>>, vector<4x1x16xf32>
    %394 = vector.shape_cast %393 : vector<4x1x16xf32> to vector<4x16xf32>
    %cst_384 = arith.constant dense<0.000000e+00> : vector<8x16xf32>
    %395 = tpu.matmul %392, %394, %cst_384 {dimension_numbers = #tpu.dot_dimension_numbers<[1], [0], [0], [1], [0, 0, 1, 1], [], []>} : vector<8x4xf32>, vector<4x16xf32>, vector<8x16xf32> -> vector<8x16xf32>
    %396 = arith.addf %390, %395 : vector<8x16xf32>
    %c1_385 = arith.constant 1 : index
    %c0_386 = arith.constant 0 : index
    %c0_387 = arith.constant 0 : index
    %397 = vector.load %arg3[%c1_385, %c0_386, %c0_387] : memref<9x8x4xf32, #tpu.memory_space<vmem>>, vector<1x8x4xf32>
    %398 = vector.shape_cast %397 : vector<1x8x4xf32> to vector<8x4xf32>
    %c0_388 = arith.constant 0 : index
    %c5_389 = arith.constant 5 : index
    %c1_390 = arith.constant 1 : index
    %399 = vector.load %arg6[%c0_388, %c5_389, %c1_390] : memref<4x10x18xf32, #tpu.memory_space<vmem>>, vector<4x1x16xf32>
    %400 = vector.shape_cast %399 : vector<4x1x16xf32> to vector<4x16xf32>
    %cst_391 = arith.constant dense<0.000000e+00> : vector<8x16xf32>
    %401 = tpu.matmul %398, %400, %cst_391 {dimension_numbers = #tpu.dot_dimension_numbers<[1], [0], [0], [1], [0, 0, 1, 1], [], []>} : vector<8x4xf32>, vector<4x16xf32>, vector<8x16xf32> -> vector<8x16xf32>
    %402 = arith.addf %396, %401 : vector<8x16xf32>
    %c2_392 = arith.constant 2 : index
    %c0_393 = arith.constant 0 : index
    %c0_394 = arith.constant 0 : index
    %403 = vector.load %arg3[%c2_392, %c0_393, %c0_394] : memref<9x8x4xf32, #tpu.memory_space<vmem>>, vector<1x8x4xf32>
    %404 = vector.shape_cast %403 : vector<1x8x4xf32> to vector<8x4xf32>
    %c0_395 = arith.constant 0 : index
    %c5_396 = arith.constant 5 : index
    %c2_397 = arith.constant 2 : index
    %405 = vector.load %arg6[%c0_395, %c5_396, %c2_397] : memref<4x10x18xf32, #tpu.memory_space<vmem>>, vector<4x1x16xf32>
    %406 = vector.shape_cast %405 : vector<4x1x16xf32> to vector<4x16xf32>
    %cst_398 = arith.constant dense<0.000000e+00> : vector<8x16xf32>
    %407 = tpu.matmul %404, %406, %cst_398 {dimension_numbers = #tpu.dot_dimension_numbers<[1], [0], [0], [1], [0, 0, 1, 1], [], []>} : vector<8x4xf32>, vector<4x16xf32>, vector<8x16xf32> -> vector<8x16xf32>
    %408 = arith.addf %402, %407 : vector<8x16xf32>
    %c3_399 = arith.constant 3 : index
    %c0_400 = arith.constant 0 : index
    %c0_401 = arith.constant 0 : index
    %409 = vector.load %arg3[%c3_399, %c0_400, %c0_401] : memref<9x8x4xf32, #tpu.memory_space<vmem>>, vector<1x8x4xf32>
    %410 = vector.shape_cast %409 : vector<1x8x4xf32> to vector<8x4xf32>
    %c0_402 = arith.constant 0 : index
    %c6_403 = arith.constant 6 : index
    %c0_404 = arith.constant 0 : index
    %411 = vector.load %arg6[%c0_402, %c6_403, %c0_404] : memref<4x10x18xf32, #tpu.memory_space<vmem>>, vector<4x1x16xf32>
    %412 = vector.shape_cast %411 : vector<4x1x16xf32> to vector<4x16xf32>
    %cst_405 = arith.constant dense<0.000000e+00> : vector<8x16xf32>
    %413 = tpu.matmul %410, %412, %cst_405 {dimension_numbers = #tpu.dot_dimension_numbers<[1], [0], [0], [1], [0, 0, 1, 1], [], []>} : vector<8x4xf32>, vector<4x16xf32>, vector<8x16xf32> -> vector<8x16xf32>
    %414 = arith.addf %408, %413 : vector<8x16xf32>
    %c4_406 = arith.constant 4 : index
    %c0_407 = arith.constant 0 : index
    %c0_408 = arith.constant 0 : index
    %415 = vector.load %arg3[%c4_406, %c0_407, %c0_408] : memref<9x8x4xf32, #tpu.memory_space<vmem>>, vector<1x8x4xf32>
    %416 = vector.shape_cast %415 : vector<1x8x4xf32> to vector<8x4xf32>
    %c0_409 = arith.constant 0 : index
    %c6_410 = arith.constant 6 : index
    %c1_411 = arith.constant 1 : index
    %417 = vector.load %arg6[%c0_409, %c6_410, %c1_411] : memref<4x10x18xf32, #tpu.memory_space<vmem>>, vector<4x1x16xf32>
    %418 = vector.shape_cast %417 : vector<4x1x16xf32> to vector<4x16xf32>
    %cst_412 = arith.constant dense<0.000000e+00> : vector<8x16xf32>
    %419 = tpu.matmul %416, %418, %cst_412 {dimension_numbers = #tpu.dot_dimension_numbers<[1], [0], [0], [1], [0, 0, 1, 1], [], []>} : vector<8x4xf32>, vector<4x16xf32>, vector<8x16xf32> -> vector<8x16xf32>
    %420 = arith.addf %414, %419 : vector<8x16xf32>
    %c5_413 = arith.constant 5 : index
    %c0_414 = arith.constant 0 : index
    %c0_415 = arith.constant 0 : index
    %421 = vector.load %arg3[%c5_413, %c0_414, %c0_415] : memref<9x8x4xf32, #tpu.memory_space<vmem>>, vector<1x8x4xf32>
    %422 = vector.shape_cast %421 : vector<1x8x4xf32> to vector<8x4xf32>
    %c0_416 = arith.constant 0 : index
    %c6_417 = arith.constant 6 : index
    %c2_418 = arith.constant 2 : index
    %423 = vector.load %arg6[%c0_416, %c6_417, %c2_418] : memref<4x10x18xf32, #tpu.memory_space<vmem>>, vector<4x1x16xf32>
    %424 = vector.shape_cast %423 : vector<4x1x16xf32> to vector<4x16xf32>
    %cst_419 = arith.constant dense<0.000000e+00> : vector<8x16xf32>
    %425 = tpu.matmul %422, %424, %cst_419 {dimension_numbers = #tpu.dot_dimension_numbers<[1], [0], [0], [1], [0, 0, 1, 1], [], []>} : vector<8x4xf32>, vector<4x16xf32>, vector<8x16xf32> -> vector<8x16xf32>
    %426 = arith.addf %420, %425 : vector<8x16xf32>
    %c6_420 = arith.constant 6 : index
    %c0_421 = arith.constant 0 : index
    %c0_422 = arith.constant 0 : index
    %427 = vector.load %arg3[%c6_420, %c0_421, %c0_422] : memref<9x8x4xf32, #tpu.memory_space<vmem>>, vector<1x8x4xf32>
    %428 = vector.shape_cast %427 : vector<1x8x4xf32> to vector<8x4xf32>
    %c0_423 = arith.constant 0 : index
    %c7_424 = arith.constant 7 : index
    %c0_425 = arith.constant 0 : index
    %429 = vector.load %arg6[%c0_423, %c7_424, %c0_425] : memref<4x10x18xf32, #tpu.memory_space<vmem>>, vector<4x1x16xf32>
    %430 = vector.shape_cast %429 : vector<4x1x16xf32> to vector<4x16xf32>
    %cst_426 = arith.constant dense<0.000000e+00> : vector<8x16xf32>
    %431 = tpu.matmul %428, %430, %cst_426 {dimension_numbers = #tpu.dot_dimension_numbers<[1], [0], [0], [1], [0, 0, 1, 1], [], []>} : vector<8x4xf32>, vector<4x16xf32>, vector<8x16xf32> -> vector<8x16xf32>
    %432 = arith.addf %426, %431 : vector<8x16xf32>
    %c7_427 = arith.constant 7 : index
    %c0_428 = arith.constant 0 : index
    %c0_429 = arith.constant 0 : index
    %433 = vector.load %arg3[%c7_427, %c0_428, %c0_429] : memref<9x8x4xf32, #tpu.memory_space<vmem>>, vector<1x8x4xf32>
    %434 = vector.shape_cast %433 : vector<1x8x4xf32> to vector<8x4xf32>
    %c0_430 = arith.constant 0 : index
    %c7_431 = arith.constant 7 : index
    %c1_432 = arith.constant 1 : index
    %435 = vector.load %arg6[%c0_430, %c7_431, %c1_432] : memref<4x10x18xf32, #tpu.memory_space<vmem>>, vector<4x1x16xf32>
    %436 = vector.shape_cast %435 : vector<4x1x16xf32> to vector<4x16xf32>
    %cst_433 = arith.constant dense<0.000000e+00> : vector<8x16xf32>
    %437 = tpu.matmul %434, %436, %cst_433 {dimension_numbers = #tpu.dot_dimension_numbers<[1], [0], [0], [1], [0, 0, 1, 1], [], []>} : vector<8x4xf32>, vector<4x16xf32>, vector<8x16xf32> -> vector<8x16xf32>
    %438 = arith.addf %432, %437 : vector<8x16xf32>
    %c8_434 = arith.constant 8 : index
    %c0_435 = arith.constant 0 : index
    %c0_436 = arith.constant 0 : index
    %439 = vector.load %arg3[%c8_434, %c0_435, %c0_436] : memref<9x8x4xf32, #tpu.memory_space<vmem>>, vector<1x8x4xf32>
    %440 = vector.shape_cast %439 : vector<1x8x4xf32> to vector<8x4xf32>
    %c0_437 = arith.constant 0 : index
    %c7_438 = arith.constant 7 : index
    %c2_439 = arith.constant 2 : index
    %441 = vector.load %arg6[%c0_437, %c7_438, %c2_439] : memref<4x10x18xf32, #tpu.memory_space<vmem>>, vector<4x1x16xf32>
    %442 = vector.shape_cast %441 : vector<4x1x16xf32> to vector<4x16xf32>
    %cst_440 = arith.constant dense<0.000000e+00> : vector<8x16xf32>
    %443 = tpu.matmul %440, %442, %cst_440 {dimension_numbers = #tpu.dot_dimension_numbers<[1], [0], [0], [1], [0, 0, 1, 1], [], []>} : vector<8x4xf32>, vector<4x16xf32>, vector<8x16xf32> -> vector<8x16xf32>
    %444 = arith.addf %438, %443 : vector<8x16xf32>
    %445 = vector.broadcast %64 : vector<8x1xf32> to vector<8x16xf32>
    %446 = arith.addf %444, %445 : vector<8x16xf32>
    %cst_441 = arith.constant 0.000000e+00 : f32
    %447 = vector.broadcast %cst_441 : f32 to vector<8x16xf32>
    %448 = arith.cmpf oge, %446, %447 : vector<8x16xf32>
    %cst_442 = arith.constant 1.000000e-01 : f32
    %449 = vector.broadcast %cst_442 : f32 to vector<8x16xf32>
    %450 = arith.mulf %449, %446 : vector<8x16xf32>
    %451 = arith.select %448, %446, %450 : vector<8x16xi1>, vector<8x16xf32>
    %c0_443 = arith.constant 0 : index
    %c0_444 = arith.constant 0 : index
    %c5_445 = arith.constant 5 : index
    %c0_446 = arith.constant 0 : index
    %452 = vector.load %arg5[%c0_443, %c0_444, %c5_445, %c0_446] : memref<1x8x8x16xf32, #tpu.memory_space<vmem>>, vector<1x8x1x16xf32>
    %453 = vector.shape_cast %452 : vector<1x8x1x16xf32> to vector<8x16xf32>
    %454 = vector.shape_cast %451 : vector<8x16xf32> to vector<1x8x1x16xf32>
    tpu.vector_store %arg5[%c0_443, %c0_444, %c5_445, %c0_446], %454 {strides = array<i32>} : memref<1x8x8x16xf32, #tpu.memory_space<vmem>>, vector<1x8x1x16xf32>,
    %cst_447 = arith.constant 0.000000e+00 : f32
    %455 = vector.broadcast %cst_447 : f32 to vector<8x16xf32>
    %c0_448 = arith.constant 0 : index
    %c0_449 = arith.constant 0 : index
    %c0_450 = arith.constant 0 : index
    %456 = vector.load %arg3[%c0_448, %c0_449, %c0_450] : memref<9x8x4xf32, #tpu.memory_space<vmem>>, vector<1x8x4xf32>
    %457 = vector.shape_cast %456 : vector<1x8x4xf32> to vector<8x4xf32>
    %c0_451 = arith.constant 0 : index
    %c6_452 = arith.constant 6 : index
    %c0_453 = arith.constant 0 : index
    %458 = vector.load %arg6[%c0_451, %c6_452, %c0_453] : memref<4x10x18xf32, #tpu.memory_space<vmem>>, vector<4x1x16xf32>
    %459 = vector.shape_cast %458 : vector<4x1x16xf32> to vector<4x16xf32>
    %cst_454 = arith.constant dense<0.000000e+00> : vector<8x16xf32>
    %460 = tpu.matmul %457, %459, %cst_454 {dimension_numbers = #tpu.dot_dimension_numbers<[1], [0], [0], [1], [0, 0, 1, 1], [], []>} : vector<8x4xf32>, vector<4x16xf32>, vector<8x16xf32> -> vector<8x16xf32>
    %461 = arith.addf %455, %460 : vector<8x16xf32>
    %c1_455 = arith.constant 1 : index
    %c0_456 = arith.constant 0 : index
    %c0_457 = arith.constant 0 : index
    %462 = vector.load %arg3[%c1_455, %c0_456, %c0_457] : memref<9x8x4xf32, #tpu.memory_space<vmem>>, vector<1x8x4xf32>
    %463 = vector.shape_cast %462 : vector<1x8x4xf32> to vector<8x4xf32>
    %c0_458 = arith.constant 0 : index
    %c6_459 = arith.constant 6 : index
    %c1_460 = arith.constant 1 : index
    %464 = vector.load %arg6[%c0_458, %c6_459, %c1_460] : memref<4x10x18xf32, #tpu.memory_space<vmem>>, vector<4x1x16xf32>
    %465 = vector.shape_cast %464 : vector<4x1x16xf32> to vector<4x16xf32>
    %cst_461 = arith.constant dense<0.000000e+00> : vector<8x16xf32>
    %466 = tpu.matmul %463, %465, %cst_461 {dimension_numbers = #tpu.dot_dimension_numbers<[1], [0], [0], [1], [0, 0, 1, 1], [], []>} : vector<8x4xf32>, vector<4x16xf32>, vector<8x16xf32> -> vector<8x16xf32>
    %467 = arith.addf %461, %466 : vector<8x16xf32>
    %c2_462 = arith.constant 2 : index
    %c0_463 = arith.constant 0 : index
    %c0_464 = arith.constant 0 : index
    %468 = vector.load %arg3[%c2_462, %c0_463, %c0_464] : memref<9x8x4xf32, #tpu.memory_space<vmem>>, vector<1x8x4xf32>
    %469 = vector.shape_cast %468 : vector<1x8x4xf32> to vector<8x4xf32>
    %c0_465 = arith.constant 0 : index
    %c6_466 = arith.constant 6 : index
    %c2_467 = arith.constant 2 : index
    %470 = vector.load %arg6[%c0_465, %c6_466, %c2_467] : memref<4x10x18xf32, #tpu.memory_space<vmem>>, vector<4x1x16xf32>
    %471 = vector.shape_cast %470 : vector<4x1x16xf32> to vector<4x16xf32>
    %cst_468 = arith.constant dense<0.000000e+00> : vector<8x16xf32>
    %472 = tpu.matmul %469, %471, %cst_468 {dimension_numbers = #tpu.dot_dimension_numbers<[1], [0], [0], [1], [0, 0, 1, 1], [], []>} : vector<8x4xf32>, vector<4x16xf32>, vector<8x16xf32> -> vector<8x16xf32>
    %473 = arith.addf %467, %472 : vector<8x16xf32>
    %c3_469 = arith.constant 3 : index
    %c0_470 = arith.constant 0 : index
    %c0_471 = arith.constant 0 : index
    %474 = vector.load %arg3[%c3_469, %c0_470, %c0_471] : memref<9x8x4xf32, #tpu.memory_space<vmem>>, vector<1x8x4xf32>
    %475 = vector.shape_cast %474 : vector<1x8x4xf32> to vector<8x4xf32>
    %c0_472 = arith.constant 0 : index
    %c7_473 = arith.constant 7 : index
    %c0_474 = arith.constant 0 : index
    %476 = vector.load %arg6[%c0_472, %c7_473, %c0_474] : memref<4x10x18xf32, #tpu.memory_space<vmem>>, vector<4x1x16xf32>
    %477 = vector.shape_cast %476 : vector<4x1x16xf32> to vector<4x16xf32>
    %cst_475 = arith.constant dense<0.000000e+00> : vector<8x16xf32>
    %478 = tpu.matmul %475, %477, %cst_475 {dimension_numbers = #tpu.dot_dimension_numbers<[1], [0], [0], [1], [0, 0, 1, 1], [], []>} : vector<8x4xf32>, vector<4x16xf32>, vector<8x16xf32> -> vector<8x16xf32>
    %479 = arith.addf %473, %478 : vector<8x16xf32>
    %c4_476 = arith.constant 4 : index
    %c0_477 = arith.constant 0 : index
    %c0_478 = arith.constant 0 : index
    %480 = vector.load %arg3[%c4_476, %c0_477, %c0_478] : memref<9x8x4xf32, #tpu.memory_space<vmem>>, vector<1x8x4xf32>
    %481 = vector.shape_cast %480 : vector<1x8x4xf32> to vector<8x4xf32>
    %c0_479 = arith.constant 0 : index
    %c7_480 = arith.constant 7 : index
    %c1_481 = arith.constant 1 : index
    %482 = vector.load %arg6[%c0_479, %c7_480, %c1_481] : memref<4x10x18xf32, #tpu.memory_space<vmem>>, vector<4x1x16xf32>
    %483 = vector.shape_cast %482 : vector<4x1x16xf32> to vector<4x16xf32>
    %cst_482 = arith.constant dense<0.000000e+00> : vector<8x16xf32>
    %484 = tpu.matmul %481, %483, %cst_482 {dimension_numbers = #tpu.dot_dimension_numbers<[1], [0], [0], [1], [0, 0, 1, 1], [], []>} : vector<8x4xf32>, vector<4x16xf32>, vector<8x16xf32> -> vector<8x16xf32>
    %485 = arith.addf %479, %484 : vector<8x16xf32>
    %c5_483 = arith.constant 5 : index
    %c0_484 = arith.constant 0 : index
    %c0_485 = arith.constant 0 : index
    %486 = vector.load %arg3[%c5_483, %c0_484, %c0_485] : memref<9x8x4xf32, #tpu.memory_space<vmem>>, vector<1x8x4xf32>
    %487 = vector.shape_cast %486 : vector<1x8x4xf32> to vector<8x4xf32>
    %c0_486 = arith.constant 0 : index
    %c7_487 = arith.constant 7 : index
    %c2_488 = arith.constant 2 : index
    %488 = vector.load %arg6[%c0_486, %c7_487, %c2_488] : memref<4x10x18xf32, #tpu.memory_space<vmem>>, vector<4x1x16xf32>
    %489 = vector.shape_cast %488 : vector<4x1x16xf32> to vector<4x16xf32>
    %cst_489 = arith.constant dense<0.000000e+00> : vector<8x16xf32>
    %490 = tpu.matmul %487, %489, %cst_489 {dimension_numbers = #tpu.dot_dimension_numbers<[1], [0], [0], [1], [0, 0, 1, 1], [], []>} : vector<8x4xf32>, vector<4x16xf32>, vector<8x16xf32> -> vector<8x16xf32>
    %491 = arith.addf %485, %490 : vector<8x16xf32>
    %c6_490 = arith.constant 6 : index
    %c0_491 = arith.constant 0 : index
    %c0_492 = arith.constant 0 : index
    %492 = vector.load %arg3[%c6_490, %c0_491, %c0_492] : memref<9x8x4xf32, #tpu.memory_space<vmem>>, vector<1x8x4xf32>
    %493 = vector.shape_cast %492 : vector<1x8x4xf32> to vector<8x4xf32>
    %c0_493 = arith.constant 0 : index
    %c8_494 = arith.constant 8 : index
    %c0_495 = arith.constant 0 : index
    %494 = vector.load %arg6[%c0_493, %c8_494, %c0_495] : memref<4x10x18xf32, #tpu.memory_space<vmem>>, vector<4x1x16xf32>
    %495 = vector.shape_cast %494 : vector<4x1x16xf32> to vector<4x16xf32>
    %cst_496 = arith.constant dense<0.000000e+00> : vector<8x16xf32>
    %496 = tpu.matmul %493, %495, %cst_496 {dimension_numbers = #tpu.dot_dimension_numbers<[1], [0], [0], [1], [0, 0, 1, 1], [], []>} : vector<8x4xf32>, vector<4x16xf32>, vector<8x16xf32> -> vector<8x16xf32>
    %497 = arith.addf %491, %496 : vector<8x16xf32>
    %c7_497 = arith.constant 7 : index
    %c0_498 = arith.constant 0 : index
    %c0_499 = arith.constant 0 : index
    %498 = vector.load %arg3[%c7_497, %c0_498, %c0_499] : memref<9x8x4xf32, #tpu.memory_space<vmem>>, vector<1x8x4xf32>
    %499 = vector.shape_cast %498 : vector<1x8x4xf32> to vector<8x4xf32>
    %c0_500 = arith.constant 0 : index
    %c8_501 = arith.constant 8 : index
    %c1_502 = arith.constant 1 : index
    %500 = vector.load %arg6[%c0_500, %c8_501, %c1_502] : memref<4x10x18xf32, #tpu.memory_space<vmem>>, vector<4x1x16xf32>
    %501 = vector.shape_cast %500 : vector<4x1x16xf32> to vector<4x16xf32>
    %cst_503 = arith.constant dense<0.000000e+00> : vector<8x16xf32>
    %502 = tpu.matmul %499, %501, %cst_503 {dimension_numbers = #tpu.dot_dimension_numbers<[1], [0], [0], [1], [0, 0, 1, 1], [], []>} : vector<8x4xf32>, vector<4x16xf32>, vector<8x16xf32> -> vector<8x16xf32>
    %503 = arith.addf %497, %502 : vector<8x16xf32>
    %c8_504 = arith.constant 8 : index
    %c0_505 = arith.constant 0 : index
    %c0_506 = arith.constant 0 : index
    %504 = vector.load %arg3[%c8_504, %c0_505, %c0_506] : memref<9x8x4xf32, #tpu.memory_space<vmem>>, vector<1x8x4xf32>
    %505 = vector.shape_cast %504 : vector<1x8x4xf32> to vector<8x4xf32>
    %c0_507 = arith.constant 0 : index
    %c8_508 = arith.constant 8 : index
    %c2_509 = arith.constant 2 : index
    %506 = vector.load %arg6[%c0_507, %c8_508, %c2_509] : memref<4x10x18xf32, #tpu.memory_space<vmem>>, vector<4x1x16xf32>
    %507 = vector.shape_cast %506 : vector<4x1x16xf32> to vector<4x16xf32>
    %cst_510 = arith.constant dense<0.000000e+00> : vector<8x16xf32>
    %508 = tpu.matmul %505, %507, %cst_510 {dimension_numbers = #tpu.dot_dimension_numbers<[1], [0], [0], [1], [0, 0, 1, 1], [], []>} : vector<8x4xf32>, vector<4x16xf32>, vector<8x16xf32> -> vector<8x16xf32>
    %509 = arith.addf %503, %508 : vector<8x16xf32>
    %510 = vector.broadcast %64 : vector<8x1xf32> to vector<8x16xf32>
    %511 = arith.addf %509, %510 : vector<8x16xf32>
    %cst_511 = arith.constant 0.000000e+00 : f32
    %512 = vector.broadcast %cst_511 : f32 to vector<8x16xf32>
    %513 = arith.cmpf oge, %511, %512 : vector<8x16xf32>
    %cst_512 = arith.constant 1.000000e-01 : f32
    %514 = vector.broadcast %cst_512 : f32 to vector<8x16xf32>
    %515 = arith.mulf %514, %511 : vector<8x16xf32>
    %516 = arith.select %513, %511, %515 : vector<8x16xi1>, vector<8x16xf32>
    %c0_513 = arith.constant 0 : index
    %c0_514 = arith.constant 0 : index
    %c6_515 = arith.constant 6 : index
    %c0_516 = arith.constant 0 : index
    %517 = vector.load %arg5[%c0_513, %c0_514, %c6_515, %c0_516] : memref<1x8x8x16xf32, #tpu.memory_space<vmem>>, vector<1x8x1x16xf32>
    %518 = vector.shape_cast %517 : vector<1x8x1x16xf32> to vector<8x16xf32>
    %519 = vector.shape_cast %516 : vector<8x16xf32> to vector<1x8x1x16xf32>
    tpu.vector_store %arg5[%c0_513, %c0_514, %c6_515, %c0_516], %519 {strides = array<i32>} : memref<1x8x8x16xf32, #tpu.memory_space<vmem>>, vector<1x8x1x16xf32>,
    %cst_517 = arith.constant 0.000000e+00 : f32
    %520 = vector.broadcast %cst_517 : f32 to vector<8x16xf32>
    %c0_518 = arith.constant 0 : index
    %c0_519 = arith.constant 0 : index
    %c0_520 = arith.constant 0 : index
    %521 = vector.load %arg3[%c0_518, %c0_519, %c0_520] : memref<9x8x4xf32, #tpu.memory_space<vmem>>, vector<1x8x4xf32>
    %522 = vector.shape_cast %521 : vector<1x8x4xf32> to vector<8x4xf32>
    %c0_521 = arith.constant 0 : index
    %c7_522 = arith.constant 7 : index
    %c0_523 = arith.constant 0 : index
    %523 = vector.load %arg6[%c0_521, %c7_522, %c0_523] : memref<4x10x18xf32, #tpu.memory_space<vmem>>, vector<4x1x16xf32>
    %524 = vector.shape_cast %523 : vector<4x1x16xf32> to vector<4x16xf32>
    %cst_524 = arith.constant dense<0.000000e+00> : vector<8x16xf32>
    %525 = tpu.matmul %522, %524, %cst_524 {dimension_numbers = #tpu.dot_dimension_numbers<[1], [0], [0], [1], [0, 0, 1, 1], [], []>} : vector<8x4xf32>, vector<4x16xf32>, vector<8x16xf32> -> vector<8x16xf32>
    %526 = arith.addf %520, %525 : vector<8x16xf32>
    %c1_525 = arith.constant 1 : index
    %c0_526 = arith.constant 0 : index
    %c0_527 = arith.constant 0 : index
    %527 = vector.load %arg3[%c1_525, %c0_526, %c0_527] : memref<9x8x4xf32, #tpu.memory_space<vmem>>, vector<1x8x4xf32>
    %528 = vector.shape_cast %527 : vector<1x8x4xf32> to vector<8x4xf32>
    %c0_528 = arith.constant 0 : index
    %c7_529 = arith.constant 7 : index
    %c1_530 = arith.constant 1 : index
    %529 = vector.load %arg6[%c0_528, %c7_529, %c1_530] : memref<4x10x18xf32, #tpu.memory_space<vmem>>, vector<4x1x16xf32>
    %530 = vector.shape_cast %529 : vector<4x1x16xf32> to vector<4x16xf32>
    %cst_531 = arith.constant dense<0.000000e+00> : vector<8x16xf32>
    %531 = tpu.matmul %528, %530, %cst_531 {dimension_numbers = #tpu.dot_dimension_numbers<[1], [0], [0], [1], [0, 0, 1, 1], [], []>} : vector<8x4xf32>, vector<4x16xf32>, vector<8x16xf32> -> vector<8x16xf32>
    %532 = arith.addf %526, %531 : vector<8x16xf32>
    %c2_532 = arith.constant 2 : index
    %c0_533 = arith.constant 0 : index
    %c0_534 = arith.constant 0 : index
    %533 = vector.load %arg3[%c2_532, %c0_533, %c0_534] : memref<9x8x4xf32, #tpu.memory_space<vmem>>, vector<1x8x4xf32>
    %534 = vector.shape_cast %533 : vector<1x8x4xf32> to vector<8x4xf32>
    %c0_535 = arith.constant 0 : index
    %c7_536 = arith.constant 7 : index
    %c2_537 = arith.constant 2 : index
    %535 = vector.load %arg6[%c0_535, %c7_536, %c2_537] : memref<4x10x18xf32, #tpu.memory_space<vmem>>, vector<4x1x16xf32>
    %536 = vector.shape_cast %535 : vector<4x1x16xf32> to vector<4x16xf32>
    %cst_538 = arith.constant dense<0.000000e+00> : vector<8x16xf32>
    %537 = tpu.matmul %534, %536, %cst_538 {dimension_numbers = #tpu.dot_dimension_numbers<[1], [0], [0], [1], [0, 0, 1, 1], [], []>} : vector<8x4xf32>, vector<4x16xf32>, vector<8x16xf32> -> vector<8x16xf32>
    %538 = arith.addf %532, %537 : vector<8x16xf32>
    %c3_539 = arith.constant 3 : index
    %c0_540 = arith.constant 0 : index
    %c0_541 = arith.constant 0 : index
    %539 = vector.load %arg3[%c3_539, %c0_540, %c0_541] : memref<9x8x4xf32, #tpu.memory_space<vmem>>, vector<1x8x4xf32>
    %540 = vector.shape_cast %539 : vector<1x8x4xf32> to vector<8x4xf32>
    %c0_542 = arith.constant 0 : index
    %c8_543 = arith.constant 8 : index
    %c0_544 = arith.constant 0 : index
    %541 = vector.load %arg6[%c0_542, %c8_543, %c0_544] : memref<4x10x18xf32, #tpu.memory_space<vmem>>, vector<4x1x16xf32>
    %542 = vector.shape_cast %541 : vector<4x1x16xf32> to vector<4x16xf32>
    %cst_545 = arith.constant dense<0.000000e+00> : vector<8x16xf32>
    %543 = tpu.matmul %540, %542, %cst_545 {dimension_numbers = #tpu.dot_dimension_numbers<[1], [0], [0], [1], [0, 0, 1, 1], [], []>} : vector<8x4xf32>, vector<4x16xf32>, vector<8x16xf32> -> vector<8x16xf32>
    %544 = arith.addf %538, %543 : vector<8x16xf32>
    %c4_546 = arith.constant 4 : index
    %c0_547 = arith.constant 0 : index
    %c0_548 = arith.constant 0 : index
    %545 = vector.load %arg3[%c4_546, %c0_547, %c0_548] : memref<9x8x4xf32, #tpu.memory_space<vmem>>, vector<1x8x4xf32>
    %546 = vector.shape_cast %545 : vector<1x8x4xf32> to vector<8x4xf32>
    %c0_549 = arith.constant 0 : index
    %c8_550 = arith.constant 8 : index
    %c1_551 = arith.constant 1 : index
    %547 = vector.load %arg6[%c0_549, %c8_550, %c1_551] : memref<4x10x18xf32, #tpu.memory_space<vmem>>, vector<4x1x16xf32>
    %548 = vector.shape_cast %547 : vector<4x1x16xf32> to vector<4x16xf32>
    %cst_552 = arith.constant dense<0.000000e+00> : vector<8x16xf32>
    %549 = tpu.matmul %546, %548, %cst_552 {dimension_numbers = #tpu.dot_dimension_numbers<[1], [0], [0], [1], [0, 0, 1, 1], [], []>} : vector<8x4xf32>, vector<4x16xf32>, vector<8x16xf32> -> vector<8x16xf32>
    %550 = arith.addf %544, %549 : vector<8x16xf32>
    %c5_553 = arith.constant 5 : index
    %c0_554 = arith.constant 0 : index
    %c0_555 = arith.constant 0 : index
    %551 = vector.load %arg3[%c5_553, %c0_554, %c0_555] : memref<9x8x4xf32, #tpu.memory_space<vmem>>, vector<1x8x4xf32>
    %552 = vector.shape_cast %551 : vector<1x8x4xf32> to vector<8x4xf32>
    %c0_556 = arith.constant 0 : index
    %c8_557 = arith.constant 8 : index
    %c2_558 = arith.constant 2 : index
    %553 = vector.load %arg6[%c0_556, %c8_557, %c2_558] : memref<4x10x18xf32, #tpu.memory_space<vmem>>, vector<4x1x16xf32>
    %554 = vector.shape_cast %553 : vector<4x1x16xf32> to vector<4x16xf32>
    %cst_559 = arith.constant dense<0.000000e+00> : vector<8x16xf32>
    %555 = tpu.matmul %552, %554, %cst_559 {dimension_numbers = #tpu.dot_dimension_numbers<[1], [0], [0], [1], [0, 0, 1, 1], [], []>} : vector<8x4xf32>, vector<4x16xf32>, vector<8x16xf32> -> vector<8x16xf32>
    %556 = arith.addf %550, %555 : vector<8x16xf32>
    %c6_560 = arith.constant 6 : index
    %c0_561 = arith.constant 0 : index
    %c0_562 = arith.constant 0 : index
    %557 = vector.load %arg3[%c6_560, %c0_561, %c0_562] : memref<9x8x4xf32, #tpu.memory_space<vmem>>, vector<1x8x4xf32>
    %558 = vector.shape_cast %557 : vector<1x8x4xf32> to vector<8x4xf32>
    %c0_563 = arith.constant 0 : index
    %c9 = arith.constant 9 : index
    %c0_564 = arith.constant 0 : index
    %559 = vector.load %arg6[%c0_563, %c9, %c0_564] : memref<4x10x18xf32, #tpu.memory_space<vmem>>, vector<4x1x16xf32>
    %560 = vector.shape_cast %559 : vector<4x1x16xf32> to vector<4x16xf32>
    %cst_565 = arith.constant dense<0.000000e+00> : vector<8x16xf32>
    %561 = tpu.matmul %558, %560, %cst_565 {dimension_numbers = #tpu.dot_dimension_numbers<[1], [0], [0], [1], [0, 0, 1, 1], [], []>} : vector<8x4xf32>, vector<4x16xf32>, vector<8x16xf32> -> vector<8x16xf32>
    %562 = arith.addf %556, %561 : vector<8x16xf32>
    %c7_566 = arith.constant 7 : index
    %c0_567 = arith.constant 0 : index
    %c0_568 = arith.constant 0 : index
    %563 = vector.load %arg3[%c7_566, %c0_567, %c0_568] : memref<9x8x4xf32, #tpu.memory_space<vmem>>, vector<1x8x4xf32>
    %564 = vector.shape_cast %563 : vector<1x8x4xf32> to vector<8x4xf32>
    %c0_569 = arith.constant 0 : index
    %c9_570 = arith.constant 9 : index
    %c1_571 = arith.constant 1 : index
    %565 = vector.load %arg6[%c0_569, %c9_570, %c1_571] : memref<4x10x18xf32, #tpu.memory_space<vmem>>, vector<4x1x16xf32>
    %566 = vector.shape_cast %565 : vector<4x1x16xf32> to vector<4x16xf32>
    %cst_572 = arith.constant dense<0.000000e+00> : vector<8x16xf32>
    %567 = tpu.matmul %564, %566, %cst_572 {dimension_numbers = #tpu.dot_dimension_numbers<[1], [0], [0], [1], [0, 0, 1, 1], [], []>} : vector<8x4xf32>, vector<4x16xf32>, vector<8x16xf32> -> vector<8x16xf32>
    %568 = arith.addf %562, %567 : vector<8x16xf32>
    %c8_573 = arith.constant 8 : index
    %c0_574 = arith.constant 0 : index
    %c0_575 = arith.constant 0 : index
    %569 = vector.load %arg3[%c8_573, %c0_574, %c0_575] : memref<9x8x4xf32, #tpu.memory_space<vmem>>, vector<1x8x4xf32>
    %570 = vector.shape_cast %569 : vector<1x8x4xf32> to vector<8x4xf32>
    %c0_576 = arith.constant 0 : index
    %c9_577 = arith.constant 9 : index
    %c2_578 = arith.constant 2 : index
    %571 = vector.load %arg6[%c0_576, %c9_577, %c2_578] : memref<4x10x18xf32, #tpu.memory_space<vmem>>, vector<4x1x16xf32>
    %572 = vector.shape_cast %571 : vector<4x1x16xf32> to vector<4x16xf32>
    %cst_579 = arith.constant dense<0.000000e+00> : vector<8x16xf32>
    %573 = tpu.matmul %570, %572, %cst_579 {dimension_numbers = #tpu.dot_dimension_numbers<[1], [0], [0], [1], [0, 0, 1, 1], [], []>} : vector<8x4xf32>, vector<4x16xf32>, vector<8x16xf32> -> vector<8x16xf32>
    %574 = arith.addf %568, %573 : vector<8x16xf32>
    %575 = vector.broadcast %64 : vector<8x1xf32> to vector<8x16xf32>
    %576 = arith.addf %574, %575 : vector<8x16xf32>
    %cst_580 = arith.constant 0.000000e+00 : f32
    %577 = vector.broadcast %cst_580 : f32 to vector<8x16xf32>
    %578 = arith.cmpf oge, %576, %577 : vector<8x16xf32>
    %cst_581 = arith.constant 1.000000e-01 : f32
    %579 = vector.broadcast %cst_581 : f32 to vector<8x16xf32>
    %580 = arith.mulf %579, %576 : vector<8x16xf32>
    %581 = arith.select %578, %576, %580 : vector<8x16xi1>, vector<8x16xf32>
    %c0_582 = arith.constant 0 : index
    %c0_583 = arith.constant 0 : index
    %c7_584 = arith.constant 7 : index
    %c0_585 = arith.constant 0 : index
    %582 = vector.load %arg5[%c0_582, %c0_583, %c7_584, %c0_585] : memref<1x8x8x16xf32, #tpu.memory_space<vmem>>, vector<1x8x1x16xf32>
    %583 = vector.shape_cast %582 : vector<1x8x1x16xf32> to vector<8x16xf32>
    %584 = vector.shape_cast %581 : vector<8x16xf32> to vector<1x8x1x16xf32>
    tpu.vector_store %arg5[%c0_582, %c0_583, %c7_584, %c0_585], %584 {strides = array<i32>} : memref<1x8x8x16xf32, #tpu.memory_space<vmem>>, vector<1x8x1x16xf32>,
    return
  }
  func.func @transform_0(%arg0: i32, %arg1: i32) -> (i32, i32, i32, i32) {
    %c0_i32 = arith.constant 0 : i32
    %c0_i32_0 = arith.constant 0 : i32
    %c0_i32_1 = arith.constant 0 : i32
    %c0_i32_2 = arith.constant 0 : i32
    return %arg0, %c0_i32, %c0_i32_0, %c0_i32_1 : i32, i32, i32, i32
  }
  func.func @transform_1(%arg0: i32, %arg1: i32) -> (i32, i32, i32) {
    %c0_i32 = arith.constant 0 : i32
    %c0_i32_0 = arith.constant 0 : i32
    %c0_i32_1 = arith.constant 0 : i32
    %c0_i32_2 = arith.constant 0 : i32
    return %c0_i32, %c0_i32_0, %c0_i32_1 : i32, i32, i32
  }
  func.func @transform_2(%arg0: i32, %arg1: i32) -> (i32, i32) {
    %c0_i32 = arith.constant 0 : i32
    %c0_i32_0 = arith.constant 0 : i32
    %c0_i32_1 = arith.constant 0 : i32
    return %c0_i32, %c0_i32_0 : i32, i32
  }
  func.func @transform_3(%arg0: i32, %arg1: i32) -> (i32, i32, i32, i32) {
    %c0_i32 = arith.constant 0 : i32
    %c0_i32_0 = arith.constant 0 : i32
    %c0_i32_1 = arith.constant 0 : i32
    return %arg0, %c0_i32, %arg1, %c0_i32_0 : i32, i32, i32, i32
  }
}

</mosaic_0001>

<bundles_post_ra>
// kernel: conv2d_unit_forward.1
= control target key start
LH: loop header
LB: loop body
LE: loop exit
PB: predicated region body
PF: predicated region fallthrough
CT: control target
= control target key end

     0   :  { %8 = vsyncpa [#allocation4], 0  ;;  %s9306_s0 = inlined_call_operand.vmem [shape: f32[2,4,16,16], index: 0, kind: input, shape index: {}]   ;;  %s9307_s1 = inlined_call_operand.vmem [shape: f32[9,8,4], index: 1, kind: input, shape index: {}]   ;;  %s9308_s2 = inlined_call_operand.vmem [shape: f32[8,1], index: 2, kind: input, shape index: {}]   ;;  %s9309_s3 = inlined_call_operand.hbm [shape: f32[2,8,16,16], index: 3, kind: output, shape index: {}]  }
   0x1   :  { %10 = vsyncpa [#allocation4 + $0x1], 0  ;;  %s8184_s12 = smov 0   ;;  %s8186_s13 = smov 0  }
   0x2   :  { %s8188_s14 = smov 0   ;;  %s8190_s15 = smov 0  }
   0x3   :  { %s8192_s16 = smov 0   ;;  %s8194_s17 = smov 0  }
   0x4   :  { %s8196_s18 = smov 0   ;;  %s8198_s19 = smov 0  }
   0x5 LB: > { %s7183_s20 = sadd.s32 4294967295, %s8142_s19   ;;  %s7184_s21 = sadd.s32 4294967294, %s8142_s19   ;;  %s8142_s19 = sphi %s8198_s19, %s16_s19   ;;  %s8138_s18 = sphi %s8196_s18, %s9318_s18   ;;  %s8134_s17 = sphi %s8194_s17, %s9317_s17   ;;  %s8130_s16 = sphi %s8192_s16, %s9316_s16   ;;  %s8126_s15 = sphi %s8190_s15, %s9315_s15   ;;  %s8122_s14 = sphi %s8188_s14, %s9314_s14   ;;  %s8118_s13 = sphi %s8186_s13, %s9313_s13   ;;  %s8114_s12 = sphi %s8184_s12, %s9312_s12  }
   0x6   : > { %s25_s22 = sadd.s32 1, %s8134_s17  ;;  %s28_s23 = sadd.s32 1, %s8138_s18 }
   0x7   : > { %p26_p0 = scmp.ge.s32.totalorder %s25_s22, 2  ;;  %p115_p1 = scmp.ne.s32.totalorder %s8122_s14, %s8118_s13 }
   0x8   : > { %p116_p2 = scmp.eq.s32.totalorder %s7183_s20, 3  ;;  %p121_p5 = scmp.ne.s32.totalorder %s8118_s13, %s8114_s12 }
   0x9   : > { %s9320_s22 = smov (%p26_p0, %s25_s22), 0  ;;  %s9322_s23 = smov (!%p26_p0, %s28_s23), %s8138_s18 }
   0xa   : > { %s101_s24 = ssub.s32 %s8134_s17, %s9320_s22  ;;  %p8235_p3 = por %p116_p2, %p115_p1 }
   0xb   : > { %p30_p4 = scmp.ge.s32.totalorder %s9322_s23, 2  ;;  %p122_p6 = scmp.eq.s32.totalorder %s7184_s21, 3 }
   0xc   : > { %p7187_p7 = scmp.ge.s32.totalorder %s8142_s19, 1  ;;  %p154_p9 = scmp.lt.s32.totalorder %s8142_s19, 5 }
   0xd   : > { %s9324_s23 = smov (%p30_p4, %s9322_s23), 0  ;;  %p8244_p8 = por %p122_p6, %p121_p5 }
   0xe   : > { %s100_s27 = ssub.s32 %s8138_s18, %s9324_s23  ;;  %s105_s28 = sadd.s32 1, %s8122_s14 }
   0xf   : > { %s102_s29 = sor.u32 %s101_s24, %s100_s27  ;;  %p155_p10 = pnand %p7187_p7, %p154_p9 }
  0x10   : > { %p103_p11 = scmp.eq.s32.totalorder %s102_s29, 0  ;;  %s175_s4 = sand.u32 (!%p155_p10), 1, %s8118_s13   ;;  %vm184_vm0 = vcmask (!%p155_p10), 146432   ;;  %vm186_vm1 = vcmask (!%p155_p10), 140288   ;;  %v8144_v0 = vmov (!%p155_p10), 0.0  }
  0x11   : > { %158 = sbr.rel (%p155_p10) target bundleno = 1803 (0x70b), region = 32  ;;  %p178_p12 = scmp.lt.s32.totalorder (!%p155_p10), %s8130_s16, 1  ;;  %185 = vst.msk [vmem:[#allocation2] sm:$0xff] (!%p155_p10), %vm184_vm0, %v8144_v0  ;;  %188 = vst.msk [vmem:[#allocation2 + $0x10] sm:$0xff] (!%p155_p10), %vm184_vm0, %v8144_v0 }
  0x12   : > { %s8253_s30 = scalar_select %p103_p11, %s8122_s14, %s105_s28  }
  0x13   : > { %s7188_s5 = sshll.u32 (!%p155_p10), %s175_s4, 6  ;;  %s8260_s6 = sshll.u32 (!%p155_p10), %s8126_s15, 3  ;;  %190 = vst.msk [vmem:[#allocation2 + $0x20] sm:$0xff] (!%p155_p10), %vm184_vm0, %v8144_v0  ;;  %192 = vst.msk [vmem:[#allocation2 + $0x30] sm:$0xff] (!%p155_p10), %vm184_vm0, %v8144_v0 }
  0x14   : > { %187 = vst.msk [vmem:[#allocation2 + $0x8] sm:$0x3] (!%p155_p10), %vm186_vm1, %v8144_v0  ;;  %189 = vst.msk [vmem:[#allocation2 + $0x18] sm:$0x3] (!%p155_p10), %vm186_vm1, %v8144_v0  ;;  %p194_p13 = scmp.ge.s32.totalorder (!%p155_p10), %s8260_s6, 1  ;;  %p195_p0 = scmp.lt.s32.totalorder (!%p155_p10), %s8260_s6, 17 }
  0x15   : > { %191 = vst.msk [vmem:[#allocation2 + $0x28] sm:$0x3] (!%p155_p10), %vm186_vm1, %v8144_v0  ;;  %193 = vst.msk [vmem:[#allocation2 + $0x38] sm:$0x3] (!%p155_p10), %vm186_vm1, %v8144_v0  ;;  %s8280_s20 = scalar_lea.vmem (!%p155_p10), [#allocation3], %s7188_s5 }
  0x16   : > { %p196_p1 = pnand (!%p155_p10), %p195_p0, %p194_p13 }
  0x18   : > { %s179_s7 = scalar_select %p178_p12, %s8130_s16, 1 }
  0x19   : > { %199 = sbr.rel (%p196_p1) target bundleno = 151 (0x97), region = 36  ;;  %s8145_s24 = smov (!%p196_p1), 1   ;;  %vm222_vm2 = vcmask (!%p196_p1), 131080  }
  0x1a   : > { %s7450_s8 = sshll.u32 %s179_s7, 6 }
  0x1b   : > { %s8278_s11 = scalar_lea.vmem %s9306_s0, %s7450_s8 }
  0x1c   : > { %s7113_s21 = scalar_lea.vmem (!%p196_p1), %s8278_s11, %s8260_s6 }
  0x1d   : > { %v7195_v1 = vld [vmem:[%s7113_s21 + $0x1f] sm:$0x1] (!%p196_p1)  ;;  %v7196_v3 = vld [vmem:[%s7113_s21 + $0x2f] sm:$0x1] (!%p196_p1) }
  0x1e   : > { %v7193_v2 = vld [vmem:[%s7113_s21 - $0x1] sm:$0x1] (!%p196_p1)  ;;  %214 = vrot.lane.b32.xlu1 (!%p196_p1), %v7195_v1, %s8145_s24  ;;  %v7194_v4 = vld [vmem:[%s7113_s21 + $0xf] sm:$0x1] (!%p196_p1) }
  0x1f   : > { %210 = vrot.lane.b32.xlu0 (!%p196_p1), %v7193_v2, %s8145_s24 }
  0x22   : > { %216 = vrot.lane.b32.xlu1 %v7196_v3, %s8145_s24 }
  0x23   : > { %212 = vrot.lane.b32.xlu0 %v7194_v4, %s8145_s24 }
  0x90   : > { %v215_v5 = vpop.permute.xlu1 %214 }
  0x91   : > { %v211_v6 = vpop.permute.xlu0 %210  ;;  %225 = vst.msk [vmem:[#allocation2 + $0x20] sm:$0x1] %vm222_vm2, %v215_v5 }
  0x92   : > { %223 = vst.msk [vmem:[#allocation2] sm:$0x1] %vm222_vm2, %v211_v6 }
  0x94   : > { %v217_v7 = vpop.permute.xlu1 %216 }
  0x95   : > { %v213_v8 = vpop.permute.xlu0 %212  ;;  %226 = vst.msk [vmem:[#allocation2 + $0x30] sm:$0x1] %vm222_vm2, %v217_v7 }
  0x96   : > { %224 = vst.msk [vmem:[#allocation2 + $0x10] sm:$0x1] %vm222_vm2, %v213_v8 }
  0x97 PF: > { %s227_s27 = sadd.s32 1, %s8260_s6 }
  0x98   : > { %p228_p2 = scmp.ge.s32.totalorder %s227_s27, 1  ;;  %p229_p4 = scmp.lt.s32.totalorder %s227_s27, 17 }
  0x9a   : > { %p230_p5 = pnand %p229_p4, %p228_p2 }
  0x9b   : > { %s234_s28 = scalar_lea.vmem (!%p230_p5), %s8278_s11, %s8260_s6  ;;  %s8146_s29 = smov (!%p230_p5), 1   ;;  %vm255_vm3 = vcmask (!%p230_p5), 131080  }
  0x9c   : > { %233 = sbr.rel (%p230_p5) target bundleno = 278 (0x116), region = 40  ;;  %v237_v9 = vld [vmem:[%s234_s28 + $0x20] sm:$0x1] (!%p230_p5)  ;;  %v238_v11 = vld [vmem:[%s234_s28 + $0x30] sm:$0x1] (!%p230_p5) }
  0x9d   : > { %v235_v10 = vld [vmem:[%s234_s28] sm:$0x1] (!%p230_p5)  ;;  %247 = vrot.lane.b32.xlu1 (!%p230_p5), %v237_v9, %s8146_s29  ;;  %v236_v12 = vld [vmem:[%s234_s28 + $0x10] sm:$0x1] (!%p230_p5) }
  0x9e   : > { %243 = vrot.lane.b32.xlu0 (!%p230_p5), %v235_v10, %s8146_s29 }
  0xa1   : > { %249 = vrot.lane.b32.xlu1 (!%p230_p5), %v238_v11, %s8146_s29 }
  0xa2   : > { %245 = vrot.lane.b32.xlu0 (!%p230_p5), %v236_v12, %s8146_s29 }
 0x10f   : > { %v248_v13 = vpop.permute.xlu1 %247 }
 0x110   : > { %v244_v14 = vpop.permute.xlu0 %243  ;;  %258 = vst.msk [vmem:[#allocation2 + $0x21] sm:$0x1] %vm255_vm3, %v248_v13 }
 0x111   : > { %256 = vst.msk [vmem:[#allocation2 + $0x1] sm:$0x1] %vm255_vm3, %v244_v14 }
 0x113   : > { %v250_v15 = vpop.permute.xlu1 %249 }
 0x114   : > { %v246_v16 = vpop.permute.xlu0 %245  ;;  %259 = vst.msk [vmem:[#allocation2 + $0x31] sm:$0x1] %vm255_vm3, %v250_v15 }
 0x115   : > { %257 = vst.msk [vmem:[#allocation2 + $0x11] sm:$0x1] %vm255_vm3, %v246_v16 }
 0x116 PF: > { %s260_s5 = sadd.s32 2, %s8260_s6 }
 0x117   : > { %p261_p6 = scmp.ge.s32.totalorder %s260_s5, 1  ;;  %p262_p7 = scmp.lt.s32.totalorder %s260_s5, 17 }
 0x119   : > { %p263_p9 = pnand %p262_p7, %p261_p6 }
 0x11a   : > { %s7118_s7 = scalar_lea.vmem (!%p263_p9), %s8278_s11, %s8260_s6  ;;  %s8147_s8 = smov (!%p263_p9), 1   ;;  %vm288_vm4 = vcmask (!%p263_p9), 131080  }
 0x11b   : > { %266 = sbr.rel (%p263_p9) target bundleno = 405 (0x195), region = 44  ;;  %v7200_v17 = vld [vmem:[%s7118_s7 + $0x21] sm:$0x1] (!%p263_p9)  ;;  %v7201_v19 = vld [vmem:[%s7118_s7 + $0x31] sm:$0x1] (!%p263_p9) }
 0x11c   : > { %v7198_v18 = vld [vmem:[%s7118_s7 + $0x1] sm:$0x1] (!%p263_p9)  ;;  %280 = vrot.lane.b32.xlu1 (!%p263_p9), %v7200_v17, %s8147_s8  ;;  %v7199_v20 = vld [vmem:[%s7118_s7 + $0x11] sm:$0x1] (!%p263_p9) }
 0x11d   : > { %276 = vrot.lane.b32.xlu0 (!%p263_p9), %v7198_v18, %s8147_s8 }
 0x120   : > { %282 = vrot.lane.b32.xlu1 (!%p263_p9), %v7201_v19, %s8147_s8 }
 0x121   : > { %278 = vrot.lane.b32.xlu0 (!%p263_p9), %v7199_v20, %s8147_s8 }
 0x18e   : > { %v281_v21 = vpop.permute.xlu1 %280 }
 0x18f   : > { %v277_v22 = vpop.permute.xlu0 %276  ;;  %291 = vst.msk [vmem:[#allocation2 + $0x22] sm:$0x1] %vm288_vm4, %v281_v21 }
 0x190   : > { %289 = vst.msk [vmem:[#allocation2 + $0x2] sm:$0x1] %vm288_vm4, %v277_v22 }
 0x192   : > { %v283_v23 = vpop.permute.xlu1 %282 }
 0x193   : > { %v279_v24 = vpop.permute.xlu0 %278  ;;  %292 = vst.msk [vmem:[#allocation2 + $0x32] sm:$0x1] %vm288_vm4, %v283_v23 }
 0x194   : > { %290 = vst.msk [vmem:[#allocation2 + $0x12] sm:$0x1] %vm288_vm4, %v279_v24 }
 0x195 PF: > { %s293_s9 = sadd.s32 3, %s8260_s6 }
 0x196   : > { %p294_p10 = scmp.ge.s32.totalorder %s293_s9, 1  ;;  %p295_p11 = scmp.lt.s32.totalorder %s293_s9, 17 }
 0x198   : > { %p296_p12 = pnand %p295_p11, %p294_p10 }
 0x199   : > { %s7121_s10 = scalar_lea.vmem (!%p296_p12), %s8278_s11, %s8260_s6  ;;  %s8148_s21 = smov (!%p296_p12), 1   ;;  %vm321_vm5 = vcmask (!%p296_p12), 131080  }
 0x19a   : > { %299 = sbr.rel (%p296_p12) target bundleno = 532 (0x214), region = 48  ;;  %v7205_v25 = vld [vmem:[%s7121_s10 + $0x22] sm:$0x1] (!%p296_p12)  ;;  %v7206_v27 = vld [vmem:[%s7121_s10 + $0x32] sm:$0x1] (!%p296_p12) }
 0x19b   : > { %v7203_v26 = vld [vmem:[%s7121_s10 + $0x2] sm:$0x1] (!%p296_p12)  ;;  %313 = vrot.lane.b32.xlu1 (!%p296_p12), %v7205_v25, %s8148_s21  ;;  %v7204_v28 = vld [vmem:[%s7121_s10 + $0x12] sm:$0x1] (!%p296_p12) }
 0x19c   : > { %309 = vrot.lane.b32.xlu0 (!%p296_p12), %v7203_v26, %s8148_s21 }
 0x19f   : > { %315 = vrot.lane.b32.xlu1 (!%p296_p12), %v7206_v27, %s8148_s21 }
 0x1a0   : > { %311 = vrot.lane.b32.xlu0 (!%p296_p12), %v7204_v28, %s8148_s21 }
 0x20d   : > { %v314_v29 = vpop.permute.xlu1 %313 }
 0x20e   : > { %v310_v30 = vpop.permute.xlu0 %309  ;;  %324 = vst.msk [vmem:[#allocation2 + $0x23] sm:$0x1] %vm321_vm5, %v314_v29 }
 0x20f   : > { %322 = vst.msk [vmem:[#allocation2 + $0x3] sm:$0x1] %vm321_vm5, %v310_v30 }
 0x211   : > { %v316_v31 = vpop.permute.xlu1 %315 }
 0x212   : > { %v312_v32 = vpop.permute.xlu0 %311  ;;  %325 = vst.msk [vmem:[#allocation2 + $0x33] sm:$0x1] %vm321_vm5, %v316_v31 }
 0x213   : > { %323 = vst.msk [vmem:[#allocation2 + $0x13] sm:$0x1] %vm321_vm5, %v312_v32 }
 0x214 PF: > { %s326_s24 = sadd.s32 4, %s8260_s6 }
 0x215   : > { %p327_p13 = scmp.ge.s32.totalorder %s326_s24, 1  ;;  %p328_p0 = scmp.lt.s32.totalorder %s326_s24, 17 }
 0x217   : > { %p329_p1 = pnand %p328_p0, %p327_p13 }
 0x218   : > { %s7124_s27 = scalar_lea.vmem (!%p329_p1), %s8278_s11, %s8260_s6  ;;  %s8149_s28 = smov (!%p329_p1), 1   ;;  %vm354_vm6 = vcmask (!%p329_p1), 131080  }
 0x219   : > { %332 = sbr.rel (%p329_p1) target bundleno = 659 (0x293), region = 52  ;;  %v7210_v33 = vld [vmem:[%s7124_s27 + $0x23] sm:$0x1] (!%p329_p1)  ;;  %v7211_v35 = vld [vmem:[%s7124_s27 + $0x33] sm:$0x1] (!%p329_p1) }
 0x21a   : > { %v7208_v34 = vld [vmem:[%s7124_s27 + $0x3] sm:$0x1] (!%p329_p1)  ;;  %346 = vrot.lane.b32.xlu1 (!%p329_p1), %v7210_v33, %s8149_s28  ;;  %v7209_v36 = vld [vmem:[%s7124_s27 + $0x13] sm:$0x1] (!%p329_p1) }
 0x21b   : > { %342 = vrot.lane.b32.xlu0 (!%p329_p1), %v7208_v34, %s8149_s28 }
 0x21e   : > { %348 = vrot.lane.b32.xlu1 (!%p329_p1), %v7211_v35, %s8149_s28 }
 0x21f   : > { %344 = vrot.lane.b32.xlu0 (!%p329_p1), %v7209_v36, %s8149_s28 }
 0x28c   : > { %v347_v37 = vpop.permute.xlu1 %346 }
 0x28d   : > { %v343_v38 = vpop.permute.xlu0 %342  ;;  %357 = vst.msk [vmem:[#allocation2 + $0x24] sm:$0x1] %vm354_vm6, %v347_v37 }
 0x28e   : > { %355 = vst.msk [vmem:[#allocation2 + $0x4] sm:$0x1] %vm354_vm6, %v343_v38 }
 0x290   : > { %v349_v39 = vpop.permute.xlu1 %348 }
 0x291   : > { %v345_v40 = vpop.permute.xlu0 %344  ;;  %358 = vst.msk [vmem:[#allocation2 + $0x34] sm:$0x1] %vm354_vm6, %v349_v39 }
 0x292   : > { %356 = vst.msk [vmem:[#allocation2 + $0x14] sm:$0x1] %vm354_vm6, %v345_v40 }
 0x293 PF: > { %s359_s29 = sadd.s32 5, %s8260_s6 }
 0x294   : > { %p360_p2 = scmp.ge.s32.totalorder %s359_s29, 1  ;;  %p361_p4 = scmp.lt.s32.totalorder %s359_s29, 17 }
 0x296   : > { %p362_p5 = pnand %p361_p4, %p360_p2 }
 0x297   : > { %s7127_s5 = scalar_lea.vmem (!%p362_p5), %s8278_s11, %s8260_s6  ;;  %s8150_s7 = smov (!%p362_p5), 1   ;;  %vm387_vm7 = vcmask (!%p362_p5), 131080  }
 0x298   : > { %365 = sbr.rel (%p362_p5) target bundleno = 786 (0x312), region = 56  ;;  %v7215_v41 = vld [vmem:[%s7127_s5 + $0x24] sm:$0x1] (!%p362_p5)  ;;  %v7216_v43 = vld [vmem:[%s7127_s5 + $0x34] sm:$0x1] (!%p362_p5) }
 0x299   : > { %v7213_v42 = vld [vmem:[%s7127_s5 + $0x4] sm:$0x1] (!%p362_p5)  ;;  %379 = vrot.lane.b32.xlu1 (!%p362_p5), %v7215_v41, %s8150_s7  ;;  %v7214_v44 = vld [vmem:[%s7127_s5 + $0x14] sm:$0x1] (!%p362_p5) }
 0x29a   : > { %375 = vrot.lane.b32.xlu0 (!%p362_p5), %v7213_v42, %s8150_s7 }
 0x29d   : > { %381 = vrot.lane.b32.xlu1 (!%p362_p5), %v7216_v43, %s8150_s7 }
 0x29e   : > { %377 = vrot.lane.b32.xlu0 (!%p362_p5), %v7214_v44, %s8150_s7 }
 0x30b   : > { %v380_v45 = vpop.permute.xlu1 %379 }
 0x30c   : > { %v376_v46 = vpop.permute.xlu0 %375  ;;  %390 = vst.msk [vmem:[#allocation2 + $0x25] sm:$0x1] %vm387_vm7, %v380_v45 }
 0x30d   : > { %388 = vst.msk [vmem:[#allocation2 + $0x5] sm:$0x1] %vm387_vm7, %v376_v46 }
 0x30f   : > { %v382_v47 = vpop.permute.xlu1 %381 }
 0x310   : > { %v378_v48 = vpop.permute.xlu0 %377  ;;  %391 = vst.msk [vmem:[#allocation2 + $0x35] sm:$0x1] %vm387_vm7, %v382_v47 }
 0x311   : > { %389 = vst.msk [vmem:[#allocation2 + $0x15] sm:$0x1] %vm387_vm7, %v378_v48 }
 0x312 PF: > { %s392_s8 = sadd.s32 6, %s8260_s6 }
 0x313   : > { %p393_p6 = scmp.ge.s32.totalorder %s392_s8, 1  ;;  %p394_p7 = scmp.lt.s32.totalorder %s392_s8, 17 }
 0x315   : > { %p395_p9 = pnand %p394_p7, %p393_p6 }
 0x316   : > { %s7130_s9 = scalar_lea.vmem (!%p395_p9), %s8278_s11, %s8260_s6  ;;  %s8151_s10 = smov (!%p395_p9), 1   ;;  %vm420_vm8 = vcmask (!%p395_p9), 131080  }
 0x317   : > { %398 = sbr.rel (%p395_p9) target bundleno = 913 (0x391), region = 60  ;;  %v7220_v49 = vld [vmem:[%s7130_s9 + $0x25] sm:$0x1] (!%p395_p9)  ;;  %v7221_v51 = vld [vmem:[%s7130_s9 + $0x35] sm:$0x1] (!%p395_p9) }
 0x318   : > { %v7218_v50 = vld [vmem:[%s7130_s9 + $0x5] sm:$0x1] (!%p395_p9)  ;;  %412 = vrot.lane.b32.xlu1 (!%p395_p9), %v7220_v49, %s8151_s10  ;;  %v7219_v52 = vld [vmem:[%s7130_s9 + $0x15] sm:$0x1] (!%p395_p9) }
 0x319   : > { %408 = vrot.lane.b32.xlu0 (!%p395_p9), %v7218_v50, %s8151_s10 }
 0x31c   : > { %414 = vrot.lane.b32.xlu1 (!%p395_p9), %v7221_v51, %s8151_s10 }
 0x31d   : > { %410 = vrot.lane.b32.xlu0 (!%p395_p9), %v7219_v52, %s8151_s10 }
 0x38a   : > { %v413_v53 = vpop.permute.xlu1 %412 }
 0x38b   : > { %v409_v54 = vpop.permute.xlu0 %408  ;;  %423 = vst.msk [vmem:[#allocation2 + $0x26] sm:$0x1] %vm420_vm8, %v413_v53 }
 0x38c   : > { %421 = vst.msk [vmem:[#allocation2 + $0x6] sm:$0x1] %vm420_vm8, %v409_v54 }
 0x38e   : > { %v415_v55 = vpop.permute.xlu1 %414 }
 0x38f   : > { %v411_v56 = vpop.permute.xlu0 %410  ;;  %424 = vst.msk [vmem:[#allocation2 + $0x36] sm:$0x1] %vm420_vm8, %v415_v55 }
 0x390   : > { %422 = vst.msk [vmem:[#allocation2 + $0x16] sm:$0x1] %vm420_vm8, %v411_v56 }
 0x391 PF: > { %s425_s21 = sadd.s32 7, %s8260_s6 }
 0x392   : > { %p426_p10 = scmp.ge.s32.totalorder %s425_s21, 1  ;;  %p427_p11 = scmp.lt.s32.totalorder %s425_s21, 17 }
 0x394   : > { %p428_p12 = pnand %p427_p11, %p426_p10 }
 0x395   : > { %s7133_s24 = scalar_lea.vmem (!%p428_p12), %s8278_s11, %s8260_s6  ;;  %s8152_s27 = smov (!%p428_p12), 1   ;;  %vm453_vm9 = vcmask (!%p428_p12), 131080  }
 0x396   : > { %431 = sbr.rel (%p428_p12) target bundleno = 1040 (0x410), region = 64  ;;  %v7225_v57 = vld [vmem:[%s7133_s24 + $0x26] sm:$0x1] (!%p428_p12)  ;;  %v7226_v59 = vld [vmem:[%s7133_s24 + $0x36] sm:$0x1] (!%p428_p12) }
 0x397   : > { %v7223_v58 = vld [vmem:[%s7133_s24 + $0x6] sm:$0x1] (!%p428_p12)  ;;  %445 = vrot.lane.b32.xlu1 (!%p428_p12), %v7225_v57, %s8152_s27  ;;  %v7224_v60 = vld [vmem:[%s7133_s24 + $0x16] sm:$0x1] (!%p428_p12) }
 0x398   : > { %441 = vrot.lane.b32.xlu0 (!%p428_p12), %v7223_v58, %s8152_s27 }
 0x39b   : > { %447 = vrot.lane.b32.xlu1 (!%p428_p12), %v7226_v59, %s8152_s27 }
 0x39c   : > { %443 = vrot.lane.b32.xlu0 (!%p428_p12), %v7224_v60, %s8152_s27 }
 0x409   : > { %v446_v61 = vpop.permute.xlu1 %445 }
 0x40a   : > { %v442_v62 = vpop.permute.xlu0 %441  ;;  %456 = vst.msk [vmem:[#allocation2 + $0x27] sm:$0x1] %vm453_vm9, %v446_v61 }
 0x40b   : > { %454 = vst.msk [vmem:[#allocation2 + $0x7] sm:$0x1] %vm453_vm9, %v442_v62 }
 0x40d   : > { %v448_v63 = vpop.permute.xlu1 %447 }
 0x40e   : > { %v444_v1 = vpop.permute.xlu0 %443  ;;  %457 = vst.msk [vmem:[#allocation2 + $0x37] sm:$0x1] %vm453_vm9, %v448_v63 }
 0x40f   : > { %455 = vst.msk [vmem:[#allocation2 + $0x17] sm:$0x1] %vm453_vm9, %v444_v1 }
 0x410 PF: > { %s458_s28 = sadd.s32 8, %s8260_s6 }
 0x411   : > { %p459_p13 = scmp.ge.s32.totalorder %s458_s28, 1  ;;  %p460_p0 = scmp.lt.s32.totalorder %s458_s28, 17 }
 0x413   : > { %p461_p1 = pnand %p460_p0, %p459_p13 }
 0x414   : > { %s7136_s29 = scalar_lea.vmem (!%p461_p1), %s8278_s11, %s8260_s6  ;;  %s8153_s5 = smov (!%p461_p1), 1   ;;  %vm486_vm10 = vcmask (!%p461_p1), 131080  }
 0x415   : > { %464 = sbr.rel (%p461_p1) target bundleno = 1167 (0x48f), region = 68  ;;  %v7230_v2 = vld [vmem:[%s7136_s29 + $0x27] sm:$0x1] (!%p461_p1)  ;;  %v7231_v4 = vld [vmem:[%s7136_s29 + $0x37] sm:$0x1] (!%p461_p1) }
 0x416   : > { %v7228_v3 = vld [vmem:[%s7136_s29 + $0x7] sm:$0x1] (!%p461_p1)  ;;  %478 = vrot.lane.b32.xlu1 (!%p461_p1), %v7230_v2, %s8153_s5  ;;  %v7229_v5 = vld [vmem:[%s7136_s29 + $0x17] sm:$0x1] (!%p461_p1) }
 0x417   : > { %474 = vrot.lane.b32.xlu0 (!%p461_p1), %v7228_v3, %s8153_s5 }
 0x41a   : > { %480 = vrot.lane.b32.xlu1 (!%p461_p1), %v7231_v4, %s8153_s5 }
 0x41b   : > { %476 = vrot.lane.b32.xlu0 (!%p461_p1), %v7229_v5, %s8153_s5 }
 0x488   : > { %v479_v6 = vpop.permute.xlu1 %478 }
 0x489   : > { %v475_v7 = vpop.permute.xlu0 %474  ;;  %489 = vst.msk [vmem:[#allocation2 + $0x28] sm:$0x1] %vm486_vm10, %v479_v6 }
 0x48a   : > { %487 = vst.msk [vmem:[#allocation2 + $0x8] sm:$0x1] %vm486_vm10, %v475_v7 }
 0x48c   : > { %v481_v8 = vpop.permute.xlu1 %480 }
 0x48d   : > { %v477_v9 = vpop.permute.xlu0 %476  ;;  %490 = vst.msk [vmem:[#allocation2 + $0x38] sm:$0x1] %vm486_vm10, %v481_v8 }
 0x48e   : > { %488 = vst.msk [vmem:[#allocation2 + $0x18] sm:$0x1] %vm486_vm10, %v477_v9 }
 0x48f PF: > { %s491_s7 = sadd.s32 9, %s8260_s6 }
 0x490   : > { %p492_p2 = scmp.ge.s32.totalorder %s491_s7, 1  ;;  %p493_p4 = scmp.lt.s32.totalorder %s491_s7, 17 }
 0x492   : > { %p494_p5 = pnand %p493_p4, %p492_p2 }
 0x493   : > { %s7139_s8 = scalar_lea.vmem (!%p494_p5), %s8278_s11, %s8260_s6  ;;  %s8154_s9 = smov (!%p494_p5), 1   ;;  %vm519_vm11 = vcmask (!%p494_p5), 131080  }
 0x494   : > { %497 = sbr.rel (%p494_p5) target bundleno = 1294 (0x50e), region = 72  ;;  %v7235_v10 = vld [vmem:[%s7139_s8 + $0x28] sm:$0x1] (!%p494_p5)  ;;  %v7236_v12 = vld [vmem:[%s7139_s8 + $0x38] sm:$0x1] (!%p494_p5) }
 0x495   : > { %v7233_v11 = vld [vmem:[%s7139_s8 + $0x8] sm:$0x1] (!%p494_p5)  ;;  %511 = vrot.lane.b32.xlu1 (!%p494_p5), %v7235_v10, %s8154_s9  ;;  %v7234_v13 = vld [vmem:[%s7139_s8 + $0x18] sm:$0x1] (!%p494_p5) }
 0x496   : > { %507 = vrot.lane.b32.xlu0 (!%p494_p5), %v7233_v11, %s8154_s9 }
 0x499   : > { %513 = vrot.lane.b32.xlu1 (!%p494_p5), %v7236_v12, %s8154_s9 }
 0x49a   : > { %509 = vrot.lane.b32.xlu0 (!%p494_p5), %v7234_v13, %s8154_s9 }
 0x507   : > { %v512_v14 = vpop.permute.xlu1 %511 }
 0x508   : > { %v508_v15 = vpop.permute.xlu0 %507  ;;  %522 = vst.msk [vmem:[#allocation2 + $0x29] sm:$0x1] %vm519_vm11, %v512_v14 }
 0x509   : > { %520 = vst.msk [vmem:[#allocation2 + $0x9] sm:$0x1] %vm519_vm11, %v508_v15 }
 0x50b   : > { %v514_v16 = vpop.permute.xlu1 %513 }
 0x50c   : > { %v510_v17 = vpop.permute.xlu0 %509  ;;  %523 = vst.msk [vmem:[#allocation2 + $0x39] sm:$0x1] %vm519_vm11, %v514_v16 }
 0x50d   : > { %521 = vst.msk [vmem:[#allocation2 + $0x19] sm:$0x1] %vm519_vm11, %v510_v17 }
 0x50e PF: > { %v526_v18 = vld [vmem:[#allocation2] sm:$0x1]  ;;  %v527_v19 = vld [vmem:[#allocation2 + $0x10] sm:$0x1]  ;;  %7595 = vmatprep.subr.mxu0 %v8144_v0  ;;  %7600 = vmatprep.subr.mxu1 %v8144_v0  ;;  %vm537_vm12 = vcmask 1041409   ;;  %vm540_vm13 = vcmask 1042434  }
 0x50f   : > { %v528_v20 = vld [vmem:[#allocation2 + $0x20] sm:$0x1]  ;;  %v529_v21 = vld [vmem:[#allocation2 + $0x30] sm:$0x1]  ;;  %v536_v22 = vrot.slane %v527_v19, 7  ;;  %vm543_vm14 = vcmask 1043459  }
 0x510   : > { %v539_v23 = vrot.slane %v528_v20, 6  ;;  %v542_v24 = vrot.slane %v529_v21, 5  ;;  %v781_v25 = vld [vmem:[#allocation2 + $0x1] sm:$0x1]  ;;  %v782_v27 = vld [vmem:[#allocation2 + $0x11] sm:$0x1] }
 0x511   : > { %v538_v26 = vsel %vm537_vm12, %v536_v22, %v526_v18  ;;  %v783_v28 = vld [vmem:[#allocation2 + $0x21] sm:$0x1]  ;;  %v784_v29 = vld [vmem:[#allocation2 + $0x31] sm:$0x1]  ;;  %v789_v31 = vrot.slane %v782_v27, 7  ;;  %s8155_s6 = smov 127  }
 0x512   : > { %v541_v30 = vsel %vm540_vm13, %v539_v23, %v538_v26  ;;  %v791_v32 = vrot.slane %v783_v28, 6  ;;  %v793_v33 = vrot.slane %v784_v29, 5  ;;  %v1033_v34 = vld [vmem:[#allocation2 + $0x2] sm:$0x1]  ;;  %v1034_v36 = vld [vmem:[#allocation2 + $0x12] sm:$0x1] }
 0x513   : > { %v544_v35 = vsel %vm543_vm14, %v542_v24, %v541_v30  ;;  %v1035_v37 = vld [vmem:[#allocation2 + $0x22] sm:$0x1]  ;;  %v1036_v38 = vld [vmem:[#allocation2 + $0x32] sm:$0x1]  ;;  %v790_v39 = vsel %vm537_vm12, %v789_v31, %v781_v25  ;;  %v1041_v40 = vrot.slane %v1034_v36, 7  ;;  %s8156_s11 = smov 126  }
 0x514   : > { %545 = vrot.lane.b32.xlu0 %v544_v35, %s8155_s6  ;;  %v1043_v41 = vrot.slane %v1035_v37, 6  ;;  %v1045_v42 = vrot.slane %v1036_v38, 5  ;;  %v792_v43 = vsel %vm540_vm13, %v791_v32, %v790_v39  ;;  %v1360_v44 = vld [vmem:[#allocation2 + $0x1] sm:$0x1]  ;;  %v1361_v45 = vld [vmem:[#allocation2 + $0x11] sm:$0x1] }
 0x515   : > { %v1362_v46 = vld [vmem:[#allocation2 + $0x21] sm:$0x1]  ;;  %v794_v47 = vsel %vm543_vm14, %v793_v33, %v792_v43  ;;  %v1042_v48 = vsel %vm537_vm12, %v1041_v40, %v1033_v34  ;;  %v1363_v49 = vld [vmem:[#allocation2 + $0x31] sm:$0x1]  ;;  %v1369_v50 = vrot.slane %v1361_v45, 7  ;;  %vm551_vm15 = vcmask 1043456  }
 0x516   : > { %v1371_v51 = vrot.slane %v1362_v46, 6  ;;  %v1608_v52 = vld [vmem:[#allocation2 + $0x12] sm:$0x1]  ;;  %873 = vrot.lane.b32.xlu1 %v794_v47, %s8155_s6  ;;  %v1044_v53 = vsel %vm540_vm13, %v1043_v41, %v1042_v48  ;;  %v1609_v54 = vld [vmem:[#allocation2 + $0x22] sm:$0x1]  ;;  %v1373_v60 = vrot.slane %v1363_v49, 5  ;;  %7601 = vmatpush3.msk.msra.mxu1 %vm551_vm15, %v544_v35 }
 0x517   : > { %v1615_v55 = vrot.slane %v1608_v52, 7  ;;  %v1370_v56 = vsel %vm537_vm12, %v1369_v50, %v1360_v44  ;;  %v1607_v57 = vld [vmem:[#allocation2 + $0x2] sm:$0x1]  ;;  %v1857_v58 = vld [vmem:[#allocation2 + $0x13] sm:$0x1]  ;;  %v8326_v59 = vsel %vm543_vm14, %v1045_v42, %v1044_v53  ;;  %v1617_v63 = vrot.slane %v1609_v54, 6  ;;  %7610 = vmatprep.subr.mxu1 %v8144_v0 }
 0x518   : > { %701 = vrot.lane.b32.xlu0 %v544_v35, %s8156_s11  ;;  %v1372_v61 = vsel %vm540_vm13, %v1371_v51, %v1370_v56  ;;  %v1610_v62 = vld [vmem:[#allocation2 + $0x32] sm:$0x1]  ;;  %v1858_v2 = vld [vmem:[#allocation2 + $0x23] sm:$0x1]  ;;  %v1864_v3 = vrot.slane %v1857_v58, 7  ;;  %vm8157_vm0 = vmmov 0  }
 0x519   : > { %v1616_v1 = vsel %vm537_vm12, %v1615_v55, %v1607_v57  ;;  %v8335_v4 = vld [vmem:[%s9307_s1] sm:$0xff]  ;;  %v2176_v6 = vld [vmem:[#allocation2 + $0x12] sm:$0x1]  ;;  %7597 = vmatprep.mubr.msk.f32.mxu0 %vm8157_vm0, %v8144_v0  ;;  %v8343_v7 = vsel %vm543_vm14, %v1373_v60, %v1372_v61  ;;  %v1619_v8 = vrot.slane %v1610_v62, 5  ;;  %vm547_vm1 = vcmask 31744   ;;  %7602 = vmatprep.mubr.msk.f32.mxu1 %vm8157_vm0, %v8144_v0  ;;  %v8364_v19 = vld [vmem:[%s9307_s1 + $0x18] sm:$0xff] }
 0x51a   : > { %953 = vrot.lane.b32.xlu1 %v794_v47, %s8156_s11  ;;  %v1856_v5 = vld [vmem:[#allocation2 + $0x3] sm:$0x1]  ;;  %v1618_v9 = vsel %vm540_vm13, %v1617_v63, %v1616_v1  ;;  %v1859_v10 = vld [vmem:[#allocation2 + $0x33] sm:$0x1]  ;;  %v1866_v11 = vrot.slane %v1858_v2, 6  ;;  %7603 = vmatmul.mubr.msk.f32.vlgmr.msra.gmra.mrb[0].mxu1 %vm547_vm1, %v8335_v4  ;;  %v2184_v14 = vrot.slane %v2176_v6, 7 }
 0x51b   : > { %v1865_v12 = vsel %vm537_vm12, %v1864_v3, %v1856_v5  ;;  %v2177_v13 = vld [vmem:[#allocation2 + $0x22] sm:$0x1]  ;;  %v2423_v15 = vld [vmem:[#allocation2 + $0x13] sm:$0x1]  ;;  %7611 = vmatpush3.msk.msra.mxu1 %vm551_vm15, %v794_v47  ;;  %7612 = vmatprep.mubr.msk.f32.mxu1 %vm8157_vm0, %v8144_v0  ;;  %v8359_v17 = vsel %vm543_vm14, %v1619_v8, %v1618_v9  ;;  %v1868_v18 = vrot.slane %v1859_v10, 5  ;;  %vm1350_vm3 = vcmask 122880  }
 0x51c   : > { %1125 = vrot.lane.b32.xlu0 %v8326_v59, %s8155_s6  ;;  %v2175_v16 = vld [vmem:[#allocation2 + $0x2] sm:$0x1]  ;;  %7620 = vmatprep.subr.mxu1 %v8144_v0  ;;  %v1867_v20 = vsel %vm540_vm13, %v1866_v11, %v1865_v12  ;;  %v2178_v21 = vld [vmem:[#allocation2 + $0x32] sm:$0x1]  ;;  %v2186_v22 = vrot.slane %v2177_v13, 6  ;;  %v2430_v24 = vrot.slane %v2423_v15, 7 }
 0x51d   : > { %v2424_v23 = vld [vmem:[#allocation2 + $0x23] sm:$0x1]  ;;  %v2185_v25 = vsel %vm537_vm12, %v2184_v14, %v2175_v16  ;;  %v2672_v27 = vld [vmem:[#allocation2 + $0x14] sm:$0x1]  ;;  %v2991_v28 = vld [vmem:[#allocation2 + $0x13] sm:$0x1]  ;;  %v8378_v29 = vsel %vm543_vm14, %v1868_v18, %v1867_v20 }
 0x51e   : > { %1205 = vrot.lane.b32.xlu1 %v8326_v59, %s8156_s11  ;;  %7613 = vmatmul.mubr.msk.f32.vlgmr.msra.gmra.mrb[2].mxu1 %vm547_vm1, %v8364_v19  ;;  %v2422_v26 = vld [vmem:[#allocation2 + $0x3] sm:$0x1]  ;;  %v2188_v30 = vrot.slane %v2178_v21, 5  ;;  %v2425_v31 = vld [vmem:[#allocation2 + $0x33] sm:$0x1]  ;;  %v2432_v32 = vrot.slane %v2424_v23, 6  ;;  %v2187_v33 = vsel %vm540_vm13, %v2186_v22, %v2185_v25 }
 0x51f   : > { %7622 = vmatprep.mubr.msk.f32.mxu1 %vm8157_vm0, %v8144_v0  ;;  %v2431_v34 = vsel %vm537_vm12, %v2430_v24, %v2422_v26  ;;  %v2673_v35 = vld [vmem:[#allocation2 + $0x24] sm:$0x1]  ;;  %v2679_v36 = vrot.slane %v2672_v27, 7  ;;  %v2992_v38 = vld [vmem:[#allocation2 + $0x23] sm:$0x1]  ;;  %v2999_v39 = vrot.slane %v2991_v28, 7 }
 0x520   : > { %1375 = vrot.lane.b32.xlu0 %v8343_v7, %s8155_s6  ;;  %v2671_v37 = vld [vmem:[#allocation2 + $0x4] sm:$0x1]  ;;  %v2434_v40 = vrot.slane %v2425_v31, 5  ;;  %v2990_v41 = vld [vmem:[#allocation2 + $0x3] sm:$0x1]  ;;  %v8387_v43 = vsel %vm543_vm14, %v2188_v30, %v2187_v33  ;;  %v2433_v44 = vsel %vm540_vm13, %v2432_v32, %v2431_v34  ;;  %v2681_v46 = vrot.slane %v2673_v35, 6 }
 0x521   : > { %v3238_v42 = vld [vmem:[#allocation2 + $0x14] sm:$0x1]  ;;  %v2993_v47 = vld [vmem:[#allocation2 + $0x33] sm:$0x1]  ;;  %v2680_v48 = vsel %vm537_vm12, %v2679_v36, %v2671_v37  ;;  %v3001_v49 = vrot.slane %v2992_v38, 6  ;;  %v3000_v52 = vsel %vm537_vm12, %v2999_v39, %v2990_v41  ;;  %s7446_s10 = sshll.u32 %s8130_s16, 4 }
 0x522   : > { %1528 = vrot.lane.b32.xlu1 %v8343_v7, %s8156_s11  ;;  %v2674_v45 = vld [vmem:[#allocation2 + $0x34] sm:$0x1]  ;;  %v3239_v50 = vld [vmem:[#allocation2 + $0x24] sm:$0x1]  ;;  %v3245_v53 = vrot.slane %v3238_v42, 7  ;;  %v8399_v54 = vsel %vm543_vm14, %v2434_v40, %v2433_v44  ;;  %v2682_v58 = vsel %vm540_vm13, %v2681_v46, %v2680_v48  ;;  %v3003_v60 = vrot.slane %v2993_v47, 5  ;;  %s7076_s21 = sadd.s32 %s8126_s15, %s7446_s10 }
 0x523   : > { %v8391_v51 = vld [vmem:[#allocation2 + $0x34] sm:$0x1]  ;;  %v2683_v55 = vrot.slane %v2674_v45, 5  ;;  %v3237_v56 = vld [vmem:[#allocation2 + $0x4] sm:$0x1]  ;;  %v3247_v61 = vrot.slane %v3239_v50, 6  ;;  %v3002_v1 = vsel %vm540_vm13, %v3001_v49, %v3000_v52 }
 0x524   : > { %1698 = vrot.lane.b32.xlu0 %v8359_v17, %s8155_s6  ;;  %v3487_v57 = vld [vmem:[#allocation2 + $0x15] sm:$0x1]  ;;  %v3249_v62 = vrot.slane %v8391_v51, 5  ;;  %v8403_v63 = vld [vmem:[#allocation2 + $0x25] sm:$0x1]  ;;  %v3246_v6 = vsel %vm537_vm12, %v3245_v53, %v3237_v56  ;;  %v8419_v21 = vsel %vm543_vm14, %v3003_v60, %v3002_v1  ;;  %s7447_s24 = sshll.u32 %s7076_s21, 7 }
 0x525   : > { %v8406_v2 = vld [vmem:[#allocation2 + $0x35] sm:$0x1]  ;;  %v4867_v3 = vld [vmem:[#allocation2 + $0x6] sm:$0x1]  ;;  %v4868_v5 = vld [vmem:[#allocation2 + $0x16] sm:$0x1]  ;;  %v8414_v13 = vsel %vm543_vm14, %v2683_v55, %v2682_v58  ;;  %v3248_v27 = vsel %vm540_vm13, %v3247_v61, %v3246_v6  ;;  %s9240_s28 = scalar_lea.hbm %s9309_s3, %s7447_s24 }
 0x526   : > { %1777 = vrot.lane.b32.xlu1 %v8359_v17, %s8156_s11  ;;  %v3486_v8 = vld [vmem:[#allocation2 + $0x5] sm:$0x1]  ;;  %v3494_v9 = vrot.slane %v3487_v57, 7  ;;  %v4869_v10 = vld [vmem:[#allocation2 + $0x26] sm:$0x1]  ;;  %v4875_v12 = vrot.slane %v4868_v5, 7  ;;  %v8446_v57 = vsel %vm543_vm14, %v3249_v62, %v3248_v27 }
 0x527   : > { %v4870_v11 = vld [vmem:[#allocation2 + $0x36] sm:$0x1]  ;;  %v8416_v14 = vld [vmem:[#allocation2 + $0x14] sm:$0x1]  ;;  %v4877_v15 = vrot.slane %v4869_v10, 6  ;;  %v3496_v22 = vrot.slane %v8403_v63, 6 }
 0x528   : > { %1947 = vrot.lane.b32.xlu0 %v8378_v29, %s8155_s6  ;;  %v4879_v16 = vrot.slane %v4870_v11, 5  ;;  %v5116_v18 = vld [vmem:[#allocation2 + $0x7] sm:$0x1]  ;;  %v5117_v20 = vld [vmem:[#allocation2 + $0x17] sm:$0x1]  ;;  %v4876_v23 = vsel %vm537_vm12, %v4875_v12, %v4867_v3  ;;  %v3498_v35 = vrot.slane %v8406_v2, 5  ;;  %v3495_v41 = vsel %vm537_vm12, %v3494_v9, %v3486_v8 }
 0x529   : > { %v5118_v24 = vld [vmem:[#allocation2 + $0x27] sm:$0x1]  ;;  %v5119_v25 = vld [vmem:[#allocation2 + $0x37] sm:$0x1]  ;;  %v5124_v26 = vrot.slane %v5117_v20, 7  ;;  %v4878_v30 = vsel %vm540_vm13, %v4877_v15, %v4876_v23  ;;  %v3814_v50 = vrot.slane %v8416_v14, 7  ;;  %v3497_v11 = vsel %vm540_vm13, %v3496_v22, %v3495_v41 }
 0x52a   : > { %2026 = vrot.lane.b32.xlu1 %v8378_v29, %s8156_s11  ;;  %v8424_v28 = vld [vmem:[#allocation2 + $0x24] sm:$0x1]  ;;  %v5126_v31 = vrot.slane %v5118_v24, 6  ;;  %v5128_v32 = vrot.slane %v5119_v25, 5  ;;  %v5435_v33 = vld [vmem:[#allocation2 + $0x6] sm:$0x1]  ;;  %v8431_v36 = vsel %vm543_vm14, %v4879_v16, %v4878_v30 }
 0x52b   : > { %v5436_v34 = vld [vmem:[#allocation2 + $0x16] sm:$0x1]  ;;  %v5125_v37 = vsel %vm537_vm12, %v5124_v26, %v5116_v18  ;;  %v5437_v38 = vld [vmem:[#allocation2 + $0x26] sm:$0x1]  ;;  %v8437_v42 = vld [vmem:[#allocation2 + $0x34] sm:$0x1] }
 0x52c   : > { %2190 = vrot.lane.b32.xlu0 %v8387_v43, %s8155_s6  ;;  %v5438_v39 = vld [vmem:[#allocation2 + $0x36] sm:$0x1]  ;;  %v5444_v40 = vrot.slane %v5436_v34, 7  ;;  %v5127_v44 = vsel %vm540_vm13, %v5126_v31, %v5125_v37  ;;  %v5446_v45 = vrot.slane %v5437_v38, 6  ;;  %v5682_v47 = vld [vmem:[#allocation2 + $0x7] sm:$0x1] }
 0x52d   : > { %v5448_v46 = vrot.slane %v5438_v39, 5  ;;  %v5683_v48 = vld [vmem:[#allocation2 + $0x17] sm:$0x1]  ;;  %v3805_v49 = vld [vmem:[#allocation2 + $0x4] sm:$0x1]  ;;  %v8442_v51 = vsel %vm543_vm14, %v5128_v32, %v5127_v44  ;;  %v3816_v5 = vrot.slane %v8424_v28, 6 }
 0x52e   : > { %2343 = vrot.lane.b32.xlu1 %v8387_v43, %s8156_s11  ;;  %v5445_v52 = vsel %vm537_vm12, %v5444_v40, %v5435_v33  ;;  %v5684_v53 = vld [vmem:[#allocation2 + $0x27] sm:$0x1]  ;;  %v5685_v55 = vld [vmem:[#allocation2 + $0x37] sm:$0x1]  ;;  %v5690_v56 = vrot.slane %v5683_v48, 7  ;;  %v3818_v20 = vrot.slane %v8437_v42, 5  ;;  %v3815_v30 = vsel %vm537_vm12, %v3814_v50, %v3805_v49 }
 0x52f   : > { %v8448_v58 = vld [vmem:[#allocation2 + $0x15] sm:$0x1]  ;;  %v5447_v60 = vsel %vm540_vm13, %v5446_v45, %v5445_v52  ;;  %v5692_v61 = vrot.slane %v5684_v53, 6  ;;  %v5694_v63 = vrot.slane %v5685_v55, 5  ;;  %v5931_v1 = vld [vmem:[#allocation2 + $0x8] sm:$0x1]  ;;  %v3817_v53 = vsel %vm540_vm13, %v3816_v5, %v3815_v30 }
 0x530   : > { %2513 = vrot.lane.b32.xlu0 %v8399_v54, %s8155_s6  ;;  %v5932_v3 = vld [vmem:[#allocation2 + $0x18] sm:$0x1]  ;;  %v8455_v6 = vsel %vm543_vm14, %v5448_v46, %v5447_v60  ;;  %v5691_v8 = vsel %vm537_vm12, %v5690_v56, %v5682_v47  ;;  %v5933_v62 = vld [vmem:[#allocation2 + $0x28] sm:$0x1]  ;;  %v6250_v16 = vld [vmem:[#allocation2 + $0x7] sm:$0x1]  ;;  %v8481_v46 = vsel %vm543_vm14, %v3498_v35, %v3497_v11 }
 0x531   : > { %v5934_v9 = vld [vmem:[#allocation2 + $0x38] sm:$0x1]  ;;  %v5939_v10 = vrot.slane %v5932_v3, 7  ;;  %v5693_v12 = vsel %vm540_vm13, %v5692_v61, %v5691_v8  ;;  %v5941_v14 = vrot.slane %v5933_v62, 6  ;;  %v6251_v18 = vld [vmem:[#allocation2 + $0x17] sm:$0x1] }
 0x532   : > { %2592 = vrot.lane.b32.xlu1 %v8399_v54, %s8156_s11  ;;  %v5943_v15 = vrot.slane %v5934_v9, 5  ;;  %v4054_v23 = vld [vmem:[#allocation2 + $0x25] sm:$0x1]  ;;  %v8464_v24 = vsel %vm543_vm14, %v5694_v63, %v5693_v12  ;;  %v6252_v26 = vld [vmem:[#allocation2 + $0x27] sm:$0x1]  ;;  %v6259_v28 = vrot.slane %v6251_v18, 7 }
 0x533   : > { %v5940_v25 = vsel %vm537_vm12, %v5939_v10, %v5931_v1  ;;  %v6253_v27 = vld [vmem:[#allocation2 + $0x37] sm:$0x1]  ;;  %v4052_v22 = vld [vmem:[#allocation2 + $0x5] sm:$0x1]  ;;  %v4302_v31 = vld [vmem:[#allocation2 + $0x16] sm:$0x1] }
 0x534   : > { %2762 = vrot.lane.b32.xlu0 %v8414_v13, %s8155_s6  ;;  %v5942_v32 = vsel %vm540_vm13, %v5941_v14, %v5940_v25  ;;  %v6261_v33 = vrot.slane %v6252_v26, 6  ;;  %v6263_v34 = vrot.slane %v6253_v27, 5  ;;  %v6497_v37 = vld [vmem:[#allocation2 + $0x8] sm:$0x1]  ;;  %v6498_v38 = vld [vmem:[#allocation2 + $0x18] sm:$0x1]  ;;  %v6260_v41 = vsel %vm537_vm12, %v6259_v28, %v6250_v16 }
 0x535   : > { %v4060_v39 = vrot.slane %v8448_v58, 7  ;;  %v8473_v40 = vsel %vm543_vm14, %v5943_v15, %v5942_v32  ;;  %v6499_v42 = vld [vmem:[#allocation2 + $0x28] sm:$0x1]  ;;  %v6500_v44 = vld [vmem:[#allocation2 + $0x38] sm:$0x1]  ;;  %v6505_v45 = vrot.slane %v6498_v38, 7  ;;  %v8501_v15 = vsel %vm543_vm14, %v3818_v20, %v3817_v53 }
 0x536   : > { %2841 = vrot.lane.b32.xlu1 %v8414_v13, %s8156_s11  ;;  %v6262_v47 = vsel %vm540_vm13, %v6261_v33, %v6260_v41  ;;  %v6507_v48 = vrot.slane %v6499_v42, 6  ;;  %v6509_v49 = vrot.slane %v6500_v44, 5  ;;  %v6746_v50 = vld [vmem:[#allocation2 + $0x9] sm:$0x1]  ;;  %v6747_v52 = vld [vmem:[#allocation2 + $0x19] sm:$0x1] }
 0x537   : > { %v8486_v55 = vsel %vm543_vm14, %v6263_v34, %v6262_v47  ;;  %v6506_v56 = vsel %vm537_vm12, %v6505_v45, %v6497_v37  ;;  %v6748_v58 = vld [vmem:[#allocation2 + $0x29] sm:$0x1]  ;;  %v6749_v60 = vld [vmem:[#allocation2 + $0x39] sm:$0x1]  ;;  %v6754_v61 = vrot.slane %v6747_v52, 7  ;;  %v4062_v63 = vrot.slane %v4054_v23, 6 }
 0x538   : > { %3005 = vrot.lane.b32.xlu0 %v8419_v21, %s8155_s6  ;;  %v4055_v2 = vld [vmem:[#allocation2 + $0x35] sm:$0x1]  ;;  %v6508_v35 = vsel %vm540_vm13, %v6507_v48, %v6506_v56  ;;  %v6756_v1 = vrot.slane %v6748_v58, 6  ;;  %v6758_v3 = vrot.slane %v6749_v60, 5  ;;  %v4061_v8 = vsel %vm537_vm12, %v4060_v39, %v4052_v22  ;;  %v4303_v5 = vld [vmem:[#allocation2 + $0x26] sm:$0x1] }
 0x539   : > { %v4309_v62 = vrot.slane %v4302_v31, 7  ;;  %v8494_v9 = vsel %vm543_vm14, %v6509_v49, %v6508_v35  ;;  %v6755_v10 = vsel %vm537_vm12, %v6754_v61, %v6746_v50  ;;  %v4301_v11 = vld [vmem:[#allocation2 + $0x6] sm:$0x1]  ;;  %v4621_v12 = vld [vmem:[#allocation2 + $0x15] sm:$0x1]  ;;  %v4064_v16 = vrot.slane %v4055_v2, 5 }
 0x53a   : > { %3158 = vrot.lane.b32.xlu1 %v8419_v21, %s8156_s11  ;;  %v6757_v14 = vsel %vm540_vm13, %v6756_v1, %v6755_v10  ;;  %v4063_v23 = vsel %vm540_vm13, %v4062_v63, %v4061_v8  ;;  %v4304_v25 = vld [vmem:[#allocation2 + $0x36] sm:$0x1]  ;;  %v4311_v26 = vrot.slane %v4303_v5, 6  ;;  %v4622_v28 = vld [vmem:[#allocation2 + $0x25] sm:$0x1]  ;;  %v4629_v30 = vrot.slane %v4621_v12, 7 }
 0x53b   : > { %v8504_v18 = vsel %vm543_vm14, %v6758_v3, %v6757_v14  ;;  %v4310_v27 = vsel %vm537_vm12, %v4309_v62, %v4301_v11  ;;  %v4620_v20 = vld [vmem:[#allocation2 + $0x5] sm:$0x1]  ;;  %v8513_v22 = vsel %vm543_vm14, %v4064_v16, %v4063_v23  ;;  %v4313_v31 = vrot.slane %v4304_v25, 5  ;;  %v4623_v33 = vld [vmem:[#allocation2 + $0x35] sm:$0x1]  ;;  %v8576_v47 = vld [vmem:[%s9307_s1 + $0x8] sm:$0xff] }
 0x53c   : > { %3328 = vrot.lane.b32.xlu0 %v8446_v57, %s8155_s6  ;;  %v4312_v32 = vsel %vm540_vm13, %v4311_v26, %v4310_v27  ;;  %v4631_v34 = vrot.slane %v4622_v28, 6  ;;  %v4630_v37 = vsel %vm537_vm12, %v4629_v30, %v4620_v20  ;;  %v4633_v39 = vrot.slane %v4623_v33, 5  ;;  %v524_v45 = vld [vmem:[%s9308_s2] sm:$0xff]  ;;  %v8587_v50 = vld [vmem:[%s9307_s1 + $0x10] sm:$0xff]  ;;  %v8596_v53 = vld [vmem:[%s9307_s1 + $0x28] sm:$0xff]  ;;  %s7079_s15 = sshll.u32 %s8280_s20, 4  ;;  %s9242_s15 = int_to_ptr.vmem [resolvable:$true] %s7079_s15 }
 0x53d   : > { %v8522_v38 = vsel %vm543_vm14, %v4313_v31, %v4312_v32  ;;  %v8158_v44 = vmov 0   ;;  %v8604_v58 = vld [vmem:[%s9307_s1 + $0x20] sm:$0xff]  ;;  %v8617_v61 = vld [vmem:[%s9307_s1 + $0x38] sm:$0xff]  ;;  %v8626_v2 = vld [vmem:[%s9307_s1 + $0x30] sm:$0xff]  ;;  %s9254_s29 = scalar_lea.sflag [#allocation4], %s175_s4  ;;  %s8048_s5 = scalar_lea.vmem %s9242_s15, 1024 }
 0x53e   : > { %3407 = vrot.lane.b32.xlu1 %v8446_v57, %s8156_s11  ;;  %v4632_v41 = vsel %vm540_vm13, %v4631_v34, %v4630_v37  ;;  %8045 = vset.pattern.permute.xlu0 %v8158_v44  ;;  %p8049_p6 = scmp.ne.s32.totalorder %s9242_s15, %s8048_s5  ;;  %s8160_s7 = smov [#allocation3]  }
 0x53f   : > { %v8530_v42 = vsel %vm543_vm14, %v4633_v39, %v4632_v41  ;;  %s8052_s8 = sshll.u32 %s8160_s7, 4  ;;  %s8053_s8 = int_to_ptr.vmem [resolvable:$false] %s8052_s8 }
 0x540   : > { %3577 = vrot.lane.b32.xlu0 %v8481_v46, %s8155_s6  ;;  %p8050_p7 = pnand %p8049_p6, %p8235_p3  ;;  %s8054_s9 = scalar_lea.vmem %s8053_s8, 2048 }
 0x541   : > { %p8055_p10 = scmp.lt.s32.totalorder %s9242_s15, %s8053_s8  ;;  %p8056_p11 = scmp.lt.s32.totalorder %s8054_s9, %s8048_s5 }
 0x542   : > { %3656 = vrot.lane.b32.xlu1 %v8481_v46, %s8156_s11  ;;  %p8051_p9 = pneg %p8050_p7 }
 0x543   : > { %p8057_p12 = por %p8056_p11, %p8055_p10 }
 0x544   : > { %3820 = vrot.lane.b32.xlu0 %v8501_v15, %s8155_s6 }
 0x545   : > { %p8058_p13 = pnand %p8057_p12, %p8051_p9 }
 0x546   : > { %3973 = vrot.lane.b32.xlu1 %v8501_v15, %s8156_s11 }
 0x548   : > { %4143 = vrot.lane.b32.xlu0 %v8513_v22, %s8155_s6 }
 0x54a   : > { %4222 = vrot.lane.b32.xlu1 %v8513_v22, %s8156_s11 }
 0x54c   : > { %4392 = vrot.lane.b32.xlu0 %v8522_v38, %s8155_s6 }
 0x54e   : > { %4471 = vrot.lane.b32.xlu1 %v8522_v38, %s8156_s11 }
 0x550   : > { %4635 = vrot.lane.b32.xlu0 %v8530_v42, %s8155_s6 }
 0x552   : > { %4788 = vrot.lane.b32.xlu1 %v8530_v42, %s8156_s11 }
 0x554   : > { %4958 = vrot.lane.b32.xlu0 %v8431_v36, %s8155_s6 }
 0x556   : > { %5037 = vrot.lane.b32.xlu1 %v8431_v36, %s8156_s11 }
 0x558   : > { %5207 = vrot.lane.b32.xlu0 %v8442_v51, %s8155_s6 }
 0x55a   : > { %5286 = vrot.lane.b32.xlu1 %v8442_v51, %s8156_s11 }
 0x55c   : > { %5450 = vrot.lane.b32.xlu0 %v8455_v6, %s8155_s6 }
 0x55e   : > { %5603 = vrot.lane.b32.xlu1 %v8455_v6, %s8156_s11 }
 0x560   : > { %5773 = vrot.lane.b32.xlu0 %v8464_v24, %s8155_s6 }
 0x562   : > { %5852 = vrot.lane.b32.xlu1 %v8464_v24, %s8156_s11 }
 0x564   : > { %6022 = vrot.lane.b32.xlu0 %v8473_v40, %s8155_s6 }
 0x566   : > { %6101 = vrot.lane.b32.xlu1 %v8473_v40, %s8156_s11 }
 0x568   : > { %6265 = vrot.lane.b32.xlu0 %v8486_v55, %s8155_s6 }
 0x56a   : > { %6418 = vrot.lane.b32.xlu1 %v8486_v55, %s8156_s11 }
 0x56c   : > { %6588 = vrot.lane.b32.xlu0 %v8494_v9, %s8155_s6 }
 0x56e   : > { %6667 = vrot.lane.b32.xlu1 %v8494_v9, %s8156_s11 }
 0x570   : > { %6837 = vrot.lane.b32.xlu0 %v8504_v18, %s8155_s6 }
 0x572   : > { %6916 = vrot.lane.b32.xlu1 %v8504_v18, %s8156_s11 }
 0x574   : > { %1285 = vperm.xlu0 %8045, %v524_v45  }
 0x586   : > { %v546_v48 = vpop.permute.xlu0 %545 }
 0x587   : > { %7596 = vmatpush3.msk.msra.mxu0 %vm551_vm15, %v546_v48 }
 0x588   : > { %7598 = vmatmul.mubr.msk.f32.vlgmr.msra.gmra.mrb[0].mxu0 %vm547_vm1, %v8576_v47  ;;  %7605 = vmatprep.subr.mxu0 %v8144_v0  ;;  %v874_v49 = vpop.permute.xlu1 %873 }
 0x589   : > { %7607 = vmatprep.mubr.msk.f32.mxu0 %vm8157_vm0, %v8144_v0 }
 0x58a   : > { %v702_v52 = vpop.permute.xlu0 %701 }
 0x58b   : > { %7606 = vmatpush3.msk.msra.mxu0 %vm551_vm15, %v702_v52 }
 0x58c   : > { %7608 = vmatmul.mubr.msk.f32.vlgmr.msra.gmra.mrb[2].mxu0 %vm547_vm1, %v8587_v50  ;;  %7615 = vmatprep.subr.mxu0 %v8144_v0  ;;  %v954_v56 = vpop.permute.xlu1 %953 }
 0x58d   : > { %7616 = vmatpush3.msk.msra.mxu0 %vm551_vm15, %v874_v49  ;;  %7617 = vmatprep.mubr.msk.f32.mxu0 %vm8157_vm0, %v8144_v0 }
 0x58e   : > { %7621 = vmatpush3.msk.msra.mxu1 %vm551_vm15, %v954_v56  ;;  %7625 = vmatprep.subr.mxu0 %v8144_v0  ;;  %v1126_v60 = vpop.permute.xlu0 %1125 }
 0x58f   : > { %7623 = vmatmul.mubr.msk.f32.vlgmr.msra.gmra.mrb[4].mxu1 %vm547_vm1, %v8596_v53  ;;  %7630 = vmatprep.subr.mxu1 %v8144_v0 }
 0x590   : > { %7618 = vmatmul.mubr.msk.f32.vlgmr.msra.gmra.mrb[4].mxu0 %vm547_vm1, %v8604_v58  ;;  %7631 = vmatpush3.msk.msra.mxu1 %vm551_vm15, %v1126_v60  ;;  %v1206_v63 = vpop.permute.xlu1 %1205 }
 0x591   : > { %7626 = vmatpush3.msk.msra.mxu0 %vm551_vm15, %v8326_v59  ;;  %7627 = vmatprep.mubr.msk.f32.mxu0 %vm8157_vm0, %v8144_v0  ;;  %v8643_v59 = vld [vmem:[%s9307_s1 + $0x40] sm:$0xff] }
 0x592   : > { %7632 = vmatprep.mubr.msk.f32.mxu1 %vm8157_vm0, %v8144_v0  ;;  %7635 = vmatprep.subr.mxu0 %v8144_v0  ;;  %v1376_v35 = vpop.permute.xlu0 %1375 }
 0x593   : > { %7633 = vmatmul.mubr.msk.f32.vlgmr.msra.gmra.mrb[6].mxu1 %vm547_vm1, %v8617_v61  ;;  %7640 = vmatprep.subr.mxu1 %v8144_v0 }
 0x594   : > { %7628 = vmatmul.mubr.msk.f32.vlgmr.msra.gmra.mrb[6].mxu0 %vm547_vm1, %v8626_v2  ;;  %7641 = vmatpush3.msk.msra.mxu1 %vm551_vm15, %v1376_v35  ;;  %v1529_v1 = vpop.permute.xlu1 %1528 }
 0x595   : > { %7636 = vmatpush3.msk.msra.mxu0 %vm551_vm15, %v1206_v63  ;;  %7637 = vmatprep.mubr.msk.f32.mxu0 %vm8157_vm0, %v8144_v0 }
 0x596   : > { %7642 = vmatprep.mubr.msk.f32.mxu1 %vm8157_vm0, %v8144_v0  ;;  %7645 = vmatprep.subr.mxu0 %v8144_v0  ;;  %v1699_v3 = vpop.permute.xlu0 %1698 }
 0x597   : > { %7643 = vmatmul.mubr.msk.f32.vlgmr.msra.gmra.mrb[8].mxu1 %vm547_vm1, %v8576_v47  ;;  %7650 = vmatprep.subr.mxu1 %v8144_v0 }
 0x598   : > { %7638 = vmatmul.mubr.msk.f32.vlgmr.msra.gmra.mrb[8].mxu0 %vm547_vm1, %v8643_v59  ;;  %7651 = vmatpush3.msk.msra.mxu1 %vm551_vm15, %v1529_v1  ;;  %v1778_v8 = vpop.permute.xlu1 %1777  ;;  %v8159_v1 = vmov 1966171168  }
 0x599   : > { %7646 = vmatpush3.msk.msra.mxu0 %vm551_vm15, %v8343_v7  ;;  %7647 = vmatprep.mubr.msk.f32.mxu0 %vm8157_vm0, %v8144_v0 }
 0x59a   : > { %7652 = vmatprep.mubr.msk.f32.mxu1 %vm8157_vm0, %v8144_v0  ;;  %7655 = vmatprep.subr.mxu0 %v8144_v0  ;;  %v1948_v7 = vpop.permute.xlu0 %1947 }
 0x59b   : > { %7653 = vmatmul.mubr.msk.f32.vlgmr.msra.gmra.mrb[10].mxu1 %vm547_vm1, %v8587_v50  ;;  %7660 = vmatprep.subr.mxu1 %v8144_v0 }
 0x59c   : > { %7648 = vmatmul.mubr.msk.f32.vlgmr.msra.gmra.mrb[10].mxu0 %vm547_vm1, %v8335_v4  ;;  %7661 = vmatpush3.msk.msra.mxu1 %vm551_vm15, %v1699_v3  ;;  %v1297_v3 = vlaneseq }
 0x59d   : > { %7656 = vmatpush3.msk.msra.mxu0 %vm551_vm15, %v8359_v17  ;;  %7657 = vmatprep.mubr.msk.f32.mxu0 %vm8157_vm0, %v8144_v0  ;;  %v2027_v17 = vpop.permute.xlu1 %2026 }
 0x59e   : > { %7662 = vmatprep.mubr.msk.f32.mxu1 %vm8157_vm0, %v8144_v0  ;;  %7665 = vmatprep.subr.mxu0 %v8144_v0 }
 0x59f   : > { %7663 = vmatmul.mubr.msk.f32.vlgmr.msra.gmra.mrb[12].mxu1 %vm547_vm1, %v8604_v58  ;;  %7670 = vmatprep.subr.mxu1 %v8144_v0 }
 0x5a0   : > { %7658 = vmatmul.mubr.msk.f32.vlgmr.msra.gmra.mrb[12].mxu0 %vm547_vm1, %v8364_v19  ;;  %7671 = vmatpush3.msk.msra.mxu1 %vm551_vm15, %v8378_v29  ;;  %v2191_v29 = vpop.permute.xlu0 %2190 }
 0x5a1   : > { %7666 = vmatpush3.msk.msra.mxu0 %vm551_vm15, %v1778_v8  ;;  %7667 = vmatprep.mubr.msk.f32.mxu0 %vm8157_vm0, %v8144_v0  ;;  %v2344_v5 = vpop.permute.xlu1 %2343 }
 0x5a2   : > { %7672 = vmatprep.mubr.msk.f32.mxu1 %vm8157_vm0, %v8144_v0  ;;  %7675 = vmatprep.subr.mxu0 %v8144_v0 }
 0x5a3   : > { %7673 = vmatmul.mubr.msk.f32.vlgmr.msra.gmra.mrb[14].mxu1 %vm547_vm1, %v8626_v2  ;;  %7680 = vmatprep.subr.mxu1 %v8144_v0 }
 0x5a4   : > { %7668 = vmatmul.mubr.msk.f32.vlgmr.msra.gmra.mrb[14].mxu0 %vm547_vm1, %v8596_v53  ;;  %7681 = vmatpush3.msk.msra.mxu1 %vm551_vm15, %v2027_v17  ;;  %v2514_v62 = vpop.permute.xlu0 %2513 }
 0x5a5   : > { %7676 = vmatpush3.msk.msra.mxu0 %vm551_vm15, %v1948_v7  ;;  %7677 = vmatprep.mubr.msk.f32.mxu0 %vm8157_vm0, %v8144_v0 }
 0x5a6   : > { %7682 = vmatprep.mubr.msk.f32.mxu1 %vm8157_vm0, %v8144_v0  ;;  %7685 = vmatprep.subr.mxu0 %v8144_v0 }
 0x5a7   : > { %7683 = vmatmul.mubr.msk.f32.vlgmr.msra.gmra.mrb[16].mxu1 %vm547_vm1, %v8643_v59  ;;  %7690 = vmatprep.subr.mxu1 %v8144_v0 }
 0x5a8   : > { %7678 = vmatmul.mubr.msk.f32.vlgmr.msra.gmra.mrb[16].mxu0 %vm547_vm1, %v8617_v61  ;;  %7691 = vmatpush3.msk.msra.mxu1 %vm551_vm15, %v8387_v43  ;;  %v2593_v43 = vpop.permute.xlu1 %2592  ;;  %v2763_v10 = vpop.permute.xlu0 %2762 }
 0x5a9   : > { %7686 = vmatpush3.msk.msra.mxu0 %vm551_vm15, %v2191_v29  ;;  %7687 = vmatprep.mubr.msk.f32.mxu0 %vm8157_vm0, %v8144_v0 }
 0x5aa   : > { %7692 = vmatprep.mubr.msk.f32.mxu1 %vm8157_vm0, %v8144_v0  ;;  %7695 = vmatprep.subr.mxu0 %v8144_v0 }
 0x5ab   : > { %7693 = vmatmul.mubr.msk.f32.vlgmr.msra.gmra.mrb[18].mxu1 %vm547_vm1, %v8335_v4  ;;  %7700 = vmatprep.subr.mxu1 %v8144_v0 }
 0x5ac   : > { %7688 = vmatmul.mubr.msk.f32.vlgmr.msra.gmra.mrb[18].mxu0 %vm547_vm1, %v8576_v47  ;;  %7701 = vmatpush3.msk.msra.mxu1 %vm551_vm15, %v8399_v54  ;;  %v2842_v54 = vpop.permute.xlu1 %2841  ;;  %v3006_v11 = vpop.permute.xlu0 %3005 }
 0x5ad   : > { %7696 = vmatpush3.msk.msra.mxu0 %vm551_vm15, %v2344_v5  ;;  %7697 = vmatprep.mubr.msk.f32.mxu0 %vm8157_vm0, %v8144_v0 }
 0x5ae   : > { %7702 = vmatprep.mubr.msk.f32.mxu1 %vm8157_vm0, %v8144_v0  ;;  %7705 = vmatprep.subr.mxu0 %v8144_v0 }
 0x5af   : > { %7703 = vmatmul.mubr.msk.f32.vlgmr.msra.gmra.mrb[20].mxu1 %vm547_vm1, %v8364_v19  ;;  %7710 = vmatprep.subr.mxu1 %v8144_v0 }
 0x5b0   : > { %7698 = vmatmul.mubr.msk.f32.vlgmr.msra.gmra.mrb[20].mxu0 %vm547_vm1, %v8587_v50  ;;  %7711 = vmatpush3.msk.msra.mxu1 %vm551_vm15, %v2593_v43  ;;  %v3329_v12 = vpop.permute.xlu0 %3328 }
 0x5b1   : > { %7706 = vmatpush3.msk.msra.mxu0 %vm551_vm15, %v2514_v62  ;;  %7707 = vmatprep.mubr.msk.f32.mxu0 %vm8157_vm0, %v8144_v0 }
 0x5b2   : > { %7712 = vmatprep.mubr.msk.f32.mxu1 %vm8157_vm0, %v8144_v0  ;;  %7715 = vmatprep.subr.mxu0 %v8144_v0 }
 0x5b3   : > { %7713 = vmatmul.mubr.msk.f32.vlgmr.msra.gmra.mrb[22].mxu1 %vm547_vm1, %v8596_v53  ;;  %7720 = vmatprep.subr.mxu1 %v8144_v0 }
 0x5b4   : > { %7708 = vmatmul.mubr.msk.f32.vlgmr.msra.gmra.mrb[22].mxu0 %vm547_vm1, %v8604_v58  ;;  %7721 = vmatpush3.msk.msra.mxu1 %vm551_vm15, %v2763_v10  ;;  %v1298_v10 = vshrl.u32 %v1297_v3, 7 }
 0x5b5   : > { %7716 = vmatpush3.msk.msra.mxu0 %vm551_vm15, %v8414_v13  ;;  %7717 = vmatprep.mubr.msk.f32.mxu0 %vm8157_vm0, %v8144_v0  ;;  %v3159_v13 = vpop.permute.xlu1 %3158 }
 0x5b6   : > { %7722 = vmatprep.mubr.msk.f32.mxu1 %vm8157_vm0, %v8144_v0  ;;  %7725 = vmatprep.subr.mxu0 %v8144_v0 }
 0x5b7   : > { %7723 = vmatmul.mubr.msk.f32.vlgmr.msra.gmra.mrb[24].mxu1 %vm547_vm1, %v8617_v61  ;;  %7730 = vmatprep.subr.mxu1 %v8144_v0 }
 0x5b8   : > { %7718 = vmatmul.mubr.msk.f32.vlgmr.msra.gmra.mrb[24].mxu0 %vm547_vm1, %v8626_v2  ;;  %7731 = vmatpush3.msk.msra.mxu1 %vm551_vm15, %v3006_v11 }
 0x5b9   : > { %7726 = vmatpush3.msk.msra.mxu0 %vm551_vm15, %v2842_v54  ;;  %7727 = vmatprep.mubr.msk.f32.mxu0 %vm8157_vm0, %v8144_v0  ;;  %v3408_v14 = vpop.permute.xlu1 %3407 }
 0x5ba   : > { %7732 = vmatprep.mubr.msk.f32.mxu1 %vm8157_vm0, %v8144_v0  ;;  %7735 = vmatprep.subr.mxu0 %v8144_v0 }
 0x5bb   : > { %7733 = vmatmul.mubr.msk.f32.vlgmr.msra.gmra.mrb[26].mxu1 %vm547_vm1, %v8576_v47  ;;  %7740 = vmatprep.subr.mxu1 %v8144_v0 }
 0x5bc   : > { %7728 = vmatmul.mubr.msk.f32.vlgmr.msra.gmra.mrb[26].mxu0 %vm547_vm1, %v8643_v59  ;;  %7741 = vmatpush3.msk.msra.mxu1 %vm551_vm15, %v3159_v13 }
 0x5bd   : > { %7736 = vmatpush3.msk.msra.mxu0 %vm551_vm15, %v8419_v21  ;;  %7737 = vmatprep.mubr.msk.f32.mxu0 %vm8157_vm0, %v8144_v0  ;;  %v3578_v21 = vpop.permute.xlu0 %3577 }
 0x5be   : > { %7742 = vmatprep.mubr.msk.f32.mxu1 %vm8157_vm0, %v8144_v0  ;;  %7745 = vmatprep.subr.mxu0 %v8144_v0 }
 0x5bf   : > { %7743 = vmatmul.mubr.msk.f32.vlgmr.msra.gmra.mrb[28].mxu1 %vm547_vm1, %v8587_v50  ;;  %7750 = vmatprep.subr.mxu1 %v8144_v0 }
 0x5c0   : > { %7738 = vmatmul.mubr.msk.f32.vlgmr.msra.gmra.mrb[28].mxu0 %vm547_vm1, %v8335_v4  ;;  %7751 = vmatpush3.msk.msra.mxu1 %vm551_vm15, %v3329_v12 }
 0x5c1   : > { %7746 = vmatpush3.msk.msra.mxu0 %vm551_vm15, %v8446_v57  ;;  %7747 = vmatprep.mubr.msk.f32.mxu0 %vm8157_vm0, %v8144_v0  ;;  %v3657_v57 = vpop.permute.xlu1 %3656 }
 0x5c2   : > { %7752 = vmatprep.mubr.msk.f32.mxu1 %vm8157_vm0, %v8144_v0  ;;  %7755 = vmatprep.subr.mxu0 %v8144_v0 }
 0x5c3   : > { %7753 = vmatmul.mubr.msk.f32.vlgmr.msra.gmra.mrb[30].mxu1 %vm547_vm1, %v8604_v58  ;;  %7760 = vmatprep.subr.mxu1 %v8144_v0 }
 0x5c4   : > { %7748 = vmatmul.mubr.msk.f32.vlgmr.msra.gmra.mrb[30].mxu0 %vm547_vm1, %v8364_v19  ;;  %7761 = vmatpush3.msk.msra.mxu1 %vm551_vm15, %v8481_v46  ;;  %v3821_v46 = vpop.permute.xlu0 %3820 }
 0x5c5   : > { %7756 = vmatpush3.msk.msra.mxu0 %vm551_vm15, %v3408_v14  ;;  %7757 = vmatprep.mubr.msk.f32.mxu0 %vm8157_vm0, %v8144_v0  ;;  %v3974_v16 = vpop.permute.xlu1 %3973 }
 0x5c6   : > { %7762 = vmatprep.mubr.msk.f32.mxu1 %vm8157_vm0, %v8144_v0  ;;  %7765 = vmatprep.subr.mxu0 %v8144_v0 }
 0x5c7   : > { %7763 = vmatmul.mubr.msk.f32.vlgmr.msra.gmra.mrb[32].mxu1 %vm547_vm1, %v8626_v2  ;;  %7770 = vmatprep.subr.mxu1 %v8144_v0 }
 0x5c8   : > { %7758 = vmatmul.mubr.msk.f32.vlgmr.msra.gmra.mrb[32].mxu0 %vm547_vm1, %v8596_v53  ;;  %7771 = vmatpush3.msk.msra.mxu1 %vm551_vm15, %v3657_v57  ;;  %v4144_v23 = vpop.permute.xlu0 %4143 }
 0x5c9   : > { %7766 = vmatpush3.msk.msra.mxu0 %vm551_vm15, %v3578_v21  ;;  %7767 = vmatprep.mubr.msk.f32.mxu0 %vm8157_vm0, %v8144_v0 }
 0x5ca   : > { %7772 = vmatprep.mubr.msk.f32.mxu1 %vm8157_vm0, %v8144_v0  ;;  %7775 = vmatprep.subr.mxu0 %v8144_v0 }
 0x5cb   : > { %7773 = vmatmul.mubr.msk.f32.vlgmr.msra.gmra.mrb[34].mxu1 %vm547_vm1, %v8643_v59  ;;  %7780 = vmatprep.subr.mxu1 %v8144_v0 }
 0x5cc   : > { %7768 = vmatmul.mubr.msk.f32.vlgmr.msra.gmra.mrb[34].mxu0 %vm547_vm1, %v8617_v61  ;;  %7781 = vmatpush3.msk.msra.mxu1 %vm551_vm15, %v8501_v15  ;;  %v4223_v15 = vpop.permute.xlu1 %4222  ;;  %v4393_v25 = vpop.permute.xlu0 %4392 }
 0x5cd   : > { %7776 = vmatpush3.msk.msra.mxu0 %vm551_vm15, %v3821_v46  ;;  %7777 = vmatprep.mubr.msk.f32.mxu0 %vm8157_vm0, %v8144_v0 }
 0x5ce   : > { %7782 = vmatprep.mubr.msk.f32.mxu1 %vm8157_vm0, %v8144_v0  ;;  %7785 = vmatprep.subr.mxu0 %v8144_v0 }
 0x5cf   : > { %7783 = vmatmul.mubr.msk.f32.vlgmr.msra.gmra.mrb[36].mxu1 %vm547_vm1, %v8335_v4  ;;  %7790 = vmatprep.subr.mxu1 %v8144_v0 }
 0x5d0   : > { %7778 = vmatmul.mubr.msk.f32.vlgmr.msra.gmra.mrb[36].mxu0 %vm547_vm1, %v8576_v47  ;;  %7791 = vmatpush3.msk.msra.mxu1 %vm551_vm15, %v8513_v22  ;;  %v4472_v26 = vpop.permute.xlu1 %4471  ;;  %v4636_v27 = vpop.permute.xlu0 %4635 }
 0x5d1   : > { %7786 = vmatpush3.msk.msra.mxu0 %vm551_vm15, %v3974_v16  ;;  %7787 = vmatprep.mubr.msk.f32.mxu0 %vm8157_vm0, %v8144_v0 }
 0x5d2   : > { %7792 = vmatprep.mubr.msk.f32.mxu1 %vm8157_vm0, %v8144_v0  ;;  %7795 = vmatprep.subr.mxu0 %v8144_v0 }
 0x5d3   : > { %7793 = vmatmul.mubr.msk.f32.vlgmr.msra.gmra.mrb[38].mxu1 %vm547_vm1, %v8364_v19  ;;  %7800 = vmatprep.subr.mxu1 %v8144_v0 }
 0x5d4   : > { %7788 = vmatmul.mubr.msk.f32.vlgmr.msra.gmra.mrb[38].mxu0 %vm547_vm1, %v8587_v50  ;;  %7801 = vmatpush3.msk.msra.mxu1 %vm551_vm15, %v4223_v15  ;;  %v4789_v28 = vpop.permute.xlu1 %4788  ;;  %v4959_v30 = vpop.permute.xlu0 %4958 }
 0x5d5   : > { %7796 = vmatpush3.msk.msra.mxu0 %vm551_vm15, %v4144_v23  ;;  %7797 = vmatprep.mubr.msk.f32.mxu0 %vm8157_vm0, %v8144_v0 }
 0x5d6   : > { %7802 = vmatprep.mubr.msk.f32.mxu1 %vm8157_vm0, %v8144_v0  ;;  %7805 = vmatprep.subr.mxu0 %v8144_v0 }
 0x5d7   : > { %7803 = vmatmul.mubr.msk.f32.vlgmr.msra.gmra.mrb[40].mxu1 %vm547_vm1, %v8596_v53  ;;  %7810 = vmatprep.subr.mxu1 %v8144_v0 }
 0x5d8   : > { %7798 = vmatmul.mubr.msk.f32.vlgmr.msra.gmra.mrb[40].mxu0 %vm547_vm1, %v8604_v58  ;;  %7811 = vmatpush3.msk.msra.mxu1 %vm551_vm15, %v4393_v25  ;;  %v5038_v20 = vpop.permute.xlu1 %5037  ;;  %v5208_v22 = vpop.permute.xlu0 %5207 }
 0x5d9   : > { %7806 = vmatpush3.msk.msra.mxu0 %vm551_vm15, %v8522_v38  ;;  %7807 = vmatprep.mubr.msk.f32.mxu0 %vm8157_vm0, %v8144_v0 }
 0x5da   : > { %7812 = vmatprep.mubr.msk.f32.mxu1 %vm8157_vm0, %v8144_v0  ;;  %7815 = vmatprep.subr.mxu0 %v8144_v0 }
 0x5db   : > { %7813 = vmatmul.mubr.msk.f32.vlgmr.msra.gmra.mrb[42].mxu1 %vm547_vm1, %v8617_v61  ;;  %7820 = vmatprep.subr.mxu1 %v8144_v0 }
 0x5dc   : > { %7808 = vmatmul.mubr.msk.f32.vlgmr.msra.gmra.mrb[42].mxu0 %vm547_vm1, %v8626_v2  ;;  %7821 = vmatpush3.msk.msra.mxu1 %vm551_vm15, %v4636_v27 }
 0x5dd   : > { %7816 = vmatpush3.msk.msra.mxu0 %vm551_vm15, %v4472_v26  ;;  %7817 = vmatprep.mubr.msk.f32.mxu0 %vm8157_vm0, %v8144_v0 }
 0x5de   : > { %7822 = vmatprep.mubr.msk.f32.mxu1 %vm8157_vm0, %v8144_v0  ;;  %7825 = vmatprep.subr.mxu0 %v8144_v0 }
 0x5df   : > { %7823 = vmatmul.mubr.msk.f32.vlgmr.msra.gmra.mrb[44].mxu1 %vm547_vm1, %v8576_v47  ;;  %7830 = vmatprep.subr.mxu1 %v8144_v0 }
 0x5e0   : > { %7818 = vmatmul.mubr.msk.f32.vlgmr.msra.gmra.mrb[44].mxu0 %vm547_vm1, %v8643_v59  ;;  %7831 = vmatpush3.msk.msra.mxu1 %vm551_vm15, %v4789_v28 }
 0x5e1   : > { %7826 = vmatpush3.msk.msra.mxu0 %vm551_vm15, %v8530_v42  ;;  %7827 = vmatprep.mubr.msk.f32.mxu0 %vm8157_vm0, %v8144_v0  ;;  %v8046_v42 = vld [vmem:[%s9307_s1] sm:$0xff] }
 0x5e2   : > { %7832 = vmatprep.mubr.msk.f32.mxu1 %vm8157_vm0, %v8144_v0  ;;  %7835 = vmatprep.subr.mxu0 %v8144_v0 }
 0x5e3   : > { %7833 = vmatmul.mubr.msk.f32.vlgmr.msra.gmra.mrb[46].mxu1 %vm547_vm1, %v8587_v50  ;;  %7840 = vmatprep.subr.mxu1 %v8144_v0 }
 0x5e4   : > { %7828 = vmatmul.mubr.msk.f32.vlgmr.msra.gmra.mrb[46].mxu0 %vm547_vm1, %v8335_v4  ;;  %7841 = vmatpush3.msk.msra.mxu1 %vm551_vm15, %v4959_v30 }
 0x5e5   : > { %7836 = vmatpush3.msk.msra.mxu0 %vm551_vm15, %v8431_v36  ;;  %7837 = vmatprep.mubr.msk.f32.mxu0 %vm8157_vm0, %v8144_v0  ;;  %v5287_v36 = vpop.permute.xlu1 %5286 }
 0x5e6   : > { %7842 = vmatprep.mubr.msk.f32.mxu1 %vm8157_vm0, %v8144_v0  ;;  %7845 = vmatprep.subr.mxu0 %v8144_v0 }
 0x5e7   : > { %7843 = vmatmul.mubr.msk.f32.vlgmr.msra.gmra.mrb[48].mxu1 %vm547_vm1, %v8604_v58  ;;  %7850 = vmatprep.subr.mxu1 %v8144_v0 }
 0x5e8   : > { %7838 = vmatmul.mubr.msk.f32.vlgmr.msra.gmra.mrb[48].mxu0 %vm547_vm1, %v8364_v19  ;;  %7851 = vmatpush3.msk.msra.mxu1 %vm551_vm15, %v8442_v51  ;;  %v5451_v51 = vpop.permute.xlu0 %5450 }
 0x5e9   : > { %7846 = vmatpush3.msk.msra.mxu0 %vm551_vm15, %v5038_v20  ;;  %7847 = vmatprep.mubr.msk.f32.mxu0 %vm8157_vm0, %v8144_v0  ;;  %v5604_v31 = vpop.permute.xlu1 %5603 }
 0x5ea   : > { %7852 = vmatprep.mubr.msk.f32.mxu1 %vm8157_vm0, %v8144_v0  ;;  %7855 = vmatprep.subr.mxu0 %v8144_v0 }
 0x5eb   : > { %7853 = vmatmul.mubr.msk.f32.vlgmr.msra.gmra.mrb[50].mxu1 %vm547_vm1, %v8626_v2  ;;  %7860 = vmatprep.subr.mxu1 %v8144_v0 }
 0x5ec   : > { %7848 = vmatmul.mubr.msk.f32.vlgmr.msra.gmra.mrb[50].mxu0 %vm547_vm1, %v8596_v53  ;;  %7861 = vmatpush3.msk.msra.mxu1 %vm551_vm15, %v5287_v36  ;;  %v5774_v32 = vpop.permute.xlu0 %5773 }
 0x5ed   : > { %7856 = vmatpush3.msk.msra.mxu0 %vm551_vm15, %v5208_v22  ;;  %7857 = vmatprep.mubr.msk.f32.mxu0 %vm8157_vm0, %v8144_v0  ;;  %v8937_v33 = vpop.f32.mrb[0].mxu1 }
 0x5ee   : > { %7862 = vmatprep.mubr.msk.f32.mxu1 %vm8157_vm0, %v8144_v0  ;;  %7865 = vmatprep.subr.mxu0 %v8144_v0  ;;  %v7604_v34 = vpop.f32.mrb[1].mxu1 }
 0x5ef   : > { %7863 = vmatmul.mubr.msk.f32.vlgmr.msra.gmra.mrb[52].mxu1 %vm547_vm1, %v8643_v59  ;;  %7870 = vmatprep.subr.mxu1 %v8144_v0 }
 0x5f0   : > { %7858 = vmatmul.mubr.msk.f32.vlgmr.msra.gmra.mrb[52].mxu0 %vm547_vm1, %v8617_v61  ;;  %7871 = vmatpush3.msk.msra.mxu1 %vm551_vm15, %v8455_v6  ;;  %v5853_v6 = vpop.permute.xlu1 %5852 }
 0x5f1   : > { %7866 = vmatpush3.msk.msra.mxu0 %vm551_vm15, %v5451_v51  ;;  %7867 = vmatprep.mubr.msk.f32.mxu0 %vm8157_vm0, %v8144_v0  ;;  %v8952_v37 = vpop.f32.mrb[2].mxu1 }
 0x5f2   : > { %7872 = vmatprep.mubr.msk.f32.mxu1 %vm8157_vm0, %v8144_v0  ;;  %7875 = vmatprep.subr.mxu0 %v8144_v0 }
 0x5f3   : > { %7873 = vmatmul.mubr.msk.f32.vlgmr.msra.gmra.mrb[54].mxu1 %vm547_vm1, %v8335_v4  ;;  %7880 = vmatprep.subr.mxu1 %v8144_v0  ;;  %v7614_v4 = vpop.f32.mrb[3].mxu1 }
 0x5f4   : > { %7868 = vmatmul.mubr.msk.f32.vlgmr.msra.gmra.mrb[54].mxu0 %vm547_vm1, %v8576_v47  ;;  %7881 = vmatpush3.msk.msra.mxu1 %vm551_vm15, %v8464_v24  ;;  %v6023_v24 = vpop.permute.xlu0 %6022 }
 0x5f5   : > { %7876 = vmatpush3.msk.msra.mxu0 %vm551_vm15, %v5604_v31  ;;  %7877 = vmatprep.mubr.msk.f32.mxu0 %vm8157_vm0, %v8144_v0 }
 0x5f6   : > { %7882 = vmatprep.mubr.msk.f32.mxu1 %vm8157_vm0, %v8144_v0  ;;  %7885 = vmatprep.subr.mxu0 %v8144_v0 }
 0x5f7   : > { %7883 = vmatmul.mubr.msk.f32.vlgmr.msra.gmra.mrb[56].mxu1 %vm547_vm1, %v8364_v19  ;;  %7890 = vmatprep.subr.mxu1 %v8144_v0  ;;  %v6102_v19 = vpop.permute.xlu1 %6101 }
 0x5f8   : > { %7878 = vmatmul.mubr.msk.f32.vlgmr.msra.gmra.mrb[56].mxu0 %vm547_vm1, %v8587_v50  ;;  %7891 = vmatpush3.msk.msra.mxu1 %vm551_vm15, %v5853_v6  ;;  %v6266_v38 = vpop.permute.xlu0 %6265 }
 0x5f9   : > { %7886 = vmatpush3.msk.msra.mxu0 %vm551_vm15, %v5774_v32  ;;  %7887 = vmatprep.mubr.msk.f32.mxu0 %vm8157_vm0, %v8144_v0 }
 0x5fa   : > { %7892 = vmatprep.mubr.msk.f32.mxu1 %vm8157_vm0, %v8144_v0  ;;  %7895 = vmatprep.subr.mxu0 %v8144_v0 }
 0x5fb   : > { %7893 = vmatmul.mubr.msk.f32.vlgmr.msra.gmra.mrb[58].mxu1 %vm547_vm1, %v8596_v53  ;;  %7900 = vmatprep.subr.mxu1 %v8144_v0 }
 0x5fc   : > { %7888 = vmatmul.mubr.msk.f32.vlgmr.msra.gmra.mrb[58].mxu0 %vm547_vm1, %v8604_v58  ;;  %7901 = vmatpush3.msk.msra.mxu1 %vm551_vm15, %v6023_v24  ;;  %v6589_v39 = vpop.permute.xlu0 %6588 }
 0x5fd   : > { %7896 = vmatpush3.msk.msra.mxu0 %vm551_vm15, %v8473_v40  ;;  %7897 = vmatprep.mubr.msk.f32.mxu0 %vm8157_vm0, %v8144_v0  ;;  %v6419_v40 = vpop.permute.xlu1 %6418 }
 0x5fe   : > { %7902 = vmatprep.mubr.msk.f32.mxu1 %vm8157_vm0, %v8144_v0  ;;  %7905 = vmatprep.subr.mxu0 %v8144_v0 }
 0x5ff   : > { %7903 = vmatmul.mubr.msk.f32.vlgmr.msra.gmra.mrb[60].mxu1 %vm547_vm1, %v8617_v61  ;;  %7910 = vmatprep.subr.mxu1 %v8144_v0 }
 0x600   : > { %7898 = vmatmul.mubr.msk.f32.vlgmr.msra.gmra.mrb[60].mxu0 %vm547_vm1, %v8626_v2  ;;  %7911 = vmatpush3.msk.msra.mxu1 %vm551_vm15, %v6266_v38  ;;  %v6838_v44 = vpop.permute.xlu0 %6837 }
 0x601   : > { %7906 = vmatpush3.msk.msra.mxu0 %vm551_vm15, %v6102_v19  ;;  %7907 = vmatprep.mubr.msk.f32.mxu0 %vm8157_vm0, %v8144_v0  ;;  %v6668_v41 = vpop.permute.xlu1 %6667 }
 0x602   : > { %7912 = vmatprep.mubr.msk.f32.mxu1 %vm8157_vm0, %v8144_v0  ;;  %7915 = vmatprep.subr.mxu0 %v8144_v0 }
 0x603   : > { %7913 = vmatmul.mubr.msk.f32.vlgmr.msra.gmra.mrb[62].mxu1 %vm547_vm1, %v8576_v47  ;;  %7920 = vmatprep.subr.mxu1 %v8144_v0 }
 0x604   : > { %7908 = vmatmul.mubr.msk.f32.vlgmr.msra.gmra.mrb[62].mxu0 %vm547_vm1, %v8643_v59  ;;  %7921 = vmatpush3.msk.msra.mxu1 %vm551_vm15, %v6419_v40  ;;  %v9054_v29 = vpop.permute.xlu0 %1285 }
 0x605   : > { %7916 = vmatpush3.msk.msra.mxu0 %vm551_vm15, %v8486_v55  ;;  %7917 = vmatprep.mubr.msk.f32.mxu0 %vm8157_vm0, %v8144_v0  ;;  %v8047_v55 = vld [vmem:[%s9307_s1 + $0x18] sm:$0xff] }
 0x606   : > { %7922 = vmatprep.mubr.msk.f32.mxu1 %vm8157_vm0, %v8144_v0  ;;  %7925 = vmatprep.subr.mxu0 %v8144_v0 }
 0x607   : > { %7923 = vmatmul.mubr.msk.f32.vlgmr.msra.gmra.mrb[64].mxu1 %vm547_vm1, %v8587_v50  ;;  %7930 = vmatprep.subr.mxu1 %v8144_v0 }
 0x608   : > { %7918 = vmatmul.mubr.msk.f32.vlgmr.msra.gmra.mrb[64].mxu0 %vm547_vm1, %v8046_v42  ;;  %7931 = vmatpush3.msk.msra.mxu1 %vm551_vm15, %v6589_v39 }
 0x609   : > { %7926 = vmatpush3.msk.msra.mxu0 %vm551_vm15, %v8494_v9  ;;  %7927 = vmatprep.mubr.msk.f32.mxu0 %vm8157_vm0, %v8144_v0  ;;  %v6917_v9 = vpop.permute.xlu1 %6916 }
 0x60a   : > { %7932 = vmatprep.mubr.msk.f32.mxu1 %vm8157_vm0, %v8144_v0  ;;  %7935 = vmatprep.subr.mxu0 %v8144_v0 }
 0x60b   : > { %7933 = vmatmul.mubr.msk.f32.vlgmr.msra.gmra.mrb[66].mxu1 %vm547_vm1, %v8604_v58  ;;  %7940 = vmatprep.subr.mxu1 %v8144_v0 }
 0x60c   : > { %7928 = vmatmul.mubr.msk.f32.vlgmr.msra.gmra.mrb[66].mxu0 %vm547_vm1, %v8047_v55  ;;  %7941 = vmatpush3.msk.msra.mxu1 %vm551_vm15, %v8504_v18 }
 0x60d   : > { %7936 = vmatpush3.msk.msra.mxu0 %vm551_vm15, %v6668_v41  ;;  %7937 = vmatprep.mubr.msk.f32.mxu0 %vm8157_vm0, %v8144_v0 }
 0x60e   : > { %7942 = vmatprep.mubr.msk.f32.mxu1 %vm8157_vm0, %v8144_v0  ;;  %7945 = vmatprep.subr.mxu0 %v8144_v0 }
 0x60f   : > { %7943 = vmatmul.mubr.msk.f32.vlgmr.msra.gmra.mrb[68].mxu1 %vm547_vm1, %v8626_v2  ;;  %7950 = vmatprep.subr.mxu1 %v8144_v0 }
 0x610   : > { %7938 = vmatmul.mubr.msk.f32.vlgmr.msra.gmra.mrb[68].mxu0 %vm547_vm1, %v8596_v53  ;;  %7951 = vmatpush3.msk.msra.mxu1 %vm551_vm15, %v6917_v9 }
 0x611   : > { %7946 = vmatpush3.msk.msra.mxu0 %vm551_vm15, %v6838_v44  ;;  %7947 = vmatprep.mubr.msk.f32.mxu0 %vm8157_vm0, %v8144_v0 }
 0x612   : > { %7952 = vmatprep.mubr.msk.f32.mxu1 %vm8157_vm0, %v8144_v0 }
 0x613   : > { %7953 = vmatmul.mubr.msk.f32.vlgmr.msra.gmra.mrb[70].mxu1 %vm547_vm1, %v8643_v59 }
 0x614   : > { %7948 = vmatmul.mubr.msk.f32.vlgmr.msra.gmra.mrb[70].mxu0 %vm547_vm1, %v8617_v61  ;;  %v1295_v61 = vunpack.c.l.s4 %v8159_v1 }
 0x616   : > { %v1296_v43 = vunpack.c.0.s8 %v1295_v61 }
 0x618   : > { %v9057_v21 = vsub.s32 %v1296_v43, %v1298_v10 }
 0x65b   : > { %v620_v18 = vpop.f32.mrb[0].mxu0 }
 0x65c   : > { %v696_v45 = vadd.f32 %v8937_v33, %v620_v18  ;;  %v7599_v47 = vpop.f32.mrb[1].mxu0 }
 0x65f   : > { %v774_v48 = vpop.f32.mrb[2].mxu0 }
 0x660   : > { %v778_v49 = vadd.f32 %v774_v48, %v696_v45  ;;  %v7609_v50 = vpop.f32.mrb[3].mxu0 }
 0x662   : > { %v870_v52 = vadd.f32 %v8952_v37, %v778_v49  ;;  %v1026_v53 = vpop.f32.mrb[4].mxu1 }
 0x663   : > { %v946_v56 = vpop.f32.mrb[4].mxu0  ;;  %v7624_v58 = vpop.f32.mrb[5].mxu1 }
 0x664   : > { %v950_v60 = vadd.f32 %v946_v56, %v870_v52  ;;  %v7619_v0 = vpop.f32.mrb[5].mxu0 }
 0x666   : > { %v1030_v2 = vadd.f32 %v1026_v53, %v950_v60  ;;  %v1198_v63 = vpop.f32.mrb[6].mxu1 }
 0x667   : > { %v1118_v35 = vpop.f32.mrb[6].mxu0  ;;  %v7634_v59 = vpop.f32.mrb[7].mxu1 }
 0x668   : > { %v1122_v8 = vadd.f32 %v1118_v35, %v1030_v2  ;;  %v7629_v7 = vpop.f32.mrb[7].mxu0 }
 0x66a   : > { %v1202_v17 = vadd.f32 %v1198_v63, %v1122_v8  ;;  %v1448_v5 = vpop.f32.mrb[8].mxu1 }
 0x66b   : > { %v1278_v62 = vpop.f32.mrb[8].mxu0  ;;  %v7644_v54 = vpop.f32.mrb[9].mxu1 }
 0x66c   : > { %v1282_v11 = vadd.f32 %v1278_v62, %v1202_v17  ;;  %v7639_v13 = vpop.f32.mrb[9].mxu0 }
 0x66e   : > { %v1288_v12 = vadd.f32 %v9054_v29, %v1282_v11  ;;  %v1601_v14 = vpop.f32.mrb[10].mxu1 }
 0x66f   : > { %v1523_v57 = vpop.f32.mrb[10].mxu0  ;;  %v7654_v46 = vpop.f32.mrb[11].mxu1 }
 0x670   : > { %vm1289_vm2 = vcmp.ge.f32.partialorder %v1288_v12, 0.0  ;;  %v1290_v16 = vmul.f32 0.1, %v1288_v12  ;;  %v1524_v23 = vadd.f32 %v1523_v57, %v1448_v5  ;;  %v7649_v15 = vpop.f32.mrb[11].mxu0 }
 0x672   : > { %v1291_v25 = vsel %vm1289_vm2, %v1288_v12, %v1290_v16  ;;  %v1605_v26 = vadd.f32 %v1601_v14, %v1524_v23  ;;  %v1771_v27 = vpop.f32.mrb[12].mxu1 }
 0x673   : > { %v1293_v28 = vcombine.high %v1291_v25, %v1291_v25  ;;  %v1300_v30 = vrot.slane %v1291_v25, %v9057_v21  ;;  %v1692_v20 = vpop.f32.mrb[12].mxu0  ;;  %v7664_v22 = vpop.f32.mrb[13].mxu1 }
 0x674   : > { %v1696_v36 = vadd.f32 %v1692_v20, %v1605_v26  ;;  %v7659_v51 = vpop.f32.mrb[13].mxu0 }
 0x675   : > { %v1307_v31 = vrot.slane %v1293_v28, %v9057_v21  ;;  %v1308_v32 = vcombine.high %v1300_v30, %v1300_v30  ;;  %v1316_v33 = vrot.slane %v1300_v30, %v9057_v21 }
 0x676   : > { %v1775_v34 = vadd.f32 %v1771_v27, %v1696_v36  ;;  %v1941_v6 = vpop.f32.mrb[14].mxu1 }
 0x677   : > { %v1309_v37 = vcombine.high %v1307_v31, %v1307_v31  ;;  %v1323_v4 = vrot.slane %v1307_v31, %v9057_v21  ;;  %v1330_v24 = vrot.slane %v1308_v32, %v9057_v21  ;;  %v1338_v19 = vcombine.high %v1316_v33, %v1316_v33  ;;  %1351 = vst.msk [vmem:[%s8280_s20] sm:$0x1] %vm1350_vm3, %v1316_v33  ;;  %v1850_v38 = vpop.f32.mrb[14].mxu0  ;;  %v7674_v40 = vpop.f32.mrb[15].mxu1 }
 0x678   : > { %v1854_v39 = vadd.f32 %v1850_v38, %v1775_v34  ;;  %v7669_v41 = vpop.f32.mrb[15].mxu0 }
 0x679   : > { %v1337_v42 = vrot.slane %v1309_v37, %v9057_v21  ;;  %v1339_v55 = vcombine.high %v1323_v4, %v1323_v4  ;;  %v1340_v9 = vcombine.high %v1330_v24, %v1330_v24  ;;  %1352 = vst.msk [vmem:[%s8280_s20 + $0x8] sm:$0x1] %vm1350_vm3, %v1330_v24  ;;  %1353 = vst.msk [vmem:[%s8280_s20 + $0x10] sm:$0x1] %vm1350_vm3, %v1338_v19 }
 0x67a   : > { %1355 = vst.msk [vmem:[%s8280_s20 + $0x20] sm:$0x1] %vm1350_vm3, %v1323_v4  ;;  %v1945_v44 = vadd.f32 %v1941_v6, %v1854_v39  ;;  %v2099_v18 = vpop.f32.mrb[16].mxu1 }
 0x67b   : > { %v1341_v45 = vcombine.high %v1337_v42, %v1337_v42  ;;  %1354 = vst.msk [vmem:[%s8280_s20 + $0x18] sm:$0x1] %vm1350_vm3, %v1340_v9  ;;  %1356 = vst.msk [vmem:[%s8280_s20 + $0x28] sm:$0x1] %vm1350_vm3, %v1337_v42  ;;  %v2020_v47 = vpop.f32.mrb[16].mxu0  ;;  %v7684_v48 = vpop.f32.mrb[17].mxu1 }
 0x67c   : > { %1357 = vst.msk [vmem:[%s8280_s20 + $0x30] sm:$0x1] %vm1350_vm3, %v1339_v55  ;;  %v2024_v49 = vadd.f32 %v2020_v47, %v1945_v44  ;;  %v7679_v50 = vpop.f32.mrb[17].mxu0 }
 0x67d   : > { %1358 = vst.msk [vmem:[%s8280_s20 + $0x38] sm:$0x1] %vm1350_vm3, %v1341_v45 }
 0x67e   : > { %v2103_v52 = vadd.f32 %v2099_v18, %v2024_v49  ;;  %v2338_v53 = vpop.f32.mrb[18].mxu1 }
 0x67f   : > { %v2263_v56 = vpop.f32.mrb[18].mxu0  ;;  %v7694_v58 = vpop.f32.mrb[19].mxu1 }
 0x680   : > { %v2104_v60 = vadd.f32 %v2103_v52, %v9054_v29  ;;  %v2339_v0 = vadd.f32 %v2338_v53, %v2263_v56  ;;  %v7689_v2 = vpop.f32.mrb[19].mxu0 }
 0x682   : > { %vm2105_vm4 = vcmp.ge.f32.partialorder %v2104_v60, 0.0  ;;  %v2106_v63 = vmul.f32 0.1, %v2104_v60  ;;  %v2507_v35 = vpop.f32.mrb[20].mxu1 }
 0x683   : > { %v2416_v59 = vpop.f32.mrb[20].mxu0  ;;  %v7704_v1 = vpop.f32.mrb[21].mxu1 }
 0x684   : > { %v2107_v61 = vsel %vm2105_vm4, %v2104_v60, %v2106_v63  ;;  %v2420_v3 = vadd.f32 %v2416_v59, %v2339_v0  ;;  %v7699_v8 = vpop.f32.mrb[21].mxu0 }
 0x685   : > { %v2109_v7 = vcombine.high %v2107_v61, %v2107_v61  ;;  %v2116_v17 = vrot.slane %v2107_v61, %v9057_v21 }
 0x686   : > { %v2511_v5 = vadd.f32 %v2507_v35, %v2420_v3  ;;  %v2665_v62 = vpop.f32.mrb[22].mxu1 }
 0x687   : > { %v2123_v43 = vrot.slane %v2109_v7, %v9057_v21  ;;  %v2124_v10 = vcombine.high %v2116_v17, %v2116_v17  ;;  %v2132_v54 = vrot.slane %v2116_v17, %v9057_v21  ;;  %v2586_v11 = vpop.f32.mrb[22].mxu0  ;;  %v7714_v13 = vpop.f32.mrb[23].mxu1 }
 0x688   : > { %v2590_v12 = vadd.f32 %v2586_v11, %v2511_v5  ;;  %v7709_v14 = vpop.f32.mrb[23].mxu0 }
 0x689   : > { %v2125_v57 = vcombine.high %v2123_v43, %v2123_v43  ;;  %v2139_v46 = vrot.slane %v2123_v43, %v9057_v21  ;;  %v2146_v16 = vrot.slane %v2124_v10, %v9057_v21  ;;  %v2154_v23 = vcombine.high %v2132_v54, %v2132_v54  ;;  %2166 = vst.msk [vmem:[%s8280_s20 + $0x1] sm:$0x1] %vm1350_vm3, %v2132_v54 }
 0x68a   : > { %v2669_v15 = vadd.f32 %v2665_v62, %v2590_v12  ;;  %v2835_v25 = vpop.f32.mrb[24].mxu1 }
 0x68b   : > { %v2153_v26 = vrot.slane %v2125_v57, %v9057_v21  ;;  %v2155_v27 = vcombine.high %v2139_v46, %v2139_v46  ;;  %v2156_v28 = vcombine.high %v2146_v16, %v2146_v16  ;;  %2167 = vst.msk [vmem:[%s8280_s20 + $0x9] sm:$0x1] %vm1350_vm3, %v2146_v16  ;;  %2168 = vst.msk [vmem:[%s8280_s20 + $0x11] sm:$0x1] %vm1350_vm3, %v2154_v23  ;;  %v2756_v30 = vpop.f32.mrb[24].mxu0  ;;  %v7724_v20 = vpop.f32.mrb[25].mxu1 }
 0x68c   : > { %2170 = vst.msk [vmem:[%s8280_s20 + $0x21] sm:$0x1] %vm1350_vm3, %v2139_v46  ;;  %v2760_v22 = vadd.f32 %v2756_v30, %v2669_v15  ;;  %v7719_v36 = vpop.f32.mrb[25].mxu0 }
 0x68d   : > { %v2157_v51 = vcombine.high %v2153_v26, %v2153_v26  ;;  %2169 = vst.msk [vmem:[%s8280_s20 + $0x19] sm:$0x1] %vm1350_vm3, %v2156_v28  ;;  %2171 = vst.msk [vmem:[%s8280_s20 + $0x29] sm:$0x1] %vm1350_vm3, %v2153_v26 }
 0x68e   : > { %2172 = vst.msk [vmem:[%s8280_s20 + $0x31] sm:$0x1] %vm1350_vm3, %v2155_v27  ;;  %v2839_v31 = vadd.f32 %v2835_v25, %v2760_v22  ;;  %v3078_v32 = vpop.f32.mrb[26].mxu1 }
 0x68f   : > { %2173 = vst.msk [vmem:[%s8280_s20 + $0x39] sm:$0x1] %vm1350_vm3, %v2157_v51  ;;  %v2914_v33 = vpop.f32.mrb[26].mxu0  ;;  %v7734_v34 = vpop.f32.mrb[27].mxu1 }
 0x690   : > { %v2918_v6 = vadd.f32 %v2914_v33, %v2839_v31  ;;  %v7729_v37 = vpop.f32.mrb[27].mxu0 }
 0x692   : > { %v2919_v4 = vadd.f32 %v2918_v6, %v9054_v29  ;;  %v3231_v24 = vpop.f32.mrb[28].mxu1 }
 0x693   : > { %v3153_v19 = vpop.f32.mrb[28].mxu0  ;;  %v7744_v38 = vpop.f32.mrb[29].mxu1 }
 0x694   : > { %vm2920_vm5 = vcmp.ge.f32.partialorder %v2919_v4, 0.0  ;;  %v2921_v40 = vmul.f32 0.1, %v2919_v4  ;;  %v3154_v39 = vadd.f32 %v3153_v19, %v3078_v32  ;;  %v7739_v41 = vpop.f32.mrb[29].mxu0 }
 0x696   : > { %v2922_v42 = vsel %vm2920_vm5, %v2919_v4, %v2921_v40  ;;  %v3235_v55 = vadd.f32 %v3231_v24, %v3154_v39  ;;  %v3401_v9 = vpop.f32.mrb[30].mxu1 }
 0x697   : > { %v2924_v44 = vcombine.high %v2922_v42, %v2922_v42  ;;  %v2931_v18 = vrot.slane %v2922_v42, %v9057_v21  ;;  %v3322_v45 = vpop.f32.mrb[30].mxu0  ;;  %v7754_v47 = vpop.f32.mrb[31].mxu1 }
 0x698   : > { %v3326_v48 = vadd.f32 %v3322_v45, %v3235_v55  ;;  %v7749_v49 = vpop.f32.mrb[31].mxu0 }
 0x699   : > { %v2938_v50 = vrot.slane %v2924_v44, %v9057_v21  ;;  %v2939_v52 = vcombine.high %v2931_v18, %v2931_v18  ;;  %v2947_v53 = vrot.slane %v2931_v18, %v9057_v21 }
 0x69a   : > { %v3405_v56 = vadd.f32 %v3401_v9, %v3326_v48  ;;  %v3571_v58 = vpop.f32.mrb[32].mxu1 }
 0x69b   : > { %v2940_v60 = vcombine.high %v2938_v50, %v2938_v50  ;;  %v2954_v0 = vrot.slane %v2938_v50, %v9057_v21  ;;  %v2961_v2 = vrot.slane %v2939_v52, %v9057_v21  ;;  %v2969_v63 = vcombine.high %v2947_v53, %v2947_v53  ;;  %2981 = vst.msk [vmem:[%s8280_s20 + $0x2] sm:$0x1] %vm1350_vm3, %v2947_v53  ;;  %v3480_v35 = vpop.f32.mrb[32].mxu0  ;;  %v7764_v59 = vpop.f32.mrb[33].mxu1 }
 0x69c   : > { %v3484_v1 = vadd.f32 %v3480_v35, %v3405_v56  ;;  %v7759_v61 = vpop.f32.mrb[33].mxu0 }
 0x69d   : > { %v2968_v3 = vrot.slane %v2940_v60, %v9057_v21  ;;  %v2970_v8 = vcombine.high %v2954_v0, %v2954_v0  ;;  %v2971_v7 = vcombine.high %v2961_v2, %v2961_v2  ;;  %2982 = vst.msk [vmem:[%s8280_s20 + $0xa] sm:$0x1] %vm1350_vm3, %v2961_v2  ;;  %2983 = vst.msk [vmem:[%s8280_s20 + $0x12] sm:$0x1] %vm1350_vm3, %v2969_v63 }
 0x69e   : > { %2985 = vst.msk [vmem:[%s8280_s20 + $0x22] sm:$0x1] %vm1350_vm3, %v2954_v0  ;;  %v3575_v17 = vadd.f32 %v3571_v58, %v3484_v1  ;;  %v3729_v5 = vpop.f32.mrb[34].mxu1 }
 0x69f   : > { %v2972_v62 = vcombine.high %v2968_v3, %v2968_v3  ;;  %2984 = vst.msk [vmem:[%s8280_s20 + $0x1a] sm:$0x1] %vm1350_vm3, %v2971_v7  ;;  %2986 = vst.msk [vmem:[%s8280_s20 + $0x2a] sm:$0x1] %vm1350_vm3, %v2968_v3  ;;  %v3650_v43 = vpop.f32.mrb[34].mxu0  ;;  %v7774_v10 = vpop.f32.mrb[35].mxu1 }
 0x6a0   : > { %2987 = vst.msk [vmem:[%s8280_s20 + $0x32] sm:$0x1] %vm1350_vm3, %v2970_v8  ;;  %v3654_v54 = vadd.f32 %v3650_v43, %v3575_v17  ;;  %v7769_v11 = vpop.f32.mrb[35].mxu0 }
 0x6a1   : > { %2988 = vst.msk [vmem:[%s8280_s20 + $0x3a] sm:$0x1] %vm1350_vm3, %v2972_v62 }
 0x6a2   : > { %v3733_v13 = vadd.f32 %v3729_v5, %v3654_v54  ;;  %v3968_v12 = vpop.f32.mrb[36].mxu1 }
 0x6a3   : > { %v3893_v14 = vpop.f32.mrb[36].mxu0  ;;  %v7784_v57 = vpop.f32.mrb[37].mxu1 }
 0x6a4   : > { %v3734_v46 = vadd.f32 %v3733_v13, %v9054_v29  ;;  %v3969_v16 = vadd.f32 %v3968_v12, %v3893_v14  ;;  %v7779_v23 = vpop.f32.mrb[37].mxu0 }
 0x6a6   : > { %vm3735_vm6 = vcmp.ge.f32.partialorder %v3734_v46, 0.0  ;;  %v3736_v15 = vmul.f32 0.1, %v3734_v46  ;;  %v4137_v25 = vpop.f32.mrb[38].mxu1 }
 0x6a7   : > { %v4046_v26 = vpop.f32.mrb[38].mxu0  ;;  %v7794_v27 = vpop.f32.mrb[39].mxu1 }
 0x6a8   : > { %v3737_v28 = vsel %vm3735_vm6, %v3734_v46, %v3736_v15  ;;  %v4050_v30 = vadd.f32 %v4046_v26, %v3969_v16  ;;  %v7789_v20 = vpop.f32.mrb[39].mxu0 }
 0x6a9   : > { %v3739_v22 = vcombine.high %v3737_v28, %v3737_v28  ;;  %v3746_v36 = vrot.slane %v3737_v28, %v9057_v21 }
 0x6aa   : > { %v4141_v51 = vadd.f32 %v4137_v25, %v4050_v30  ;;  %v4295_v31 = vpop.f32.mrb[40].mxu1 }
 0x6ab   : > { %v3753_v32 = vrot.slane %v3739_v22, %v9057_v21  ;;  %v3754_v33 = vcombine.high %v3746_v36, %v3746_v36  ;;  %v3762_v34 = vrot.slane %v3746_v36, %v9057_v21  ;;  %v4216_v6 = vpop.f32.mrb[40].mxu0  ;;  %v7804_v37 = vpop.f32.mrb[41].mxu1 }
 0x6ac   : > { %v4220_v4 = vadd.f32 %v4216_v6, %v4141_v51  ;;  %v7799_v24 = vpop.f32.mrb[41].mxu0 }
 0x6ad   : > { %v3755_v19 = vcombine.high %v3753_v32, %v3753_v32  ;;  %v3769_v38 = vrot.slane %v3753_v32, %v9057_v21  ;;  %v3776_v40 = vrot.slane %v3754_v33, %v9057_v21  ;;  %v3784_v39 = vcombine.high %v3762_v34, %v3762_v34  ;;  %3796 = vst.msk [vmem:[%s8280_s20 + $0x3] sm:$0x1] %vm1350_vm3, %v3762_v34 }
 0x6ae   : > { %v4299_v41 = vadd.f32 %v4295_v31, %v4220_v4  ;;  %v4465_v42 = vpop.f32.mrb[42].mxu1 }
 0x6af   : > { %v3783_v55 = vrot.slane %v3755_v19, %v9057_v21  ;;  %v3785_v9 = vcombine.high %v3769_v38, %v3769_v38  ;;  %v3786_v44 = vcombine.high %v3776_v40, %v3776_v40  ;;  %3797 = vst.msk [vmem:[%s8280_s20 + $0xb] sm:$0x1] %vm1350_vm3, %v3776_v40  ;;  %3798 = vst.msk [vmem:[%s8280_s20 + $0x13] sm:$0x1] %vm1350_vm3, %v3784_v39  ;;  %v4386_v18 = vpop.f32.mrb[42].mxu0  ;;  %v7814_v45 = vpop.f32.mrb[43].mxu1 }
 0x6b0   : > { %3800 = vst.msk [vmem:[%s8280_s20 + $0x23] sm:$0x1] %vm1350_vm3, %v3769_v38  ;;  %v4390_v47 = vadd.f32 %v4386_v18, %v4299_v41  ;;  %v7809_v48 = vpop.f32.mrb[43].mxu0 }
 0x6b1   : > { %v3787_v49 = vcombine.high %v3783_v55, %v3783_v55  ;;  %3799 = vst.msk [vmem:[%s8280_s20 + $0x1b] sm:$0x1] %vm1350_vm3, %v3786_v44  ;;  %3801 = vst.msk [vmem:[%s8280_s20 + $0x2b] sm:$0x1] %vm1350_vm3, %v3783_v55 }
 0x6b2   : > { %3802 = vst.msk [vmem:[%s8280_s20 + $0x33] sm:$0x1] %vm1350_vm3, %v3785_v9  ;;  %v4469_v50 = vadd.f32 %v4465_v42, %v4390_v47  ;;  %v4708_v52 = vpop.f32.mrb[44].mxu1 }
 0x6b3   : > { %3803 = vst.msk [vmem:[%s8280_s20 + $0x3b] sm:$0x1] %vm1350_vm3, %v3787_v49  ;;  %v4544_v53 = vpop.f32.mrb[44].mxu0  ;;  %v7824_v56 = vpop.f32.mrb[45].mxu1 }
 0x6b4   : > { %v4548_v58 = vadd.f32 %v4544_v53, %v4469_v50  ;;  %v7819_v60 = vpop.f32.mrb[45].mxu0 }
 0x6b6   : > { %v4549_v0 = vadd.f32 %v4548_v58, %v9054_v29  ;;  %v4861_v2 = vpop.f32.mrb[46].mxu1 }
 0x6b7   : > { %v4783_v63 = vpop.f32.mrb[46].mxu0  ;;  %v7834_v35 = vpop.f32.mrb[47].mxu1 }
 0x6b8   : > { %vm4550_vm7 = vcmp.ge.f32.partialorder %v4549_v0, 0.0  ;;  %v4551_v59 = vmul.f32 0.1, %v4549_v0  ;;  %v4784_v1 = vadd.f32 %v4783_v63, %v4708_v52  ;;  %v7829_v61 = vpop.f32.mrb[47].mxu0 }
 0x6ba   : > { %v4552_v3 = vsel %vm4550_vm7, %v4549_v0, %v4551_v59  ;;  %v4865_v8 = vadd.f32 %v4861_v2, %v4784_v1  ;;  %v5031_v7 = vpop.f32.mrb[48].mxu1 }
 0x6bb   : > { %v4554_v17 = vcombine.high %v4552_v3, %v4552_v3  ;;  %v4561_v5 = vrot.slane %v4552_v3, %v9057_v21  ;;  %v4952_v62 = vpop.f32.mrb[48].mxu0  ;;  %v7844_v43 = vpop.f32.mrb[49].mxu1 }
 0x6bc   : > { %v4956_v10 = vadd.f32 %v4952_v62, %v4865_v8  ;;  %v7839_v54 = vpop.f32.mrb[49].mxu0 }
 0x6bd   : > { %v4568_v11 = vrot.slane %v4554_v17, %v9057_v21  ;;  %v4569_v13 = vcombine.high %v4561_v5, %v4561_v5  ;;  %v4577_v12 = vrot.slane %v4561_v5, %v9057_v21 }
 0x6be   : > { %v5035_v14 = vadd.f32 %v5031_v7, %v4956_v10  ;;  %v5201_v57 = vpop.f32.mrb[50].mxu1 }
 0x6bf   : > { %v4570_v46 = vcombine.high %v4568_v11, %v4568_v11  ;;  %v4584_v16 = vrot.slane %v4568_v11, %v9057_v21  ;;  %v4591_v23 = vrot.slane %v4569_v13, %v9057_v21  ;;  %v4599_v15 = vcombine.high %v4577_v12, %v4577_v12  ;;  %4611 = vst.msk [vmem:[%s8280_s20 + $0x4] sm:$0x1] %vm1350_vm3, %v4577_v12  ;;  %v5110_v25 = vpop.f32.mrb[50].mxu0  ;;  %v7854_v26 = vpop.f32.mrb[51].mxu1 }
 0x6c0   : > { %v5114_v27 = vadd.f32 %v5110_v25, %v5035_v14  ;;  %v7849_v28 = vpop.f32.mrb[51].mxu0 }
 0x6c1   : > { %v4598_v30 = vrot.slane %v4570_v46, %v9057_v21  ;;  %v4600_v20 = vcombine.high %v4584_v16, %v4584_v16  ;;  %v4601_v22 = vcombine.high %v4591_v23, %v4591_v23  ;;  %4612 = vst.msk [vmem:[%s8280_s20 + $0xc] sm:$0x1] %vm1350_vm3, %v4591_v23  ;;  %4613 = vst.msk [vmem:[%s8280_s20 + $0x14] sm:$0x1] %vm1350_vm3, %v4599_v15 }
 0x6c2   : > { %4615 = vst.msk [vmem:[%s8280_s20 + $0x24] sm:$0x1] %vm1350_vm3, %v4584_v16  ;;  %v5205_v36 = vadd.f32 %v5201_v57, %v5114_v27  ;;  %v5359_v51 = vpop.f32.mrb[52].mxu1 }
 0x6c3   : > { %v4602_v31 = vcombine.high %v4598_v30, %v4598_v30  ;;  %4614 = vst.msk [vmem:[%s8280_s20 + $0x1c] sm:$0x1] %vm1350_vm3, %v4601_v22  ;;  %4616 = vst.msk [vmem:[%s8280_s20 + $0x2c] sm:$0x1] %vm1350_vm3, %v4598_v30  ;;  %v5280_v32 = vpop.f32.mrb[52].mxu0  ;;  %v7864_v33 = vpop.f32.mrb[53].mxu1 }
 0x6c4   : > { %4617 = vst.msk [vmem:[%s8280_s20 + $0x34] sm:$0x1] %vm1350_vm3, %v4600_v20  ;;  %v5284_v34 = vadd.f32 %v5280_v32, %v5205_v36  ;;  %v7859_v6 = vpop.f32.mrb[53].mxu0 }
 0x6c5   : > { %4618 = vst.msk [vmem:[%s8280_s20 + $0x3c] sm:$0x1] %vm1350_vm3, %v4602_v31 }
 0x6c6   : > { %v5363_v37 = vadd.f32 %v5359_v51, %v5284_v34  ;;  %v5598_v4 = vpop.f32.mrb[54].mxu1 }
 0x6c7   : > { %v5523_v24 = vpop.f32.mrb[54].mxu0  ;;  %v7874_v19 = vpop.f32.mrb[55].mxu1 }
 0x6c8   : > { %v5364_v38 = vadd.f32 %v5363_v37, %v9054_v29  ;;  %v5599_v40 = vadd.f32 %v5598_v4, %v5523_v24  ;;  %v7869_v39 = vpop.f32.mrb[55].mxu0 }
 0x6ca   : > { %vm5365_vm8 = vcmp.ge.f32.partialorder %v5364_v38, 0.0  ;;  %v5366_v41 = vmul.f32 0.1, %v5364_v38  ;;  %v5767_v42 = vpop.f32.mrb[56].mxu1 }
 0x6cb   : > { %v5676_v55 = vpop.f32.mrb[56].mxu0  ;;  %v7884_v9 = vpop.f32.mrb[57].mxu1 }
 0x6cc   : > { %v5367_v44 = vsel %vm5365_vm8, %v5364_v38, %v5366_v41  ;;  %v5680_v18 = vadd.f32 %v5676_v55, %v5599_v40  ;;  %v7879_v45 = vpop.f32.mrb[57].mxu0 }
 0x6cd   : > { %v5369_v47 = vcombine.high %v5367_v44, %v5367_v44  ;;  %v5376_v48 = vrot.slane %v5367_v44, %v9057_v21 }
 0x6ce   : > { %v5771_v49 = vadd.f32 %v5767_v42, %v5680_v18  ;;  %v5925_v50 = vpop.f32.mrb[58].mxu1 }
 0x6cf   : > { %v5383_v52 = vrot.slane %v5369_v47, %v9057_v21  ;;  %v5384_v53 = vcombine.high %v5376_v48, %v5376_v48  ;;  %v5392_v56 = vrot.slane %v5376_v48, %v9057_v21  ;;  %v5846_v58 = vpop.f32.mrb[58].mxu0  ;;  %v7894_v60 = vpop.f32.mrb[59].mxu1 }
 0x6d0   : > { %v5850_v0 = vadd.f32 %v5846_v58, %v5771_v49  ;;  %v7889_v2 = vpop.f32.mrb[59].mxu0 }
 0x6d1   : > { %v5385_v63 = vcombine.high %v5383_v52, %v5383_v52  ;;  %v5399_v35 = vrot.slane %v5383_v52, %v9057_v21  ;;  %v5406_v59 = vrot.slane %v5384_v53, %v9057_v21  ;;  %v5414_v1 = vcombine.high %v5392_v56, %v5392_v56  ;;  %5426 = vst.msk [vmem:[%s8280_s20 + $0x5] sm:$0x1] %vm1350_vm3, %v5392_v56 }
 0x6d2   : > { %v5929_v61 = vadd.f32 %v5925_v50, %v5850_v0  ;;  %v6095_v3 = vpop.f32.mrb[60].mxu1 }
 0x6d3   : > { %v5413_v8 = vrot.slane %v5385_v63, %v9057_v21  ;;  %v5415_v7 = vcombine.high %v5399_v35, %v5399_v35  ;;  %v5416_v17 = vcombine.high %v5406_v59, %v5406_v59  ;;  %5427 = vst.msk [vmem:[%s8280_s20 + $0xd] sm:$0x1] %vm1350_vm3, %v5406_v59  ;;  %5428 = vst.msk [vmem:[%s8280_s20 + $0x15] sm:$0x1] %vm1350_vm3, %v5414_v1  ;;  %v6016_v5 = vpop.f32.mrb[60].mxu0  ;;  %v7904_v62 = vpop.f32.mrb[61].mxu1 }
 0x6d4   : > { %5430 = vst.msk [vmem:[%s8280_s20 + $0x25] sm:$0x1] %vm1350_vm3, %v5399_v35  ;;  %v6020_v43 = vadd.f32 %v6016_v5, %v5929_v61  ;;  %v7899_v10 = vpop.f32.mrb[61].mxu0 }
 0x6d5   : > { %v5417_v54 = vcombine.high %v5413_v8, %v5413_v8  ;;  %5429 = vst.msk [vmem:[%s8280_s20 + $0x1d] sm:$0x1] %vm1350_vm3, %v5416_v17  ;;  %5431 = vst.msk [vmem:[%s8280_s20 + $0x2d] sm:$0x1] %vm1350_vm3, %v5413_v8 }
 0x6d6   : > { %5432 = vst.msk [vmem:[%s8280_s20 + $0x35] sm:$0x1] %vm1350_vm3, %v5415_v7  ;;  %v6099_v11 = vadd.f32 %v6095_v3, %v6020_v43  ;;  %v6338_v13 = vpop.f32.mrb[62].mxu1 }
 0x6d7   : > { %5433 = vst.msk [vmem:[%s8280_s20 + $0x3d] sm:$0x1] %vm1350_vm3, %v5417_v54  ;;  %v6174_v12 = vpop.f32.mrb[62].mxu0  ;;  %v7914_v14 = vpop.f32.mrb[63].mxu1 }
 0x6d8   : > { %v6178_v57 = vadd.f32 %v6174_v12, %v6099_v11  ;;  %v7909_v46 = vpop.f32.mrb[63].mxu0 }
 0x6da   : > { %v6179_v16 = vadd.f32 %v6178_v57, %v9054_v29  ;;  %v6491_v23 = vpop.f32.mrb[64].mxu1 }
 0x6db   : > { %v6413_v15 = vpop.f32.mrb[64].mxu0  ;;  %v7924_v25 = vpop.f32.mrb[65].mxu1 }
 0x6dc   : > { %vm6180_vm9 = vcmp.ge.f32.partialorder %v6179_v16, 0.0  ;;  %v6181_v26 = vmul.f32 0.1, %v6179_v16  ;;  %v6414_v27 = vadd.f32 %v6413_v15, %v6338_v13  ;;  %v7919_v28 = vpop.f32.mrb[65].mxu0 }
 0x6de   : > { %v6182_v30 = vsel %vm6180_vm9, %v6179_v16, %v6181_v26  ;;  %v6495_v20 = vadd.f32 %v6491_v23, %v6414_v27  ;;  %v6661_v22 = vpop.f32.mrb[66].mxu1 }
 0x6df   : > { %v6184_v36 = vcombine.high %v6182_v30, %v6182_v30  ;;  %v6191_v51 = vrot.slane %v6182_v30, %v9057_v21  ;;  %v6582_v31 = vpop.f32.mrb[66].mxu0  ;;  %v7934_v32 = vpop.f32.mrb[67].mxu1 }
 0x6e0   : > { %v6586_v33 = vadd.f32 %v6582_v31, %v6495_v20  ;;  %v7929_v34 = vpop.f32.mrb[67].mxu0 }
 0x6e1   : > { %v6198_v6 = vrot.slane %v6184_v36, %v9057_v21  ;;  %v6199_v37 = vcombine.high %v6191_v51, %v6191_v51  ;;  %v6207_v4 = vrot.slane %v6191_v51, %v9057_v21 }
 0x6e2   : > { %v6665_v24 = vadd.f32 %v6661_v22, %v6586_v33  ;;  %v6831_v19 = vpop.f32.mrb[68].mxu1 }
 0x6e3   : > { %v6200_v38 = vcombine.high %v6198_v6, %v6198_v6  ;;  %v6214_v40 = vrot.slane %v6198_v6, %v9057_v21  ;;  %v6221_v39 = vrot.slane %v6199_v37, %v9057_v21  ;;  %v6229_v41 = vcombine.high %v6207_v4, %v6207_v4  ;;  %6241 = vst.msk [vmem:[%s8280_s20 + $0x6] sm:$0x1] %vm1350_vm3, %v6207_v4  ;;  %v6740_v42 = vpop.f32.mrb[68].mxu0  ;;  %v7944_v55 = vpop.f32.mrb[69].mxu1 }
 0x6e4   : > { %v6744_v9 = vadd.f32 %v6740_v42, %v6665_v24  ;;  %v7939_v44 = vpop.f32.mrb[69].mxu0 }
 0x6e5   : > { %v6228_v18 = vrot.slane %v6200_v38, %v9057_v21  ;;  %v6230_v45 = vcombine.high %v6214_v40, %v6214_v40  ;;  %v6231_v47 = vcombine.high %v6221_v39, %v6221_v39  ;;  %6242 = vst.msk [vmem:[%s8280_s20 + $0xe] sm:$0x1] %vm1350_vm3, %v6221_v39  ;;  %6243 = vst.msk [vmem:[%s8280_s20 + $0x16] sm:$0x1] %vm1350_vm3, %v6229_v41 }
 0x6e6   : > { %6245 = vst.msk [vmem:[%s8280_s20 + $0x26] sm:$0x1] %vm1350_vm3, %v6214_v40  ;;  %v6835_v48 = vadd.f32 %v6831_v19, %v6744_v9  ;;  %v6989_v49 = vpop.f32.mrb[70].mxu1 }
 0x6e7   : > { %v6232_v50 = vcombine.high %v6228_v18, %v6228_v18  ;;  %6244 = vst.msk [vmem:[%s8280_s20 + $0x1e] sm:$0x1] %vm1350_vm3, %v6231_v47  ;;  %6246 = vst.msk [vmem:[%s8280_s20 + $0x2e] sm:$0x1] %vm1350_vm3, %v6228_v18  ;;  %v6910_v52 = vpop.f32.mrb[70].mxu0  ;;  %v7954_v53 = vpop.f32.mrb[71].mxu1 }
 0x6e8   : > { %6247 = vst.msk [vmem:[%s8280_s20 + $0x36] sm:$0x1] %vm1350_vm3, %v6230_v45  ;;  %v6914_v56 = vadd.f32 %v6910_v52, %v6835_v48  ;;  %v7949_v58 = vpop.f32.mrb[71].mxu0 }
 0x6e9   : > { %6248 = vst.msk [vmem:[%s8280_s20 + $0x3e] sm:$0x1] %vm1350_vm3, %v6232_v50 }
 0x6ea   : > { %v6993_v60 = vadd.f32 %v6989_v49, %v6914_v56 }
 0x6ec   : > { %v6994_v0 = vadd.f32 %v6993_v60, %v9054_v29 }
 0x6ee   : > { %vm6995_vm10 = vcmp.ge.f32.partialorder %v6994_v0, 0.0  ;;  %v6996_v2 = vmul.f32 0.1, %v6994_v0 }
 0x6f0   : > { %v6997_v63 = vsel %vm6995_vm10, %v6994_v0, %v6996_v2 }
 0x6f1   : > { %v6999_v35 = vcombine.high %v6997_v63, %v6997_v63  ;;  %v7006_v59 = vrot.slane %v6997_v63, %v9057_v21 }
 0x6f3   : > { %v7013_v1 = vrot.slane %v6999_v35, %v9057_v21  ;;  %v7014_v61 = vcombine.high %v7006_v59, %v7006_v59  ;;  %v7022_v3 = vrot.slane %v7006_v59, %v9057_v21 }
 0x6f5   : > { %v7015_v29 = vcombine.high %v7013_v1, %v7013_v1  ;;  %v7029_v8 = vrot.slane %v7013_v1, %v9057_v21  ;;  %v7036_v7 = vrot.slane %v7014_v61, %v9057_v21  ;;  %v7044_v17 = vcombine.high %v7022_v3, %v7022_v3  ;;  %7056 = vst.msk [vmem:[%s8280_s20 + $0x7] sm:$0x1] %vm1350_vm3, %v7022_v3 }
 0x6f7   : > { %v7043_v5 = vrot.slane %v7015_v29, %v9057_v21  ;;  %v7045_v62 = vcombine.high %v7029_v8, %v7029_v8  ;;  %v7046_v43 = vcombine.high %v7036_v7, %v7036_v7  ;;  %7057 = vst.msk [vmem:[%s8280_s20 + $0xf] sm:$0x1] %vm1350_vm3, %v7036_v7  ;;  %7058 = vst.msk [vmem:[%s8280_s20 + $0x17] sm:$0x1] %vm1350_vm3, %v7044_v17 }
 0x6f8   : > { %7060 = vst.msk [vmem:[%s8280_s20 + $0x27] sm:$0x1] %vm1350_vm3, %v7029_v8 }
 0x6f9   : > { %v7047_v21 = vcombine.high %v7043_v5, %v7043_v5  ;;  %7059 = vst.msk [vmem:[%s8280_s20 + $0x1f] sm:$0x1] %vm1350_vm3, %v7046_v43  ;;  %7061 = vst.msk [vmem:[%s8280_s20 + $0x2f] sm:$0x1] %vm1350_vm3, %v7043_v5 }
 0x6fa   : > { %7062 = vst.msk [vmem:[%s8280_s20 + $0x37] sm:$0x1] %vm1350_vm3, %v7045_v62 }
 0x6fb   : > { %7063 = vst.msk [vmem:[%s8280_s20 + $0x3f] sm:$0x1] %vm1350_vm3, %v7047_v21 }
 0x6fc   : > { %8061 = shalt.err (!%p8058_p13)
}
 0x6fd   : > { %s8062_s4 = scalar_lea.hbm %s9240_s28, 1024  ;;  %s8066_s11 = scalar_lea.hbm %s9309_s3, 4096 }
 0x6fe   : > { %p8063_p0 = scmp.ne.s32.totalorder %s9240_s28, %s8062_s4  ;;  %p8067_p4 = scmp.lt.u32.totalorder %s9240_s28, %s9309_s3 }
 0x6ff   : > { %p8068_p5 = scmp.lt.u32.totalorder %s8066_s11, %s8062_s4  ;;  %p8070_p7 = scmp.lt.u32.totalorder %s8062_s4, %s9240_s28 }
 0x700   : > { %p8064_p1 = pnand %p8063_p0, %p8235_p3 }
 0x701   : > { %p8069_p6 = por %p8068_p5, %p8067_p4 }
 0x702   : > { %p8065_p2 = pneg %p8064_p1 }
 0x703   : > { %p8071_p9 = por %p8070_p7, %p8069_p6 }
 0x705   : > { %p8072_p10 = pnand %p8071_p9, %p8065_p2 }
 0x707   : > { %8075 = shalt.err (!%p8072_p10)
}
 0x708   : > { %s8161_s24 = smov 128   ;;  %s8162_s16 = smov 256  }
 0x709   : > { %s8163_s27 = smov 8  }
 0x70a   : > { %7955 = dma.vmem_to_hbm [thread:$0]  (%p8235_p3), %s9242_s15, 1024, %s9240_s28, %s9254_s29, %s8161_s24, %s8162_s16, %s8163_s27  }
 0x70b PF: > { %p7961_p11 = scmp.ge.s32.totalorder %s8142_s19, 2  ;;  %s7094_s5 = sand.u32 1, %s8114_s12  }
 0x70c   : > { %s7095_s7 = scalar_lea.sflag [#allocation4], %s7094_s5 }
 0x70d   : > { %p7958_p12 = pnand %p7961_p11, %p8244_p8 }
 0x70f   : > { %8109 = dma.done.wait (!%p7958_p12), %s7095_s7, 1024  }
 0x710   : > { %8111 = vsyncadd (!%p7958_p12), %s7095_s7, 4294966272  ;;  %s16_s19 = sadd.s32 1, %s8142_s19   ;;  %s9312_s12 = smov %s8118_s13 }
 0x711   : > { %p13_p13 = scmp.ge.s32.totalorder %s16_s19, 6   ;;  %s9313_s13 = smov %s8122_s14 }
 0x712   : > { %s9314_s14 = smov %s8253_s30  ;;  %s9315_s15 = smov %s8134_s17 }
 0x713   : > { %s9316_s16 = smov %s8138_s18  ;;  %s9317_s17 = smov %s9320_s22 }
 0x714   : > { %s9318_s18 = smov %s9324_s23  ;;  %15 = sbr.rel (!%p13_p13) target bundleno = 5 (0x5), region = 125 }
 0x71b   :  { %7100 = vsyncpa [#allocation4], 1 }
 0x71c   :  { %7102 = vsyncpa [#allocation4 + $0x1], 1 }

</bundles_post_ra>
